<compile_context>
chip_gen: v7x
topology: tpu7x:2x2x1
jax: 0.10.0
libtpu: 0.0.40
codegen_flags: <defaults>
</compile_context>

<pallas_src>
import math

import numpy as np
import jax
import jax.numpy as jnp
from jax import lax
from jax.experimental import pallas as pl
from jax.experimental.pallas import tpu as pltpu

# Exact f32 matmuls for both the kernel and the pure-JAX reference so the
# correctness check can use a tight tolerance.
jax.config.update("jax_default_matmul_precision", "highest")

# ----------------------------------------------------------------------------
# Module-consistent hyperparameters (small shapes)
# ----------------------------------------------------------------------------
N_HEAD = 4
HIDDEN = 32
D_HEAD = HIDDEN // N_HEAD          # nn.MultiheadAttention head dim = embed_dim // num_heads
HH = HIDDEN // 2                   # LSTM hidden per direction
D_LSTM_IN = 2 * HIDDEN + 1         # concat(cln_embeds, attn_out, rel_pos)
BSZ = 2
SEQ = 8

VSPEC = pl.BlockSpec(memory_space=pltpu.MemorySpace.VMEM)


# ============================================================================
# Single fused kernel: MHA + (folded) concat + BiLSTM + start/end heads
# ============================================================================
def _fused_kernel(x_ref, rel_ref, seg_ref, seg_t_ref, w_qkv_ref, b_qkv_ref,
                  w_ih_xa_ref, w_rel_ref, b_g_ref, p_time_ref, w_hh_ref,
                  w_head_f_ref, w_head_b_ref, b_head_ref, out_ref):
    B, S, H = x_ref.shape
    hh = w_hh_ref.shape[0] // 2        # LSTM hidden per direction
    G = 8 * hh                         # packed gate width (4 gates x 2 directions)
    f32 = jnp.float32

    seg = seg_ref[...]                 # (H, n_head)   0/1 head-segment matrix
    seg_t = seg_t_ref[...]             # (n_head, H)
    w_hh = w_hh_ref[...]               # (2*hh, G)     packed recurrent weights (both dirs)

    # ---- fused QKV projection over all B*S rows (one matmul) -------------------
    x_flat = x_ref[...].reshape(B * S, H)
    qkv = jnp.dot(x_flat, w_qkv_ref[...], preferred_element_type=f32) + b_qkv_ref[...]
    q, k, v = qkv[:, 0:H], qkv[:, H:2 * H], qkv[:, 2 * H:3 * H]   # q pre-scaled by 1/sqrt(dh)
    qb = [q[i * S:(i + 1) * S] for i in range(B)]
    kb = [k[i * S:(i + 1) * S] for i in range(B)]
    vb = [v[i * S:(i + 1) * S] for i in range(B)]

    # ---- multi-head self-attention over the bsz axis (seq acts as batch) -------
    # all B^2 (query i, key j) per-head scores with a single (B^2*S, H)x(H, n_head) matmul
    qk = jnp.concatenate([qb[i] * kb[j] for i in range(B) for j in range(B)], axis=0)
    sc = jnp.dot(qk, seg, preferred_element_type=f32)                  # (B*B*S, n_head)
    s = [[sc[(i * B + j) * S:(i * B + j + 1) * S] for j in range(B)] for i in range(B)]

    p = [[None] * B for _ in range(B)]
    if B == 2:
        # exact 2-way softmax via the sigmoid identity: softmax([a,b])[0] = sigmoid(a-b)
        d = jnp.concatenate([s[0][0] - s[0][1], s[1][0] - s[1][1]], axis=0)
        pd = jax.nn.sigmoid(d)
        p[0][0], p[1][0] = pd[0:S], pd[S:2 * S]
        p[0][1], p[1][1] = 1.0 - p[0][0], 1.0 - p[1][0]
    else:
        for i in range(B):
            st = jnp.stack(s[i], axis=-1)
            st = st - jnp.max(st, axis=-1, keepdims=True)
            e = jnp.exp(st)
            w = e / jnp.sum(e, axis=-1, keepdims=True)
            for j in range(B):
                p[i][j] = w[..., j]

    # expand the per-head probabilities to lanes with one matmul, apply to values
    p_stack = jnp.concatenate([p[i][j] for i in range(B) for j in range(B)], axis=0)
    pe = jnp.dot(p_stack, seg_t, preferred_element_type=f32)           # (B*B*S, H)
    o_rows = []
    for i in range(B):
        oi = pe[(i * B) * S:(i * B + 1) * S] * vb[0]
        for j in range(1, B):
            oi = oi + pe[(i * B + j) * S:(i * B + j + 1) * S] * vb[j]
        o_rows.append(oi)
    o_flat = jnp.concatenate(o_rows, axis=0)                           # (B*S, H)
    # NOTE: the MHA out-projection (W_o, b_o) is folded into w_ih_xa / b_g (prepare_params).

    # ---- LSTM input-gate precompute for every (batch, time, direction) ----------
    xo = jnp.concatenate([x_flat, o_flat], axis=1)                     # (B*S, 2H)
    rel_col = rel_ref[...].reshape(B * S, 1)
    pfb = (jnp.dot(xo, w_ih_xa_ref[...], preferred_element_type=f32)
           + rel_col * w_rel_ref[...] + b_g_ref[...])                  # (B*S, 2G) [fwd | bwd]
    pfb_s = jnp.concatenate([pfb[:, 0:G], pfb[:, G:2 * G]], axis=0)    # (2*B*S, G)
    # one 0/1 permutation matmul: batch-major rows -> time-major, bwd half time-flipped,
    # fwd+bwd already summed -> the recurrence only needs contiguous 2-row slices
    gin = jnp.dot(p_time_ref[...], pfb_s, preferred_element_type=f32)  # (B*S, G)

    # ---- batch-interleaved bidirectional LSTM: S serial steps over (B, G) gates --
    # gate lane layout: [i_f i_b | f_f f_b | g_f g_b | o_f o_b]; g columns pre-scaled by 2
    h = jnp.zeros((B, 2 * hh), f32)                    # [h_fwd | h_bwd]
    c = jnp.zeros((B, 2 * hh), f32)                    # [c_fwd | c_bwd]
    steps = []
    for t in range(S):
        gates = jnp.dot(h, w_hh, preferred_element_type=f32) + gin[t * B:(t + 1) * B, :]
        sig = jax.nn.sigmoid(gates)                    # single EUP pass over the 128 gate lanes
        i_g = sig[:, 0:2 * hh]
        f_g = sig[:, 2 * hh:4 * hh]
        g_g = 2.0 * sig[:, 4 * hh:6 * hh] - 1.0        # tanh(x) = 2*sigmoid(2x) - 1
        o_g = sig[:, 6 * hh:8 * hh]
        c = f_g * c + i_g * g_g
        h = o_g * jnp.tanh(c)
        steps.append(h)

    # ---- packed start/end heads; realign the bwd direction via list reversal -----
    hs_f = jnp.concatenate(steps, axis=0)              # (B*S, 2hh), time-major rows (t, b)
    hs_b = jnp.concatenate(steps[::-1], axis=0)        # same rows, time-reversed
    logits = (jnp.dot(hs_f, w_head_f_ref[...], preferred_element_type=f32)
              + jnp.dot(hs_b, w_head_b_ref[...], preferred_element_type=f32)
              + b_head_ref[...])                       # (B*S, 2) = [start | end]
    out_ref[...] = jax.nn.sigmoid(logits).reshape(S, B, 2)   # single full store


# ----------------------------------------------------------------------------
# One-time parameter packing (hoisted out of the per-call path)
# ----------------------------------------------------------------------------
def prepare_params(p, bsz=BSZ, seq=SEQ):
    f32 = jnp.float32
    H, hh, nh, dh = HIDDEN, HH, N_HEAD, D_HEAD
    G = 8 * hh
    scale = 1.0 / math.sqrt(dh)

    # fused QKV (q columns / bias pre-scaled by 1/sqrt(d_head))
    w_qkv = jnp.concatenate([p['wq'].T * scale, p['wk'].T, p['wv'].T], axis=1)   # (H, 3H)
    b_qkv = jnp.concatenate([p['bq'] * scale, p['bk'], p['bv']])[None, :]        # (1, 3H)
    wo_t = p['wo'].T                                                             # (H, H)
    bo = p['bo'][None, :]                                                        # (1, H)

    # 0/1 head-segment matrices (hoisted constants)
    lane = np.arange(H)[:, None]
    head = np.arange(nh)[None, :]
    seg = jnp.asarray((lane // dh == head).astype(np.float32))                   # (H, nh)
    seg_t = seg.T                                                                # (nh, H)

    # --- LSTM packing: gate lane layout [i_f i_b | f_f f_b | g_f g_b | o_f o_b] ---
    def scatter(w_t, direction):
        rows = w_t.shape[0]
        out = jnp.zeros((rows, 4, 2, hh), f32)
        out = out.at[:, :, direction, :].set(w_t.reshape(rows, 4, hh))
        return out.reshape(rows, G)

    wih_f = p['w_ih_f'].T          # (2H+1, 4hh); input rows ordered [x | attn | rel]
    wih_b = p['w_ih_b'].T
    w_x2 = jnp.concatenate([scatter(wih_f[0:H], 0), scatter(wih_b[0:H], 1)], axis=1)          # (H, 2G)
    w_a2 = jnp.concatenate([scatter(wih_f[H:2 * H], 0), scatter(wih_b[H:2 * H], 1)], axis=1)  # (H, 2G)
    w_rel2 = jnp.concatenate([scatter(wih_f[2 * H:2 * H + 1], 0),
                              scatter(wih_b[2 * H:2 * H + 1], 1)], axis=1)                    # (1, 2G)

    # fold the attention out-projection (attn = o @ wo_t + bo) into the attn input block
    w_a2_folded = wo_t @ w_a2                                                    # (H, 2G)
    b_from_bo = bo @ w_a2                                                        # (1, 2G)
    b_lstm = (scatter((p['b_ih_f'] + p['b_hh_f'])[None, :], 0)
              + scatter((p['b_ih_b'] + p['b_hh_b'])[None, :], 1))                # (1, G)
    b_g2 = b_from_bo + jnp.concatenate([b_lstm, jnp.zeros((1, G), f32)], axis=1)  # (1, 2G)

    w_ih_xa2 = jnp.concatenate([w_x2, w_a2_folded], axis=0)                      # (2H, 2G)
    w_hh2 = jnp.concatenate([scatter(p['w_hh_f'].T, 0),
                             scatter(p['w_hh_b'].T, 1)], axis=0)                 # (2hh, G)

    # tanh(x) = 2*sigmoid(2x) - 1  ->  pre-scale every g-gate column by 2 so the kernel
    # evaluates a single sigmoid over the whole packed gate vector per time step.
    lanes = np.arange(G)
    gsc = jnp.asarray(np.where((lanes >= 4 * hh) & (lanes < 6 * hh), 2.0, 1.0).astype(np.float32))
    gsc2 = jnp.concatenate([gsc, gsc])[None, :]
    w_ih_xa2 = w_ih_xa2 * gsc2
    w_rel2 = w_rel2 * gsc2
    b_g2 = b_g2 * gsc2
    w_hh2 = w_hh2 * gsc[None, :]

    # 0/1 permutation: batch-major (fwd | bwd stacked) rows -> time-major, bwd time-flipped
    P = np.zeros((bsz * seq, 2 * bsz * seq), np.float32)
    for t in range(seq):
        for b in range(bsz):
            P[t * bsz + b, b * seq + t] = 1.0                         # fwd input at time t
            P[t * bsz + b, bsz * seq + b * seq + (seq - 1 - t)] = 1.0  # bwd input at time S-1-t
    p_time = jnp.asarray(P)

    # start/end heads packed per direction (fwd rows / bwd rows zeroed respectively)
    ws, we = p['w_start'].T, p['w_end'].T                             # (2hh, 1)
    zer = jnp.zeros((hh, 1), f32)
    w_head_f = jnp.concatenate([jnp.concatenate([ws[0:hh], zer], axis=0),
                                jnp.concatenate([we[0:hh], zer], axis=0)], axis=1)   # (2hh, 2)
    w_head_b = jnp.concatenate([jnp.concatenate([zer, ws[hh:2 * hh]], axis=0),
                                jnp.concatenate([zer, we[hh:2 * hh]], axis=0)], axis=1)
    b_head = jnp.concatenate([p['b_start'], p['b_end']])[None, :]                    # (1, 2)

    return (seg, seg_t, w_qkv, b_qkv, w_ih_xa2, w_rel2, b_g2, p_time,
            w_hh2, w_head_f, w_head_b, b_head)


# ----------------------------------------------------------------------------
# Full forward: a single gridless pallas_call (all data lives in VMEM)
# ----------------------------------------------------------------------------
@jax.jit
def forward(prepped, cln_embeds, rel_pos):
    B, S, _ = cln_embeds.shape
    out = pl.pallas_call(
        _fused_kernel,
        out_shape=jax.ShapeDtypeStruct((S, B, 2), jnp.float32),
        in_specs=[VSPEC] * (2 + len(prepped)),
        out_specs=VSPEC,
    )(cln_embeds, rel_pos, *prepped)
    out = jnp.swapaxes(out, 0, 1)          # tiny XLA glue, fuses with the output slices below
    return out[..., 0:1], out[..., 1:2]


# ----------------------------------------------------------------------------
# Deterministic parameter init (shapes follow the PyTorch module's __init__)
# ----------------------------------------------------------------------------
def init_params(key):
    ks = jax.random.split(key, 16)

    def xavier(k, shape, fan_in, fan_out):
        lim = math.sqrt(6.0 / (fan_in + fan_out))
        return jax.random.uniform(k, shape, jnp.float32, -lim, lim)

    llim = 1.0 / math.sqrt(HH)

    def lstm_u(k, shape):
        return jax.random.uniform(k, shape, jnp.float32, -llim, llim)

    return {
        # MultiheadAttention (in_proj xavier-uniform, zero biases — PyTorch default)
        'wq': xavier(ks[0], (HIDDEN, HIDDEN), HIDDEN, HIDDEN),
        'wk': xavier(ks[1], (HIDDEN, HIDDEN), HIDDEN, HIDDEN),
        'wv': xavier(ks[2], (HIDDEN, HIDDEN), HIDDEN, HIDDEN),
        'bq': jnp.zeros((HIDDEN,), jnp.float32),
        'bk': jnp.zeros((HIDDEN,), jnp.float32),
        'bv': jnp.zeros((HIDDEN,), jnp.float32),
        'wo': xavier(ks[3], (HIDDEN, HIDDEN), HIDDEN, HIDDEN),
        'bo': jnp.zeros((HIDDEN,), jnp.float32),
        # Bidirectional LSTM (uniform(-1/sqrt(hh), 1/sqrt(hh)) — PyTorch default)
        'w_ih_f': lstm_u(ks[4], (4 * HH, D_LSTM_IN)),
        'w_hh_f': lstm_u(ks[5], (4 * HH, HH)),
        'b_ih_f': lstm_u(ks[6], (4 * HH,)),
        'b_hh_f': lstm_u(ks[7], (4 * HH,)),
        'w_ih_b': lstm_u(ks[8], (4 * HH, D_LSTM_IN)),
        'w_hh_b': lstm_u(ks[9], (4 * HH, HH)),
        'b_ih_b': lstm_u(ks[10], (4 * HH,)),
        'b_hh_b': lstm_u(ks[11], (4 * HH,)),
        # fcn_start / fcn_end (xavier_uniform weight, zero bias — per init_weights)
        'w_start': xavier(ks[12], (1, HIDDEN), HIDDEN, 1),
        'b_start': jnp.zeros((1,), jnp.float32),
        'w_end': xavier(ks[13], (1, HIDDEN), HIDDEN, 1),
        'b_end': jnp.zeros((1,), jnp.float32),
    }


# ----------------------------------------------------------------------------
# Pure-JAX reference mirroring the PyTorch forward (for correctness check)
# ----------------------------------------------------------------------------
def reference_forward(p, x, rpe):
    B, S, H = x.shape
    dh = H // N_HEAD
    q = (x @ p['wq'].T + p['bq']) * (1.0 / math.sqrt(dh))
    k = x @ p['wk'].T + p['bk']
    v = x @ p['wv'].T + p['bv']
    qh = q.reshape(B, S, N_HEAD, dh)
    kh = k.reshape(B, S, N_HEAD, dh)
    vh = v.reshape(B, S, N_HEAD, dh)
    # attention over dim 0 (bsz), batch over dim 1 (seq) — same as PyTorch MHA
    # fed with a batch-first tensor.
    scores = jnp.einsum('inhd,jnhd->nhij', qh, kh)
    pmat = jax.nn.softmax(scores, axis=-1)
    o = jnp.einsum('nhij,jnhd->inhd', pmat, vh).reshape(B, S, H)
    attn = o @ p['wo'].T + p['bo']
    final = jnp.concatenate([x, attn, rpe], axis=-1)

    def cell(carry, x_t, wi, wh, b):
        h, c = carry
        gates = x_t @ wi.T + h @ wh.T + b
        i, f, g, oo = jnp.split(gates, 4, axis=-1)
        i, f, oo = jax.nn.sigmoid(i), jax.nn.sigmoid(f), jax.nn.sigmoid(oo)
        g = jnp.tanh(g)
        c = f * c + i * g
        h = oo * jnp.tanh(c)
        return (h, c), h

    xt = jnp.transpose(final, (1, 0, 2))                  # (S, B, D)
    h0 = jnp.zeros((B, HH), jnp.float32)
    c0 = jnp.zeros((B, HH), jnp.float32)
    bf = p['b_ih_f'] + p['b_hh_f']
    bb = p['b_ih_b'] + p['b_hh_b']
    _, hf = lax.scan(lambda cr, xx: cell(cr, xx, p['w_ih_f'], p['w_hh_f'], bf), (h0, c0), xt)
    _, hb = lax.scan(lambda cr, xx: cell(cr, xx, p['w_ih_b'], p['w_hh_b'], bb), (h0, c0), xt[::-1])
    hb = hb[::-1]
    lstm_out = jnp.transpose(jnp.concatenate([hf, hb], axis=-1), (1, 0, 2))  # (B, S, H)
    starts = jax.nn.sigmoid(lstm_out @ p['w_start'].T + p['b_start'])
    ends = jax.nn.sigmoid(lstm_out @ p['w_end'].T + p['b_end'])
    return starts, ends


if __name__ == "__main__":
    key = jax.random.PRNGKey(0)
    k_x, k_r, k_p = jax.random.split(key, 3)
    cln_embeds = jax.random.normal(k_x, (BSZ, SEQ, HIDDEN), jnp.float32)
    rel_pos = jax.random.normal(k_r, (BSZ, SEQ, 1), jnp.float32)
    params = init_params(k_p)
    prepped = prepare_params(params)          # one-time weight packing (outside forward)

    starts, ends = forward(prepped, cln_embeds, rel_pos)
    starts, ends = jax.block_until_ready((starts, ends))

    assert starts.shape == (BSZ, SEQ, 1) and ends.shape == (BSZ, SEQ, 1)
    ref_s, ref_e = reference_forward(params, cln_embeds, rel_pos)
    assert jnp.allclose(starts, ref_s, atol=1e-4), "starts mismatch vs reference"
    assert jnp.allclose(ends, ref_e, atol=1e-4), "ends mismatch vs reference"

    print("KERNEL_OK")
</pallas_src>

<mosaic_0001>
module attributes {stable_mosaic.version = 11 : i64} {
  func.func @_fused_kernel(%arg0: memref<2x8x32xf32, #tpu.memory_space<vmem>>, %arg1: memref<2x8x1xf32, #tpu.memory_space<vmem>>, %arg2: memref<32x4xf32, #tpu.memory_space<vmem>>, %arg3: memref<4x32xf32, #tpu.memory_space<vmem>>, %arg4: memref<32x96xf32, #tpu.memory_space<vmem>>, %arg5: memref<1x96xf32, #tpu.memory_space<vmem>>, %arg6: memref<64x256xf32, #tpu.memory_space<vmem>>, %arg7: memref<1x256xf32, #tpu.memory_space<vmem>>, %arg8: memref<1x256xf32, #tpu.memory_space<vmem>>, %arg9: memref<16x32xf32, #tpu.memory_space<vmem>>, %arg10: memref<32x128xf32, #tpu.memory_space<vmem>>, %arg11: memref<32x2xf32, #tpu.memory_space<vmem>>, %arg12: memref<32x2xf32, #tpu.memory_space<vmem>>, %arg13: memref<1x2xf32, #tpu.memory_space<vmem>>, %arg14: memref<8x2x2xf32, #tpu.memory_space<vmem>>) attributes {dimension_semantics = [], scalar_prefetch = 0 : i64, scratch_operands = 0 : i64, tpu.core_type = #tpu.core_type<tc>} {
    %c0 = arith.constant 0 : index
    %c0_0 = arith.constant 0 : index
    %0 = vector.load %arg2[%c0, %c0_0] : memref<32x4xf32, #tpu.memory_space<vmem>>, vector<32x4xf32>
    %c0_1 = arith.constant 0 : index
    %c0_2 = arith.constant 0 : index
    %1 = vector.load %arg3[%c0_1, %c0_2] : memref<4x32xf32, #tpu.memory_space<vmem>>, vector<4x32xf32>
    %c0_3 = arith.constant 0 : index
    %c0_4 = arith.constant 0 : index
    %2 = vector.load %arg10[%c0_3, %c0_4] : memref<32x128xf32, #tpu.memory_space<vmem>>, vector<32x128xf32>
    %c0_5 = arith.constant 0 : index
    %c0_6 = arith.constant 0 : index
    %c0_7 = arith.constant 0 : index
    %3 = vector.load %arg0[%c0_5, %c0_6, %c0_7] : memref<2x8x32xf32, #tpu.memory_space<vmem>>, vector<2x8x32xf32>
    %4 = vector.shape_cast %3 : vector<2x8x32xf32> to vector<16x32xf32>
    %c0_8 = arith.constant 0 : index
    %c0_9 = arith.constant 0 : index
    %5 = vector.load %arg4[%c0_8, %c0_9] : memref<32x96xf32, #tpu.memory_space<vmem>>, vector<32x96xf32>
    %cst = arith.constant dense<0.000000e+00> : vector<16x96xf32>
    %6 = tpu.matmul %4, %5, %cst {dimension_numbers = #tpu.dot_dimension_numbers<[1], [0], [0], [1], [0, 0, 1, 1], [], []>, precision = #tpu.contract_precision<fp32>} : vector<16x32xf32>, vector<32x96xf32>, vector<16x96xf32> -> vector<16x96xf32>
    %c0_10 = arith.constant 0 : index
    %c0_11 = arith.constant 0 : index
    %7 = vector.load %arg5[%c0_10, %c0_11] : memref<1x96xf32, #tpu.memory_space<vmem>>, vector<1x96xf32>
    %8 = vector.broadcast %7 : vector<1x96xf32> to vector<16x96xf32>
    %9 = arith.addf %6, %8 : vector<16x96xf32>
    %10 = vector.extract_strided_slice %9 {offsets = [0, 0], sizes = [16, 32], strides = [1, 1]} : vector<16x96xf32> to vector<16x32xf32>
    %11 = vector.extract_strided_slice %9 {offsets = [0, 32], sizes = [16, 32], strides = [1, 1]} : vector<16x96xf32> to vector<16x32xf32>
    %12 = vector.extract_strided_slice %9 {offsets = [0, 64], sizes = [16, 32], strides = [1, 1]} : vector<16x96xf32> to vector<16x32xf32>
    %13 = vector.extract_strided_slice %10 {offsets = [0, 0], sizes = [8, 32], strides = [1, 1]} : vector<16x32xf32> to vector<8x32xf32>
    %14 = vector.extract_strided_slice %10 {offsets = [8, 0], sizes = [8, 32], strides = [1, 1]} : vector<16x32xf32> to vector<8x32xf32>
    %15 = vector.extract_strided_slice %11 {offsets = [0, 0], sizes = [8, 32], strides = [1, 1]} : vector<16x32xf32> to vector<8x32xf32>
    %16 = vector.extract_strided_slice %11 {offsets = [8, 0], sizes = [8, 32], strides = [1, 1]} : vector<16x32xf32> to vector<8x32xf32>
    %17 = vector.extract_strided_slice %12 {offsets = [0, 0], sizes = [8, 32], strides = [1, 1]} : vector<16x32xf32> to vector<8x32xf32>
    %18 = vector.extract_strided_slice %12 {offsets = [8, 0], sizes = [8, 32], strides = [1, 1]} : vector<16x32xf32> to vector<8x32xf32>
    %19 = arith.mulf %13, %15 : vector<8x32xf32>
    %20 = arith.mulf %13, %16 : vector<8x32xf32>
    %21 = arith.mulf %14, %15 : vector<8x32xf32>
    %22 = arith.mulf %14, %16 : vector<8x32xf32>
    %23 = tpu.concatenate %19, %20, %21, %22 in 0 : vector<8x32xf32>, vector<8x32xf32>, vector<8x32xf32>, vector<8x32xf32> -> vector<32x32xf32>
    %cst_12 = arith.constant dense<0.000000e+00> : vector<32x4xf32>
    %24 = tpu.matmul %23, %0, %cst_12 {dimension_numbers = #tpu.dot_dimension_numbers<[1], [0], [0], [1], [0, 0, 1, 1], [], []>, precision = #tpu.contract_precision<fp32>} : vector<32x32xf32>, vector<32x4xf32>, vector<32x4xf32> -> vector<32x4xf32>
    %25 = vector.extract_strided_slice %24 {offsets = [0, 0], sizes = [8, 4], strides = [1, 1]} : vector<32x4xf32> to vector<8x4xf32>
    %26 = vector.extract_strided_slice %24 {offsets = [8, 0], sizes = [8, 4], strides = [1, 1]} : vector<32x4xf32> to vector<8x4xf32>
    %27 = vector.extract_strided_slice %24 {offsets = [16, 0], sizes = [8, 4], strides = [1, 1]} : vector<32x4xf32> to vector<8x4xf32>
    %28 = vector.extract_strided_slice %24 {offsets = [24, 0], sizes = [8, 4], strides = [1, 1]} : vector<32x4xf32> to vector<8x4xf32>
    %29 = arith.subf %25, %26 : vector<8x4xf32>
    %30 = arith.subf %27, %28 : vector<8x4xf32>
    %31 = tpu.concatenate %29, %30 in 0 : vector<8x4xf32>, vector<8x4xf32> -> vector<16x4xf32>
    %32 = arith.negf %31 : vector<16x4xf32>
    %33 = math.exp %32 : vector<16x4xf32>
    %cst_13 = arith.constant 1.000000e+00 : f32
    %34 = vector.broadcast %cst_13 : f32 to vector<16x4xf32>
    %35 = arith.addf %34, %33 : vector<16x4xf32>
    %36 = arith.divf %34, %35 : vector<16x4xf32>
    %37 = vector.extract_strided_slice %36 {offsets = [0, 0], sizes = [8, 4], strides = [1, 1]} : vector<16x4xf32> to vector<8x4xf32>
    %38 = vector.extract_strided_slice %36 {offsets = [8, 0], sizes = [8, 4], strides = [1, 1]} : vector<16x4xf32> to vector<8x4xf32>
    %cst_14 = arith.constant 1.000000e+00 : f32
    %39 = vector.broadcast %cst_14 : f32 to vector<8x4xf32>
    %40 = arith.subf %39, %37 : vector<8x4xf32>
    %cst_15 = arith.constant 1.000000e+00 : f32
    %41 = vector.broadcast %cst_15 : f32 to vector<8x4xf32>
    %42 = arith.subf %41, %38 : vector<8x4xf32>
    %43 = tpu.concatenate %37, %40, %38, %42 in 0 : vector<8x4xf32>, vector<8x4xf32>, vector<8x4xf32>, vector<8x4xf32> -> vector<32x4xf32>
    %cst_16 = arith.constant dense<0.000000e+00> : vector<32x32xf32>
    %44 = tpu.matmul %43, %1, %cst_16 {dimension_numbers = #tpu.dot_dimension_numbers<[1], [0], [0], [1], [0, 0, 1, 1], [], []>, precision = #tpu.contract_precision<fp32>} : vector<32x4xf32>, vector<4x32xf32>, vector<32x32xf32> -> vector<32x32xf32>
    %45 = vector.extract_strided_slice %44 {offsets = [0, 0], sizes = [8, 32], strides = [1, 1]} : vector<32x32xf32> to vector<8x32xf32>
    %46 = arith.mulf %45, %17 : vector<8x32xf32>
    %47 = vector.extract_strided_slice %44 {offsets = [8, 0], sizes = [8, 32], strides = [1, 1]} : vector<32x32xf32> to vector<8x32xf32>
    %48 = arith.mulf %47, %18 : vector<8x32xf32>
    %49 = arith.addf %46, %48 : vector<8x32xf32>
    %50 = vector.extract_strided_slice %44 {offsets = [16, 0], sizes = [8, 32], strides = [1, 1]} : vector<32x32xf32> to vector<8x32xf32>
    %51 = arith.mulf %50, %17 : vector<8x32xf32>
    %52 = vector.extract_strided_slice %44 {offsets = [24, 0], sizes = [8, 32], strides = [1, 1]} : vector<32x32xf32> to vector<8x32xf32>
    %53 = arith.mulf %52, %18 : vector<8x32xf32>
    %54 = arith.addf %51, %53 : vector<8x32xf32>
    %55 = tpu.concatenate %49, %54 in 0 : vector<8x32xf32>, vector<8x32xf32> -> vector<16x32xf32>
    %56 = tpu.concatenate %4, %55 in 1 : vector<16x32xf32>, vector<16x32xf32> -> vector<16x64xf32>
    %c0_17 = arith.constant 0 : index
    %c0_18 = arith.constant 0 : index
    %c0_19 = arith.constant 0 : index
    %57 = vector.load %arg1[%c0_17, %c0_18, %c0_19] : memref<2x8x1xf32, #tpu.memory_space<vmem>>, vector<2x8x1xf32>
    %58 = vector.shape_cast %57 : vector<2x8x1xf32> to vector<16x1xf32>
    %c0_20 = arith.constant 0 : index
    %c0_21 = arith.constant 0 : index
    %59 = vector.load %arg6[%c0_20, %c0_21] : memref<64x256xf32, #tpu.memory_space<vmem>>, vector<64x256xf32>
    %cst_22 = arith.constant dense<0.000000e+00> : vector<16x256xf32>
    %60 = tpu.matmul %56, %59, %cst_22 {dimension_numbers = #tpu.dot_dimension_numbers<[1], [0], [0], [1], [0, 0, 1, 1], [], []>, precision = #tpu.contract_precision<fp32>} : vector<16x64xf32>, vector<64x256xf32>, vector<16x256xf32> -> vector<16x256xf32>
    %c0_23 = arith.constant 0 : index
    %c0_24 = arith.constant 0 : index
    %61 = vector.load %arg7[%c0_23, %c0_24] : memref<1x256xf32, #tpu.memory_space<vmem>>, vector<1x256xf32>
    %62 = vector.broadcast %58 : vector<16x1xf32> to vector<16x256xf32>
    %63 = vector.broadcast %61 : vector<1x256xf32> to vector<16x256xf32>
    %64 = arith.mulf %62, %63 : vector<16x256xf32>
    %65 = arith.addf %60, %64 : vector<16x256xf32>
    %c0_25 = arith.constant 0 : index
    %c0_26 = arith.constant 0 : index
    %66 = vector.load %arg8[%c0_25, %c0_26] : memref<1x256xf32, #tpu.memory_space<vmem>>, vector<1x256xf32>
    %67 = vector.broadcast %66 : vector<1x256xf32> to vector<16x256xf32>
    %68 = arith.addf %65, %67 : vector<16x256xf32>
    %69 = vector.extract_strided_slice %68 {offsets = [0, 0], sizes = [16, 128], strides = [1, 1]} : vector<16x256xf32> to vector<16x128xf32>
    %70 = vector.extract_strided_slice %68 {offsets = [0, 128], sizes = [16, 128], strides = [1, 1]} : vector<16x256xf32> to vector<16x128xf32>
    %71 = tpu.concatenate %69, %70 in 0 : vector<16x128xf32>, vector<16x128xf32> -> vector<32x128xf32>
    %c0_27 = arith.constant 0 : index
    %c0_28 = arith.constant 0 : index
    %72 = vector.load %arg9[%c0_27, %c0_28] : memref<16x32xf32, #tpu.memory_space<vmem>>, vector<16x32xf32>
    %cst_29 = arith.constant dense<0.000000e+00> : vector<16x128xf32>
    %73 = tpu.matmul %72, %71, %cst_29 {dimension_numbers = #tpu.dot_dimension_numbers<[1], [0], [0], [1], [0, 0, 1, 1], [], []>, precision = #tpu.contract_precision<fp32>} : vector<16x32xf32>, vector<32x128xf32>, vector<16x128xf32> -> vector<16x128xf32>
    %cst_30 = arith.constant 0.000000e+00 : f32
    %74 = vector.broadcast %cst_30 : f32 to vector<2x32xf32>
    %cst_31 = arith.constant 0.000000e+00 : f32
    %75 = vector.broadcast %cst_31 : f32 to vector<2x32xf32>
    %cst_32 = arith.constant dense<0.000000e+00> : vector<2x128xf32>
    %76 = tpu.matmul %74, %2, %cst_32 {dimension_numbers = #tpu.dot_dimension_numbers<[1], [0], [0], [1], [0, 0, 1, 1], [], []>, precision = #tpu.contract_precision<fp32>} : vector<2x32xf32>, vector<32x128xf32>, vector<2x128xf32> -> vector<2x128xf32>
    %77 = vector.extract_strided_slice %73 {offsets = [0, 0], sizes = [2, 128], strides = [1, 1]} : vector<16x128xf32> to vector<2x128xf32>
    %78 = arith.addf %76, %77 : vector<2x128xf32>
    %79 = arith.negf %78 : vector<2x128xf32>
    %80 = math.exp %79 : vector<2x128xf32>
    %cst_33 = arith.constant 1.000000e+00 : f32
    %81 = vector.broadcast %cst_33 : f32 to vector<2x128xf32>
    %82 = arith.addf %81, %80 : vector<2x128xf32>
    %83 = arith.divf %81, %82 : vector<2x128xf32>
    %84 = vector.extract_strided_slice %83 {offsets = [0, 0], sizes = [2, 32], strides = [1, 1]} : vector<2x128xf32> to vector<2x32xf32>
    %85 = vector.extract_strided_slice %83 {offsets = [0, 32], sizes = [2, 32], strides = [1, 1]} : vector<2x128xf32> to vector<2x32xf32>
    %86 = vector.extract_strided_slice %83 {offsets = [0, 64], sizes = [2, 32], strides = [1, 1]} : vector<2x128xf32> to vector<2x32xf32>
    %cst_34 = arith.constant 2.000000e+00 : f32
    %87 = vector.broadcast %cst_34 : f32 to vector<2x32xf32>
    %88 = arith.mulf %87, %86 : vector<2x32xf32>
    %cst_35 = arith.constant 1.000000e+00 : f32
    %89 = vector.broadcast %cst_35 : f32 to vector<2x32xf32>
    %90 = arith.subf %88, %89 : vector<2x32xf32>
    %91 = vector.extract_strided_slice %83 {offsets = [0, 96], sizes = [2, 32], strides = [1, 1]} : vector<2x128xf32> to vector<2x32xf32>
    %92 = arith.mulf %85, %75 : vector<2x32xf32>
    %93 = arith.mulf %84, %90 : vector<2x32xf32>
    %94 = arith.addf %92, %93 : vector<2x32xf32>
    %95 = math.tanh %94 : vector<2x32xf32>
    %96 = arith.mulf %91, %95 : vector<2x32xf32>
    %cst_36 = arith.constant dense<0.000000e+00> : vector<2x128xf32>
    %97 = tpu.matmul %96, %2, %cst_36 {dimension_numbers = #tpu.dot_dimension_numbers<[1], [0], [0], [1], [0, 0, 1, 1], [], []>, precision = #tpu.contract_precision<fp32>} : vector<2x32xf32>, vector<32x128xf32>, vector<2x128xf32> -> vector<2x128xf32>
    %98 = vector.extract_strided_slice %73 {offsets = [2, 0], sizes = [2, 128], strides = [1, 1]} : vector<16x128xf32> to vector<2x128xf32>
    %99 = arith.addf %97, %98 : vector<2x128xf32>
    %100 = arith.negf %99 : vector<2x128xf32>
    %101 = math.exp %100 : vector<2x128xf32>
    %cst_37 = arith.constant 1.000000e+00 : f32
    %102 = vector.broadcast %cst_37 : f32 to vector<2x128xf32>
    %103 = arith.addf %102, %101 : vector<2x128xf32>
    %104 = arith.divf %102, %103 : vector<2x128xf32>
    %105 = vector.extract_strided_slice %104 {offsets = [0, 0], sizes = [2, 32], strides = [1, 1]} : vector<2x128xf32> to vector<2x32xf32>
    %106 = vector.extract_strided_slice %104 {offsets = [0, 32], sizes = [2, 32], strides = [1, 1]} : vector<2x128xf32> to vector<2x32xf32>
    %107 = vector.extract_strided_slice %104 {offsets = [0, 64], sizes = [2, 32], strides = [1, 1]} : vector<2x128xf32> to vector<2x32xf32>
    %cst_38 = arith.constant 2.000000e+00 : f32
    %108 = vector.broadcast %cst_38 : f32 to vector<2x32xf32>
    %109 = arith.mulf %108, %107 : vector<2x32xf32>
    %cst_39 = arith.constant 1.000000e+00 : f32
    %110 = vector.broadcast %cst_39 : f32 to vector<2x32xf32>
    %111 = arith.subf %109, %110 : vector<2x32xf32>
    %112 = vector.extract_strided_slice %104 {offsets = [0, 96], sizes = [2, 32], strides = [1, 1]} : vector<2x128xf32> to vector<2x32xf32>
    %113 = arith.mulf %106, %94 : vector<2x32xf32>
    %114 = arith.mulf %105, %111 : vector<2x32xf32>
    %115 = arith.addf %113, %114 : vector<2x32xf32>
    %116 = math.tanh %115 : vector<2x32xf32>
    %117 = arith.mulf %112, %116 : vector<2x32xf32>
    %cst_40 = arith.constant dense<0.000000e+00> : vector<2x128xf32>
    %118 = tpu.matmul %117, %2, %cst_40 {dimension_numbers = #tpu.dot_dimension_numbers<[1], [0], [0], [1], [0, 0, 1, 1], [], []>, precision = #tpu.contract_precision<fp32>} : vector<2x32xf32>, vector<32x128xf32>, vector<2x128xf32> -> vector<2x128xf32>
    %119 = vector.extract_strided_slice %73 {offsets = [4, 0], sizes = [2, 128], strides = [1, 1]} : vector<16x128xf32> to vector<2x128xf32>
    %120 = arith.addf %118, %119 : vector<2x128xf32>
    %121 = arith.negf %120 : vector<2x128xf32>
    %122 = math.exp %121 : vector<2x128xf32>
    %cst_41 = arith.constant 1.000000e+00 : f32
    %123 = vector.broadcast %cst_41 : f32 to vector<2x128xf32>
    %124 = arith.addf %123, %122 : vector<2x128xf32>
    %125 = arith.divf %123, %124 : vector<2x128xf32>
    %126 = vector.extract_strided_slice %125 {offsets = [0, 0], sizes = [2, 32], strides = [1, 1]} : vector<2x128xf32> to vector<2x32xf32>
    %127 = vector.extract_strided_slice %125 {offsets = [0, 32], sizes = [2, 32], strides = [1, 1]} : vector<2x128xf32> to vector<2x32xf32>
    %128 = vector.extract_strided_slice %125 {offsets = [0, 64], sizes = [2, 32], strides = [1, 1]} : vector<2x128xf32> to vector<2x32xf32>
    %cst_42 = arith.constant 2.000000e+00 : f32
    %129 = vector.broadcast %cst_42 : f32 to vector<2x32xf32>
    %130 = arith.mulf %129, %128 : vector<2x32xf32>
    %cst_43 = arith.constant 1.000000e+00 : f32
    %131 = vector.broadcast %cst_43 : f32 to vector<2x32xf32>
    %132 = arith.subf %130, %131 : vector<2x32xf32>
    %133 = vector.extract_strided_slice %125 {offsets = [0, 96], sizes = [2, 32], strides = [1, 1]} : vector<2x128xf32> to vector<2x32xf32>
    %134 = arith.mulf %127, %115 : vector<2x32xf32>
    %135 = arith.mulf %126, %132 : vector<2x32xf32>
    %136 = arith.addf %134, %135 : vector<2x32xf32>
    %137 = math.tanh %136 : vector<2x32xf32>
    %138 = arith.mulf %133, %137 : vector<2x32xf32>
    %cst_44 = arith.constant dense<0.000000e+00> : vector<2x128xf32>
    %139 = tpu.matmul %138, %2, %cst_44 {dimension_numbers = #tpu.dot_dimension_numbers<[1], [0], [0], [1], [0, 0, 1, 1], [], []>, precision = #tpu.contract_precision<fp32>} : vector<2x32xf32>, vector<32x128xf32>, vector<2x128xf32> -> vector<2x128xf32>
    %140 = vector.extract_strided_slice %73 {offsets = [6, 0], sizes = [2, 128], strides = [1, 1]} : vector<16x128xf32> to vector<2x128xf32>
    %141 = arith.addf %139, %140 : vector<2x128xf32>
    %142 = arith.negf %141 : vector<2x128xf32>
    %143 = math.exp %142 : vector<2x128xf32>
    %cst_45 = arith.constant 1.000000e+00 : f32
    %144 = vector.broadcast %cst_45 : f32 to vector<2x128xf32>
    %145 = arith.addf %144, %143 : vector<2x128xf32>
    %146 = arith.divf %144, %145 : vector<2x128xf32>
    %147 = vector.extract_strided_slice %146 {offsets = [0, 0], sizes = [2, 32], strides = [1, 1]} : vector<2x128xf32> to vector<2x32xf32>
    %148 = vector.extract_strided_slice %146 {offsets = [0, 32], sizes = [2, 32], strides = [1, 1]} : vector<2x128xf32> to vector<2x32xf32>
    %149 = vector.extract_strided_slice %146 {offsets = [0, 64], sizes = [2, 32], strides = [1, 1]} : vector<2x128xf32> to vector<2x32xf32>
    %cst_46 = arith.constant 2.000000e+00 : f32
    %150 = vector.broadcast %cst_46 : f32 to vector<2x32xf32>
    %151 = arith.mulf %150, %149 : vector<2x32xf32>
    %cst_47 = arith.constant 1.000000e+00 : f32
    %152 = vector.broadcast %cst_47 : f32 to vector<2x32xf32>
    %153 = arith.subf %151, %152 : vector<2x32xf32>
    %154 = vector.extract_strided_slice %146 {offsets = [0, 96], sizes = [2, 32], strides = [1, 1]} : vector<2x128xf32> to vector<2x32xf32>
    %155 = arith.mulf %148, %136 : vector<2x32xf32>
    %156 = arith.mulf %147, %153 : vector<2x32xf32>
    %157 = arith.addf %155, %156 : vector<2x32xf32>
    %158 = math.tanh %157 : vector<2x32xf32>
    %159 = arith.mulf %154, %158 : vector<2x32xf32>
    %cst_48 = arith.constant dense<0.000000e+00> : vector<2x128xf32>
    %160 = tpu.matmul %159, %2, %cst_48 {dimension_numbers = #tpu.dot_dimension_numbers<[1], [0], [0], [1], [0, 0, 1, 1], [], []>, precision = #tpu.contract_precision<fp32>} : vector<2x32xf32>, vector<32x128xf32>, vector<2x128xf32> -> vector<2x128xf32>
    %161 = vector.extract_strided_slice %73 {offsets = [8, 0], sizes = [2, 128], strides = [1, 1]} : vector<16x128xf32> to vector<2x128xf32>
    %162 = arith.addf %160, %161 : vector<2x128xf32>
    %163 = arith.negf %162 : vector<2x128xf32>
    %164 = math.exp %163 : vector<2x128xf32>
    %cst_49 = arith.constant 1.000000e+00 : f32
    %165 = vector.broadcast %cst_49 : f32 to vector<2x128xf32>
    %166 = arith.addf %165, %164 : vector<2x128xf32>
    %167 = arith.divf %165, %166 : vector<2x128xf32>
    %168 = vector.extract_strided_slice %167 {offsets = [0, 0], sizes = [2, 32], strides = [1, 1]} : vector<2x128xf32> to vector<2x32xf32>
    %169 = vector.extract_strided_slice %167 {offsets = [0, 32], sizes = [2, 32], strides = [1, 1]} : vector<2x128xf32> to vector<2x32xf32>
    %170 = vector.extract_strided_slice %167 {offsets = [0, 64], sizes = [2, 32], strides = [1, 1]} : vector<2x128xf32> to vector<2x32xf32>
    %cst_50 = arith.constant 2.000000e+00 : f32
    %171 = vector.broadcast %cst_50 : f32 to vector<2x32xf32>
    %172 = arith.mulf %171, %170 : vector<2x32xf32>
    %cst_51 = arith.constant 1.000000e+00 : f32
    %173 = vector.broadcast %cst_51 : f32 to vector<2x32xf32>
    %174 = arith.subf %172, %173 : vector<2x32xf32>
    %175 = vector.extract_strided_slice %167 {offsets = [0, 96], sizes = [2, 32], strides = [1, 1]} : vector<2x128xf32> to vector<2x32xf32>
    %176 = arith.mulf %169, %157 : vector<2x32xf32>
    %177 = arith.mulf %168, %174 : vector<2x32xf32>
    %178 = arith.addf %176, %177 : vector<2x32xf32>
    %179 = math.tanh %178 : vector<2x32xf32>
    %180 = arith.mulf %175, %179 : vector<2x32xf32>
    %cst_52 = arith.constant dense<0.000000e+00> : vector<2x128xf32>
    %181 = tpu.matmul %180, %2, %cst_52 {dimension_numbers = #tpu.dot_dimension_numbers<[1], [0], [0], [1], [0, 0, 1, 1], [], []>, precision = #tpu.contract_precision<fp32>} : vector<2x32xf32>, vector<32x128xf32>, vector<2x128xf32> -> vector<2x128xf32>
    %182 = vector.extract_strided_slice %73 {offsets = [10, 0], sizes = [2, 128], strides = [1, 1]} : vector<16x128xf32> to vector<2x128xf32>
    %183 = arith.addf %181, %182 : vector<2x128xf32>
    %184 = arith.negf %183 : vector<2x128xf32>
    %185 = math.exp %184 : vector<2x128xf32>
    %cst_53 = arith.constant 1.000000e+00 : f32
    %186 = vector.broadcast %cst_53 : f32 to vector<2x128xf32>
    %187 = arith.addf %186, %185 : vector<2x128xf32>
    %188 = arith.divf %186, %187 : vector<2x128xf32>
    %189 = vector.extract_strided_slice %188 {offsets = [0, 0], sizes = [2, 32], strides = [1, 1]} : vector<2x128xf32> to vector<2x32xf32>
    %190 = vector.extract_strided_slice %188 {offsets = [0, 32], sizes = [2, 32], strides = [1, 1]} : vector<2x128xf32> to vector<2x32xf32>
    %191 = vector.extract_strided_slice %188 {offsets = [0, 64], sizes = [2, 32], strides = [1, 1]} : vector<2x128xf32> to vector<2x32xf32>
    %cst_54 = arith.constant 2.000000e+00 : f32
    %192 = vector.broadcast %cst_54 : f32 to vector<2x32xf32>
    %193 = arith.mulf %192, %191 : vector<2x32xf32>
    %cst_55 = arith.constant 1.000000e+00 : f32
    %194 = vector.broadcast %cst_55 : f32 to vector<2x32xf32>
    %195 = arith.subf %193, %194 : vector<2x32xf32>
    %196 = vector.extract_strided_slice %188 {offsets = [0, 96], sizes = [2, 32], strides = [1, 1]} : vector<2x128xf32> to vector<2x32xf32>
    %197 = arith.mulf %190, %178 : vector<2x32xf32>
    %198 = arith.mulf %189, %195 : vector<2x32xf32>
    %199 = arith.addf %197, %198 : vector<2x32xf32>
    %200 = math.tanh %199 : vector<2x32xf32>
    %201 = arith.mulf %196, %200 : vector<2x32xf32>
    %cst_56 = arith.constant dense<0.000000e+00> : vector<2x128xf32>
    %202 = tpu.matmul %201, %2, %cst_56 {dimension_numbers = #tpu.dot_dimension_numbers<[1], [0], [0], [1], [0, 0, 1, 1], [], []>, precision = #tpu.contract_precision<fp32>} : vector<2x32xf32>, vector<32x128xf32>, vector<2x128xf32> -> vector<2x128xf32>
    %203 = vector.extract_strided_slice %73 {offsets = [12, 0], sizes = [2, 128], strides = [1, 1]} : vector<16x128xf32> to vector<2x128xf32>
    %204 = arith.addf %202, %203 : vector<2x128xf32>
    %205 = arith.negf %204 : vector<2x128xf32>
    %206 = math.exp %205 : vector<2x128xf32>
    %cst_57 = arith.constant 1.000000e+00 : f32
    %207 = vector.broadcast %cst_57 : f32 to vector<2x128xf32>
    %208 = arith.addf %207, %206 : vector<2x128xf32>
    %209 = arith.divf %207, %208 : vector<2x128xf32>
    %210 = vector.extract_strided_slice %209 {offsets = [0, 0], sizes = [2, 32], strides = [1, 1]} : vector<2x128xf32> to vector<2x32xf32>
    %211 = vector.extract_strided_slice %209 {offsets = [0, 32], sizes = [2, 32], strides = [1, 1]} : vector<2x128xf32> to vector<2x32xf32>
    %212 = vector.extract_strided_slice %209 {offsets = [0, 64], sizes = [2, 32], strides = [1, 1]} : vector<2x128xf32> to vector<2x32xf32>
    %cst_58 = arith.constant 2.000000e+00 : f32
    %213 = vector.broadcast %cst_58 : f32 to vector<2x32xf32>
    %214 = arith.mulf %213, %212 : vector<2x32xf32>
    %cst_59 = arith.constant 1.000000e+00 : f32
    %215 = vector.broadcast %cst_59 : f32 to vector<2x32xf32>
    %216 = arith.subf %214, %215 : vector<2x32xf32>
    %217 = vector.extract_strided_slice %209 {offsets = [0, 96], sizes = [2, 32], strides = [1, 1]} : vector<2x128xf32> to vector<2x32xf32>
    %218 = arith.mulf %211, %199 : vector<2x32xf32>
    %219 = arith.mulf %210, %216 : vector<2x32xf32>
    %220 = arith.addf %218, %219 : vector<2x32xf32>
    %221 = math.tanh %220 : vector<2x32xf32>
    %222 = arith.mulf %217, %221 : vector<2x32xf32>
    %cst_60 = arith.constant dense<0.000000e+00> : vector<2x128xf32>
    %223 = tpu.matmul %222, %2, %cst_60 {dimension_numbers = #tpu.dot_dimension_numbers<[1], [0], [0], [1], [0, 0, 1, 1], [], []>, precision = #tpu.contract_precision<fp32>} : vector<2x32xf32>, vector<32x128xf32>, vector<2x128xf32> -> vector<2x128xf32>
    %224 = vector.extract_strided_slice %73 {offsets = [14, 0], sizes = [2, 128], strides = [1, 1]} : vector<16x128xf32> to vector<2x128xf32>
    %225 = arith.addf %223, %224 : vector<2x128xf32>
    %226 = arith.negf %225 : vector<2x128xf32>
    %227 = math.exp %226 : vector<2x128xf32>
    %cst_61 = arith.constant 1.000000e+00 : f32
    %228 = vector.broadcast %cst_61 : f32 to vector<2x128xf32>
    %229 = arith.addf %228, %227 : vector<2x128xf32>
    %230 = arith.divf %228, %229 : vector<2x128xf32>
    %231 = vector.extract_strided_slice %230 {offsets = [0, 0], sizes = [2, 32], strides = [1, 1]} : vector<2x128xf32> to vector<2x32xf32>
    %232 = vector.extract_strided_slice %230 {offsets = [0, 32], sizes = [2, 32], strides = [1, 1]} : vector<2x128xf32> to vector<2x32xf32>
    %233 = vector.extract_strided_slice %230 {offsets = [0, 64], sizes = [2, 32], strides = [1, 1]} : vector<2x128xf32> to vector<2x32xf32>
    %cst_62 = arith.constant 2.000000e+00 : f32
    %234 = vector.broadcast %cst_62 : f32 to vector<2x32xf32>
    %235 = arith.mulf %234, %233 : vector<2x32xf32>
    %cst_63 = arith.constant 1.000000e+00 : f32
    %236 = vector.broadcast %cst_63 : f32 to vector<2x32xf32>
    %237 = arith.subf %235, %236 : vector<2x32xf32>
    %238 = vector.extract_strided_slice %230 {offsets = [0, 96], sizes = [2, 32], strides = [1, 1]} : vector<2x128xf32> to vector<2x32xf32>
    %239 = arith.mulf %232, %220 : vector<2x32xf32>
    %240 = arith.mulf %231, %237 : vector<2x32xf32>
    %241 = arith.addf %239, %240 : vector<2x32xf32>
    %242 = math.tanh %241 : vector<2x32xf32>
    %243 = arith.mulf %238, %242 : vector<2x32xf32>
    %244 = tpu.concatenate %96, %117, %138, %159, %180, %201, %222, %243 in 0 : vector<2x32xf32>, vector<2x32xf32>, vector<2x32xf32>, vector<2x32xf32>, vector<2x32xf32>, vector<2x32xf32>, vector<2x32xf32>, vector<2x32xf32> -> vector<16x32xf32>
    %245 = tpu.concatenate %243, %222, %201, %180, %159, %138, %117, %96 in 0 : vector<2x32xf32>, vector<2x32xf32>, vector<2x32xf32>, vector<2x32xf32>, vector<2x32xf32>, vector<2x32xf32>, vector<2x32xf32>, vector<2x32xf32> -> vector<16x32xf32>
    %c0_64 = arith.constant 0 : index
    %c0_65 = arith.constant 0 : index
    %246 = vector.load %arg11[%c0_64, %c0_65] : memref<32x2xf32, #tpu.memory_space<vmem>>, vector<32x2xf32>
    %cst_66 = arith.constant dense<0.000000e+00> : vector<16x2xf32>
    %247 = tpu.matmul %244, %246, %cst_66 {dimension_numbers = #tpu.dot_dimension_numbers<[1], [0], [0], [1], [0, 0, 1, 1], [], []>, precision = #tpu.contract_precision<fp32>} : vector<16x32xf32>, vector<32x2xf32>, vector<16x2xf32> -> vector<16x2xf32>
    %c0_67 = arith.constant 0 : index
    %c0_68 = arith.constant 0 : index
    %248 = vector.load %arg12[%c0_67, %c0_68] : memref<32x2xf32, #tpu.memory_space<vmem>>, vector<32x2xf32>
    %cst_69 = arith.constant dense<0.000000e+00> : vector<16x2xf32>
    %249 = tpu.matmul %245, %248, %cst_69 {dimension_numbers = #tpu.dot_dimension_numbers<[1], [0], [0], [1], [0, 0, 1, 1], [], []>, precision = #tpu.contract_precision<fp32>} : vector<16x32xf32>, vector<32x2xf32>, vector<16x2xf32> -> vector<16x2xf32>
    %250 = arith.addf %247, %249 : vector<16x2xf32>
    %c0_70 = arith.constant 0 : index
    %c0_71 = arith.constant 0 : index
    %251 = vector.load %arg13[%c0_70, %c0_71] : memref<1x2xf32, #tpu.memory_space<vmem>>, vector<1x2xf32>
    %252 = vector.broadcast %251 : vector<1x2xf32> to vector<16x2xf32>
    %253 = arith.addf %250, %252 : vector<16x2xf32>
    %254 = arith.negf %253 : vector<16x2xf32>
    %255 = math.exp %254 : vector<16x2xf32>
    %cst_72 = arith.constant 1.000000e+00 : f32
    %256 = vector.broadcast %cst_72 : f32 to vector<16x2xf32>
    %257 = arith.addf %256, %255 : vector<16x2xf32>
    %258 = arith.divf %256, %257 : vector<16x2xf32>
    %259 = vector.shape_cast %258 : vector<16x2xf32> to vector<8x2x2xf32>
    %c0_73 = arith.constant 0 : index
    %c0_74 = arith.constant 0 : index
    %c0_75 = arith.constant 0 : index
    %260 = vector.load %arg14[%c0_73, %c0_74, %c0_75] : memref<8x2x2xf32, #tpu.memory_space<vmem>>, vector<8x2x2xf32>
    tpu.vector_store %arg14[%c0_73, %c0_74, %c0_75], %259 {strides = array<i32>} : memref<8x2x2xf32, #tpu.memory_space<vmem>>, vector<8x2x2xf32>,
    return
  }
}

</mosaic_0001>

<bundles_post_ra>
// kernel: forward.1
= control target key start
LH: loop header
LB: loop body
LE: loop exit
PB: predicated region body
PF: predicated region fallthrough
CT: control target
= control target key end

     0   :  { %19 = vsyncpa [#allocation3], 0  ;;  %s12186_s0 = inlined_call_operand.vmem [shape: f32[2,8,32], index: 0, kind: input, shape index: {}]   ;;  %s12187_s1 = inlined_call_operand.vmem [shape: f32[2,8,1], index: 1, kind: input, shape index: {}]   ;;  %s12188_s2 = inlined_call_operand.vmem [shape: f32[32,4], index: 2, kind: input, shape index: {}]   ;;  %s12189_s3 = inlined_call_operand.hbm [shape: f32[4,32], index: 3, kind: input, shape index: {}]   ;;  %s12190_s4 = inlined_call_operand.hbm [shape: f32[32,96], index: 4, kind: input, shape index: {}]   ;;  %s12191_s5 = inlined_call_operand.hbm [shape: f32[1,96], index: 5, kind: input, shape index: {}]   ;;  %s12192_s6 = inlined_call_operand.vmem [shape: f32[64,256], index: 6, kind: input, shape index: {}]   ;;  %s12193_s7 = inlined_call_operand.hbm [shape: f32[1,256], index: 7, kind: input, shape index: {}]   ;;  %s12194_s8 = inlined_call_operand.hbm [shape: f32[1,256], index: 8, kind: input, shape index: {}]   ;;  %s12195_s9 = inlined_call_operand.hbm [shape: f32[16,32], index: 9, kind: input, shape index: {}]   ;;  %s12196_s10 = inlined_call_operand.hbm [shape: f32[32,128], index: 10, kind: input, shape index: {}]   ;;  %s12197_s11 = inlined_call_operand.vmem [shape: f32[32,2], index: 11, kind: input, shape index: {}]   ;;  %s12198_s12 = inlined_call_operand.vmem [shape: f32[32,2], index: 12, kind: input, shape index: {}]   ;;  %s12199_s13 = inlined_call_operand.vmem [shape: f32[1,2], index: 13, kind: input, shape index: {}]   ;;  %s12200_s14 = inlined_call_operand.vmem [shape: f32[8,2,2], index: 14, kind: output, shape index: {}]  }
   0x1   :  { %20 = vsyncpa [#allocation5], 0 }
   0x2   :  { %21 = vsyncpa [#allocation8], 0 }
   0x3   :  { %22 = vsyncpa [#allocation11], 0  ;;  %s11068_s29 = smov [#allocation4]   ;;  %s10906_s17 = scalar_lea.hbm %s12190_s4, 512 }
   0x4   :  { %s44_s30 = sshll.u32 %s11068_s29, 4  ;;  %p10907_p0 = scmp.ne.s32.totalorder %s12190_s4, %s10906_s17  ;;  %s45_s30 = int_to_ptr.vmem [resolvable:$true] %s44_s30 }
   0x5   :  { %p10910_p1 = scmp.lt.u32.totalorder %s10906_s17, %s12190_s4 }
   0x7   :  { %p10912_p2 = pnand %p10910_p1, %p10907_p0 }
   0x9   :  { %10915 = shalt.err (!%p10912_p2)
}
   0xa   :  { %s10916_s22 = scalar_lea.vmem %s45_s30, 512  ;;  %p10921_p4 = scmp.lt.s32.totalorder %s45_s30, %s45_s30 }
   0xb   :  { %p10917_p3 = scmp.ne.s32.totalorder %s45_s30, %s10916_s22  ;;  %p10922_p5 = scmp.lt.s32.totalorder %s10916_s22, %s10916_s22 }
   0xd   :  { %p10923_p6 = por %p10922_p5, %p10921_p4 }
   0xf   :  { %p10924_p7 = pnand %p10923_p6, %p10917_p3 }
  0x11   :  { %10927 = shalt.err (!%p10924_p7)
}
  0x12   :  { %s11069_s23 = smov 128   ;;  %s11070_s24 = smov 8  }
  0x13   :  { %50 = dma.hbm_to_vmem [thread:$0]  %s12190_s4, 512, %s45_s30, [#allocation5], %s11069_s23, %s11069_s23, %s11070_s24  }
  0x14   :  { %s11071_s27 = smov [#allocation7]   ;;  %s11072_s29 = smov [#allocation10]  }
  0x15   :  { %s69_s28 = sshll.u32 %s11071_s27, 4  ;;  %s88_s15 = sshll.u32 %s11072_s29, 4  ;;  %s70_s28 = int_to_ptr.vmem [resolvable:$true] %s69_s28  ;;  %s89_s15 = int_to_ptr.vmem [resolvable:$true] %s88_s15 }
  0x16   :  { %s10928_s18 = scalar_lea.hbm %s12193_s7, 32 }
  0x17   :  { %p10929_p8 = scmp.ne.s32.totalorder %s12193_s7, %s10928_s18  ;;  %p10932_p9 = scmp.lt.u32.totalorder %s10928_s18, %s12193_s7 }
  0x19   :  { %p10934_p10 = pnand %p10932_p9, %p10929_p8 }
  0x1b   :  { %10937 = shalt.err (!%p10934_p10)
}
  0x1c   :  { %s10938_s4 = scalar_lea.vmem %s70_s28, 32  ;;  %p10943_p12 = scmp.lt.s32.totalorder %s70_s28, %s70_s28 }
  0x1d   :  { %p10939_p11 = scmp.ne.s32.totalorder %s70_s28, %s10938_s4  ;;  %p10944_p13 = scmp.lt.s32.totalorder %s10938_s4, %s10938_s4 }
  0x1f   :  { %p10945_p0 = por %p10944_p13, %p10943_p12 }
  0x21   :  { %p10946_p1 = pnand %p10945_p0, %p10939_p11 }
  0x23   :  { %10949 = shalt.err (!%p10946_p1)
}
  0x24   :  { %72 = dma.hbm_to_vmem [thread:$0]  %s12193_s7, 32, %s70_s28, [#allocation8]  }
  0x25   :  { %s10950_s29 = scalar_lea.hbm %s12195_s9, 256 }
  0x26   :  { %p10951_p2 = scmp.ne.s32.totalorder %s12195_s9, %s10950_s29  ;;  %p10954_p3 = scmp.lt.u32.totalorder %s10950_s29, %s12195_s9 }
  0x28   :  { %p10956_p4 = pnand %p10954_p3, %p10951_p2 }
  0x2a   :  { %10959 = shalt.err (!%p10956_p4)
}
  0x2b   :  { %s10960_s20 = scalar_lea.vmem %s89_s15, 256  ;;  %p10965_p6 = scmp.lt.s32.totalorder %s89_s15, %s89_s15 }
  0x2c   :  { %p10961_p5 = scmp.ne.s32.totalorder %s89_s15, %s10960_s20  ;;  %p10966_p7 = scmp.lt.s32.totalorder %s10960_s20, %s10960_s20 }
  0x2e   :  { %p10967_p8 = por %p10966_p7, %p10965_p6 }
  0x30   :  { %p10968_p9 = pnand %p10967_p8, %p10961_p5 }
  0x32   :  { %10971 = shalt.err (!%p10968_p9)
}
  0x33   :  { %94 = dma.hbm_to_vmem [thread:$0]  %s12195_s9, 256, %s89_s15, [#allocation11], %s11069_s23, %s11069_s23, %s11070_s24  }
  0x34   :  { %s11073_s21 = smov [#allocation2]   ;;  %s11074_s4 = smov [#allocation6]  }
  0x35   :  { %s35_s22 = sshll.u32 %s11073_s21, 4  ;;  %s57_s30 = sshll.u32 %s11074_s4, 4  ;;  %s36_s22 = int_to_ptr.vmem [resolvable:$true] %s35_s22  ;;  %s58_s30 = int_to_ptr.vmem [resolvable:$true] %s57_s30 }
  0x36   :  { %s10972_s27 = scalar_lea.hbm %s12189_s3, 64 }
  0x37   :  { %p10973_p10 = scmp.ne.s32.totalorder %s12189_s3, %s10972_s27  ;;  %p10976_p11 = scmp.lt.u32.totalorder %s10972_s27, %s12189_s3 }
  0x39   :  { %p10978_p12 = pnand %p10976_p11, %p10973_p10 }
  0x3b   :  { %10981 = shalt.err (!%p10978_p12)
}
  0x3c   :  { %s10982_s9 = scalar_lea.vmem %s36_s22, 64  ;;  %p10987_p0 = scmp.lt.s32.totalorder %s36_s22, %s36_s22 }
  0x3d   :  { %p10983_p13 = scmp.ne.s32.totalorder %s36_s22, %s10982_s9  ;;  %p10988_p1 = scmp.lt.s32.totalorder %s10982_s9, %s10982_s9 }
  0x3f   :  { %p10989_p2 = por %p10988_p1, %p10987_p0 }
  0x41   :  { %p10990_p3 = pnand %p10989_p2, %p10983_p13 }
  0x43   :  { %10993 = shalt.err (!%p10990_p3)
}
  0x44   :  { %38 = dma.hbm_to_vmem [thread:$0]  %s12189_s3, 64, %s36_s22, [#allocation3]  }
  0x45   :  { %s10994_s28 = scalar_lea.hbm %s12191_s5, 16 }
  0x46   :  { %p10995_p4 = scmp.ne.s32.totalorder %s12191_s5, %s10994_s28  ;;  %p10998_p5 = scmp.lt.u32.totalorder %s10994_s28, %s12191_s5 }
  0x48   :  { %p11000_p6 = pnand %p10998_p5, %p10995_p4 }
  0x4a   :  { %11003 = shalt.err (!%p11000_p6)
}
  0x4b   :  { %s11004_s27 = scalar_lea.vmem %s58_s30, 16  ;;  %s11008_s29 = scalar_lea.vmem %s58_s30, 32 }
  0x4c   :  { %p11005_p7 = scmp.ne.s32.totalorder %s58_s30, %s11004_s27  ;;  %p11009_p8 = scmp.lt.s32.totalorder %s58_s30, %s58_s30 }
  0x4d   :  { %p11010_p9 = scmp.lt.s32.totalorder %s11008_s29, %s11004_s27 }
  0x4f   :  { %p11011_p10 = por %p11010_p9, %p11009_p8 }
  0x51   :  { %p11012_p11 = pnand %p11011_p10, %p11005_p7 }
  0x53   :  { %11015 = shalt.err (!%p11012_p11)
}
  0x54   :  { %60 = dma.hbm_to_vmem [thread:$0]  %s12191_s5, 16, %s58_s30, [#allocation5]  }
  0x55   :  { %s11075_s16 = smov [#allocation9]   ;;  %s11076_s18 = smov [#allocation12]  }
  0x56   :  { %s79_s17 = sshll.u32 %s11075_s16, 4  ;;  %s100_s9 = sshll.u32 %s11076_s18, 4  ;;  %s80_s17 = int_to_ptr.vmem [resolvable:$true] %s79_s17  ;;  %s101_s9 = int_to_ptr.vmem [resolvable:$true] %s100_s9 }
  0x57   :  { %s11016_s20 = scalar_lea.hbm %s12194_s8, 32 }
  0x58   :  { %p11017_p12 = scmp.ne.s32.totalorder %s12194_s8, %s11016_s20  ;;  %p11020_p13 = scmp.lt.u32.totalorder %s11016_s20, %s12194_s8 }
  0x5a   :  { %p11022_p0 = pnand %p11020_p13, %p11017_p12 }
  0x5c   :  { %11025 = shalt.err (!%p11022_p0)
}
  0x5d   :  { %s11026_s5 = scalar_lea.vmem %s80_s17, 32  ;;  %p11031_p2 = scmp.lt.s32.totalorder %s80_s17, %s80_s17 }
  0x5e   :  { %p11027_p1 = scmp.ne.s32.totalorder %s80_s17, %s11026_s5  ;;  %p11032_p3 = scmp.lt.s32.totalorder %s11026_s5, %s11026_s5 }
  0x60   :  { %p11033_p4 = por %p11032_p3, %p11031_p2 }
  0x62   :  { %p11034_p5 = pnand %p11033_p4, %p11027_p1 }
  0x64   :  { %11037 = shalt.err (!%p11034_p5)
}
  0x65   :  { %82 = dma.hbm_to_vmem [thread:$0]  %s12194_s8, 32, %s80_s17, [#allocation8]  }
  0x66   :  { %s11038_s29 = scalar_lea.hbm %s12196_s10, 512 }
  0x67   :  { %p11039_p6 = scmp.ne.s32.totalorder %s12196_s10, %s11038_s29  ;;  %p11042_p7 = scmp.lt.u32.totalorder %s11038_s29, %s12196_s10 }
  0x69   :  { %p11044_p8 = pnand %p11042_p7, %p11039_p6 }
  0x6b   :  { %11047 = shalt.err (!%p11044_p8)
}
  0x6c   :  { %s11048_s15 = scalar_lea.vmem %s101_s9, 512  ;;  %p11053_p10 = scmp.lt.s32.totalorder %s101_s9, %s101_s9 }
  0x6d   :  { %p11049_p9 = scmp.ne.s32.totalorder %s101_s9, %s11048_s15  ;;  %p11054_p11 = scmp.lt.s32.totalorder %s11048_s15, %s11048_s15 }
  0x6f   :  { %p11055_p12 = por %p11054_p11, %p11053_p10 }
  0x71   :  { %p11056_p13 = pnand %p11055_p12, %p11049_p9 }
  0x73   :  { %11059 = shalt.err (!%p11056_p13)
}
  0x74   :  { %106 = dma.hbm_to_vmem [thread:$0]  %s12196_s10, 512, %s101_s9, [#allocation11], %s11069_s23, %s11069_s23, %s11070_s24  }
  0x75   :  { %11060 = dma.done.wait [#allocation3], 64  }
  0x76   :  { %11061 = vsyncadd [#allocation3], 4294967232 }
  0x77   :  { %11062 = dma.done.wait [#allocation5], 528  }
  0x78   :  { %11063 = vsyncadd [#allocation5], 4294966768 }
  0x79   :  { %11064 = dma.done.wait [#allocation8], 64  }
  0x7a   :  { %11065 = vsyncadd [#allocation8], 4294967232 }
  0x7b   :  { %11066 = dma.done.wait [#allocation11], 768  }
  0x7c   :  { %11067 = vsyncadd [#allocation11], 4294966528  ;;  %vm156_vm0 = vcmask 261120   ;;  %v145_v0 = vld [vmem:[#allocation4] sm:$0xff]  ;;  %v146_v1 = vld [vmem:[#allocation4 + $0x8] sm:$0xff]  ;;  %s11077_s30 = smov 64  }
  0x7d   :  { %v147_v2 = vld [vmem:[#allocation4 + $0x10] sm:$0xff]  ;;  %v164_v3 = vand.u32 4294901760, %v145_v0  ;;  %v167_v4 = vand.u32 4294901760, %v146_v1  ;;  %v148_v5 = vld [vmem:[#allocation4 + $0x18] sm:$0xff]  ;;  %v11261_v8 = vld [vmem:[%s12186_s0 + $0x8] sm:$0xff]  ;;  %vm1358_vm1 = vcmask 1043456  }
  0x7e   :  { %v170_v6 = vand.u32 4294901760, %v147_v2  ;;  %v11256_v7 = vld [vmem:[%s12186_s0] sm:$0xff]  ;;  %v173_v9 = vand.u32 4294901760, %v148_v5  ;;  %v161_v11 = vsel %vm156_vm0, %v11261_v8, 0  ;;  %v135_v47 = vld [vmem:[%s12188_s2 + $0x8] sm:$0xff]  ;;  %v136_v54 = vld [vmem:[%s12188_s2 + $0x10] sm:$0xff] }
  0x7f   :  { %v158_v10 = vsel %vm156_vm0, %v11256_v7, 0  ;;  %v11267_v12 = vpack.c.bf16 %v167_v4, %v164_v3  ;;  %v11271_v14 = vand.u32 4294901760, %v161_v11  ;;  %v254_v15 = vsub.f32 %v145_v0, %v164_v3  ;;  %v134_v46 = vld [vmem:[%s12188_s2] sm:$0xff]  ;;  %v137_v55 = vld [vmem:[%s12188_s2 + $0x18] sm:$0xff]  ;;  %s11078_s2 = smov 96  }
  0x80   :  { %v11269_v13 = vand.u32 4294901760, %v158_v10  ;;  %v11273_v16 = vpack.c.bf16 %v173_v9, %v170_v6  ;;  %v261_v17 = vsub.f32 %v146_v1, %v167_v4  ;;  %v268_v18 = vsub.f32 %v147_v2, %v170_v6  ;;  %v8595_v53 = vld [vmem:[#allocation6] ss:$0 sm:$0xff] }
  0x81   :  { %v275_v19 = vsub.f32 %v148_v5, %v173_v9  ;;  %10004 = vmatprep.subr.bf16.mxu1 %v11267_v12  ;;  %v243_v21 = vsub.f32 %v161_v11, %v11271_v14  ;;  %v255_v22 = vand.u32 4294901760, %v254_v15  ;;  %v716_v48 = vand.u32 4294901760, %v134_v46 }
  0x82   :  { %v233_v20 = vsub.f32 %v158_v10, %v11269_v13  ;;  %10006 = vmatpush3.bf16.msra.mxu1 %v11267_v12  ;;  %v262_v23 = vand.u32 4294901760, %v261_v17  ;;  %v269_v24 = vand.u32 4294901760, %v268_v18  ;;  %v10019_v42 = vpack.c.bf16 %v261_v17, %v254_v15 }
  0x83   :  { %v276_v25 = vand.u32 4294901760, %v275_v19  ;;  %10008 = vmatprep.subr.bf16.mxu1 %v11273_v16  ;;  %v244_v27 = vand.u32 4294901760, %v243_v21  ;;  %v256_v28 = vsub.f32 %v254_v15, %v255_v22  ;;  %v10023_v43 = vpack.c.bf16 %v275_v19, %v268_v18 }
  0x84   :  { %v234_v26 = vand.u32 4294901760, %v233_v20  ;;  %v263_v29 = vsub.f32 %v261_v17, %v262_v23  ;;  %v270_v30 = vsub.f32 %v268_v18, %v269_v24  ;;  %v10035_v44 = vpack.c.bf16 %v262_v23, %v255_v22 }
  0x85   :  { %v277_v31 = vsub.f32 %v275_v19, %v276_v25  ;;  %v245_v33 = vsub.f32 %v243_v21, %v244_v27  ;;  %v257_v34 = vand.u32 4294901760, %v256_v28  ;;  %v10039_v45 = vpack.c.bf16 %v276_v25, %v269_v24 }
  0x86   :  { %v235_v32 = vsub.f32 %v233_v20, %v234_v26  ;;  %10010 = vmatpush3.bf16.msra.mxu1 %v11273_v16  ;;  %v264_v35 = vand.u32 4294901760, %v263_v29  ;;  %v271_v36 = vand.u32 4294901760, %v270_v30  ;;  %v719_v49 = vand.u32 4294901760, %v135_v47 }
  0x87   :  { %v278_v37 = vand.u32 4294901760, %v277_v31  ;;  %v246_v39 = vand.u32 4294901760, %v245_v33  ;;  %v826_v51 = vsub.f32 %v134_v46, %v716_v48  ;;  %v722_v57 = vand.u32 4294901760, %v136_v54 }
  0x88   :  { %v236_v38 = vand.u32 4294901760, %v235_v32  ;;  %v10011_v40 = vpack.c.bf16 %v264_v35, %v257_v34  ;;  %v11301_v50 = vpack.c.bf16 %v719_v49, %v716_v48  ;;  %v833_v52 = vsub.f32 %v135_v47, %v719_v49 }
  0x89   :  { %v10015_v41 = vpack.c.bf16 %v278_v37, %v271_v36  ;;  %v725_v58 = vand.u32 4294901760, %v137_v55  ;;  %v827_v59 = vand.u32 4294901760, %v826_v51  ;;  %v840_v2 = vsub.f32 %v136_v54, %v722_v57 }
  0x8a   :  { %9087 = vmatprep.mubr.f32.mxu1 %v236_v38  ;;  %10012 = vmatprep.subr.bf16.mxu1 %v10011_v40  ;;  %v834_v60 = vand.u32 4294901760, %v833_v52  ;;  %v10067_v17 = vpack.c.bf16 %v833_v52, %v826_v51  ;;  %vm1345_vm2 = vcmask 31744   ;;  %vm2003_vm3 = vcmask 523264  }
  0x8b   :  { %9088 = vmatmul.mubr.f32.vlgmr.msra.gmra.mrb[0].mxu1 %v246_v39  ;;  %v11311_v63 = vpack.c.bf16 %v725_v58, %v722_v57  ;;  %v828_v0 = vsub.f32 %v826_v51, %v827_v59  ;;  %v847_v3 = vsub.f32 %v137_v55, %v725_v58  ;;  %v841_v6 = vand.u32 4294901760, %v840_v2 }
  0x8c   :  { %10014 = vmatpush3.bf16.msra.mxu1 %v10011_v40  ;;  %9098 = vmatprep.mubr.f32.mxu1 %v11269_v13  ;;  %v835_v1 = vsub.f32 %v833_v52, %v834_v60  ;;  %v10083_v19 = vpack.c.bf16 %v834_v60, %v827_v59  ;;  %v138_v52 = vld [vmem:[#allocation2] sm:$0xf]  ;;  %vm11083_vm4 = vmmov 0   ;;  %vm7403_vm5 = vcmask 1041408  }
  0x8d   :  { %10016 = vmatprep.subr.bf16.mxu1 %v10015_v41  ;;  %v829_v4 = vand.u32 4294901760, %v828_v0  ;;  %v848_v9 = vand.u32 4294901760, %v847_v3  ;;  %v10071_v18 = vpack.c.bf16 %v847_v3, %v840_v2  ;;  %vm7406_vm6 = vcmask 1045504  }
  0x8e   :  { %v836_v5 = vand.u32 4294901760, %v835_v1  ;;  %vm8578_vm7 = vcmask 9216  }
  0x90   :  { %10018 = vmatpush3.bf16.msra.mxu1 %v10015_v41  ;;  %v10059_v11 = vpack.c.bf16 %v836_v5, %v829_v4 }
  0x91   :  { %10020 = vmatprep.subr.bf16.mxu1 %v10019_v42 }
  0x93   :  { %9099 = vmatmul.mubr.f32.vlgmr.msra.gmra.mrb[0].mxu1 %v11271_v14 }
  0x94   :  { %10022 = vmatpush3.bf16.msra.mxu1 %v10019_v42  ;;  %9109 = vmatprep.mubr.f32.mxu1 %v233_v20  ;;  %v10087_v20 = vpack.c.bf16 %v848_v9, %v841_v6 }
  0x95   :  { %10024 = vmatprep.subr.bf16.mxu1 %v10023_v43 }
  0x98   :  { %10026 = vmatpush3.bf16.msra.mxu1 %v10023_v43 }
  0x99   :  { %10028 = vmatprep.subr.bf16.mxu1 %v11267_v12 }
  0x9b   :  { %9110 = vmatmul.mubr.f32.vlgmr.msra.gmra.mrb[0].mxu1 %v243_v21 }
  0x9c   :  { %10030 = vmatpush3.bf16.msra.mxu1 %v11267_v12  ;;  %9120 = vmatprep.mubr.f32.mxu1 %v234_v26 }
  0x9d   :  { %10032 = vmatprep.subr.bf16.mxu1 %v11273_v16 }
  0xa0   :  { %10034 = vmatpush3.bf16.msra.mxu1 %v11273_v16 }
  0xa1   :  { %10036 = vmatprep.subr.bf16.mxu1 %v10035_v44 }
  0xa3   :  { %9121 = vmatmul.mubr.f32.vlgmr.msra.gmra.mrb[0].mxu1 %v244_v27 }
  0xa4   :  { %10038 = vmatpush3.bf16.msra.mxu1 %v10035_v44  ;;  %9131 = vmatprep.mubr.f32.mxu1 %v11269_v13 }
  0xa5   :  { %10040 = vmatprep.subr.bf16.mxu1 %v10039_v45 }
  0xa8   :  { %10042 = vmatpush3.bf16.msra.mxu1 %v10039_v45 }
  0xa9   :  { %10044 = vmatprep.subr.bf16.mxu1 %v11267_v12 }
  0xab   :  { %9132 = vmatmul.mubr.f32.vlgmr.msra.gmra.mrb[0].mxu1 %v11271_v14 }
  0xac   :  { %10046 = vmatpush3.bf16.msra.mxu1 %v11267_v12  ;;  %9142 = vmatprep.mubr.f32.mxu1 %v11269_v13  ;;  %v842_v12 = vsub.f32 %v840_v2, %v841_v6  ;;  %v849_v13 = vsub.f32 %v847_v3, %v848_v9 }
  0xad   :  { %10048 = vmatprep.subr.bf16.mxu1 %v11273_v16 }
  0xae   :  { %v850_v15 = vand.u32 4294901760, %v849_v13 }
  0xb0   :  { %10050 = vmatpush3.bf16.msra.mxu1 %v11273_v16 }
  0xb1   :  { %10052 = vmatprep.subr.bf16.mxu1 %v11301_v50 }
  0xb3   :  { %9143 = vmatmul.mubr.f32.vlgmr.msra.gmra.mrb[0].mxu1 %v11271_v14  ;;  %v843_v14 = vand.u32 4294901760, %v842_v12 }
  0xb4   :  { %10054 = vmatpush3.bf16.msra.mxu1 %v11301_v50 }
  0xb5   :  { %10056 = vmatprep.subr.bf16.mxu1 %v11311_v63  ;;  %v10063_v16 = vpack.c.bf16 %v850_v15, %v843_v14 }
  0xb8   :  { %10058 = vmatpush3.bf16.msra.mxu1 %v11311_v63 }
  0xb9   :  { %10060 = vmatprep.subr.bf16.mxu1 %v10059_v11 }
 0x186   :  { %v9144_v56 = vpop.f32.mrb[0].mxu1 }
 0x187   :  { %v681_v61 = vpop.f32.mrb[1].mxu1  ;;  %v10627_v10 = vadd.f32 %v9144_v56, %v8595_v53 }
 0x188   :  { %v10628_v62 = vadd.f32 %v8595_v53, %v681_v61  ;;  %v1360_v53 = vsel %vm1358_vm1, %v138_v52, 0 }
 0x189   :  { %v11342_v54 = vand.u32 4294901760, %v1360_v53 }
 0x18a   :  { %1937 = vrot.lane.b32.xlu1 %v10628_v62, %s11077_s30  ;;  %692 = vrot.lane.b32.xlu0 %v10628_v62, %s11078_s2 }
 0x18b   :  { %9229 = vmatprep.subr.mxu0 %v11342_v54 }
 0x18c   :  { %9230 = vmatpush3.msra.mxu0 %v11342_v54 }
 0x18e   :  { %1941 = vrot.lane.b32.xlu1 %v10627_v10, %s11077_s30  ;;  %697 = vrot.lane.b32.xlu0 %v10627_v10, %s11078_s2 }
 0x1fc   :  { %v693_v21 = vpop.permute.xlu0 %692 }
 0x1fd   :  { %v695_v22 = vmul.f32 %v10628_v62, %v693_v21  ;;  %v701_v23 = vmul.f32 %v10627_v10, %v693_v21 }
 0x1ff   :  { %v704_v24 = vsel %vm156_vm0, %v695_v22, 0  ;;  %v710_v25 = vsel %vm156_vm0, %v701_v23, 0 }
 0x200   :  { %v11319_v26 = vand.u32 4294901760, %v704_v24  ;;  %v11321_v27 = vand.u32 4294901760, %v710_v25  ;;  %v698_v28 = vpop.permute.xlu0 %697 }
 0x201   :  { %v700_v29 = vmul.f32 %v10628_v62, %v698_v28  ;;  %v702_v30 = vmul.f32 %v10627_v10, %v698_v28 }
 0x202   :  { %v785_v31 = vsub.f32 %v704_v24, %v11319_v26  ;;  %v805_v32 = vsub.f32 %v710_v25, %v11321_v27 }
 0x203   :  { %v707_v33 = vsel %vm156_vm0, %v700_v29, 0  ;;  %v713_v34 = vsel %vm156_vm0, %v702_v30, 0 }
 0x204   :  { %v794_v35 = vand.u32 4294901760, %v707_v33  ;;  %v814_v36 = vand.u32 4294901760, %v713_v34  ;;  %v786_v37 = vand.u32 4294901760, %v785_v31  ;;  %v806_v38 = vand.u32 4294901760, %v805_v32 }
 0x206   :  { %v795_v39 = vsub.f32 %v707_v33, %v794_v35  ;;  %v815_v40 = vsub.f32 %v713_v34, %v814_v36  ;;  %v787_v41 = vsub.f32 %v785_v31, %v786_v37  ;;  %v807_v45 = vsub.f32 %v805_v32, %v806_v38 }
 0x208   :  { %v796_v42 = vand.u32 4294901760, %v795_v39  ;;  %v788_v43 = vand.u32 4294901760, %v787_v41  ;;  %v816_v44 = vand.u32 4294901760, %v815_v40  ;;  %v808_v49 = vand.u32 4294901760, %v807_v45  ;;  %v1963_v41 = vld [vmem:[%s12192_s6 + $0x10] sm:$0xff] }
 0x209   :  { %v2016_v45 = vand.u32 4294901760, %v1963_v41 }
 0x20a   :  { %9153 = vmatprep.mubr.f32.mxu1 %v788_v43  ;;  %v797_v46 = vsub.f32 %v795_v39, %v796_v42  ;;  %v817_v48 = vsub.f32 %v815_v40, %v816_v44  ;;  %v1966_v43 = vld [vmem:[%s12192_s6 + $0x28] sm:$0xff] }
 0x20c   :  { %v798_v47 = vand.u32 4294901760, %v797_v46  ;;  %v818_v51 = vand.u32 4294901760, %v817_v48  ;;  %v2018_v46 = vand.u32 4294901760, %v1966_v43 }
 0x20e   :  { %9154 = vmatmul.mubr.f32.vlgmr.msra.gmra.mrb[2].mxu1 %v798_v47 }
 0x20f   :  { %9156 = vmatprep.mubr.f32.mxu1 %v808_v49  ;;  %10062 = vmatpush3.bf16.msra.mxu1 %v10059_v11 }
 0x210   :  { %10064 = vmatprep.subr.bf16.mxu1 %v10063_v16 }
 0x212   :  { %9157 = vmatmul.mubr.f32.gmra.mrb[4].mxu1 %v818_v51 }
 0x213   :  { %10066 = vmatpush3.bf16.msra.mxu1 %v10063_v16  ;;  %9167 = vmatprep.mubr.f32.mxu1 %v11319_v26 }
 0x214   :  { %10068 = vmatprep.subr.bf16.mxu1 %v10067_v17 }
 0x216   :  { %9168 = vmatmul.mubr.f32.vlgmr.msra.gmra.mrb[2].mxu1 %v794_v35 }
 0x217   :  { %9170 = vmatprep.mubr.f32.mxu1 %v11321_v27  ;;  %10070 = vmatpush3.bf16.msra.mxu1 %v10067_v17 }
 0x218   :  { %10072 = vmatprep.subr.bf16.mxu1 %v10071_v18 }
 0x21a   :  { %9171 = vmatmul.mubr.f32.gmra.mrb[4].mxu1 %v814_v36 }
 0x21b   :  { %10074 = vmatpush3.bf16.msra.mxu1 %v10071_v18  ;;  %9181 = vmatprep.mubr.f32.mxu1 %v785_v31 }
 0x21c   :  { %10076 = vmatprep.subr.bf16.mxu1 %v11301_v50 }
 0x21e   :  { %9182 = vmatmul.mubr.f32.vlgmr.msra.gmra.mrb[2].mxu1 %v795_v39 }
 0x21f   :  { %9184 = vmatprep.mubr.f32.mxu1 %v805_v32  ;;  %10078 = vmatpush3.bf16.msra.mxu1 %v11301_v50 }
 0x220   :  { %10080 = vmatprep.subr.bf16.mxu1 %v11311_v63 }
 0x222   :  { %9185 = vmatmul.mubr.f32.gmra.mrb[4].mxu1 %v815_v40 }
 0x223   :  { %10082 = vmatpush3.bf16.msra.mxu1 %v11311_v63  ;;  %9195 = vmatprep.mubr.f32.mxu1 %v786_v37  ;;  %v1964_v37 = vld [vmem:[%s12192_s6 + $0x18] sm:$0xff] }
 0x224   :  { %10084 = vmatprep.subr.bf16.mxu1 %v10083_v19  ;;  %v2014_v40 = vand.u32 4294901760, %v1964_v37 }
 0x226   :  { %9196 = vmatmul.mubr.f32.vlgmr.msra.gmra.mrb[2].mxu1 %v796_v42  ;;  %v11378_v51 = vsub.f32 %v1964_v37, %v2014_v40 }
 0x227   :  { %9198 = vmatprep.mubr.f32.mxu1 %v806_v38  ;;  %10086 = vmatpush3.bf16.msra.mxu1 %v10083_v19  ;;  %v1961_v38 = vld [vmem:[%s12192_s6] sm:$0xff] }
 0x228   :  { %10088 = vmatprep.subr.bf16.mxu1 %v10087_v20  ;;  %v2012_v42 = vand.u32 4294901760, %v1961_v38 }
 0x22a   :  { %9199 = vmatmul.mubr.f32.gmra.mrb[4].mxu1 %v816_v44  ;;  %v1968_v44 = vld [vmem:[%s12192_s6 + $0x38] sm:$0xff]  ;;  %v11380_v52 = vsub.f32 %v1961_v38, %v2012_v42 }
 0x22b   :  { %10090 = vmatpush3.bf16.msra.mxu1 %v10087_v20  ;;  %9209 = vmatprep.mubr.f32.mxu1 %v11319_v26  ;;  %v2022_v47 = vand.u32 4294901760, %v1968_v44 }
 0x22c   :  { %10092 = vmatprep.subr.bf16.mxu1 %v11301_v50 }
 0x22e   :  { %9210 = vmatmul.mubr.f32.vlgmr.msra.gmra.mrb[2].mxu1 %v794_v35 }
 0x22f   :  { %9212 = vmatprep.mubr.f32.mxu1 %v11321_v27  ;;  %10094 = vmatpush3.bf16.msra.mxu1 %v11301_v50  ;;  %v1470_v50 = vsub.f32 %v1360_v53, %v11342_v54  ;;  %v11382_v53 = vpack.c.bf16 %v2016_v45, %v2012_v42 }
 0x230   :  { %10096 = vmatprep.subr.bf16.mxu1 %v11311_v63 }
 0x231   :  { %v11347_v55 = vand.u32 4294901760, %v1470_v50 }
 0x232   :  { %9213 = vmatmul.mubr.f32.gmra.mrb[4].mxu1 %v814_v36 }
 0x233   :  { %10098 = vmatpush3.bf16.msra.mxu1 %v11311_v63  ;;  %9223 = vmatprep.mubr.f32.mxu1 %v11319_v26  ;;  %v1472_v56 = vsub.f32 %v1470_v50, %v11347_v55 }
 0x235   :  { %v1473_v57 = vand.u32 4294901760, %v1472_v56  ;;  %v11391_v56 = vsub.f32 %v1968_v44, %v2022_v47 }
 0x236   :  { %9224 = vmatmul.mubr.f32.vlgmr.msra.gmra.mrb[2].mxu1 %v794_v35 }
 0x237   :  { %9226 = vmatprep.mubr.f32.mxu1 %v11321_v27  ;;  %9237 = vmatprep.subr.mxu0 %v1473_v57 }
 0x23a   :  { %9227 = vmatmul.mubr.f32.gmra.mrb[4].mxu1 %v814_v36  ;;  %v1962_v36 = vld [vmem:[%s12192_s6 + $0x8] sm:$0xff] }
 0x23b   :  { %v2010_v39 = vand.u32 4294901760, %v1962_v36 }
 0x23d   :  { %v11374_v48 = vpack.c.bf16 %v2014_v40, %v2010_v39  ;;  %v11376_v49 = vsub.f32 %v1962_v36, %v2010_v39  ;;  %v2151_v39 = vand.u32 4294901760, %v11391_v56 }
 0x23f   :  { %10100 = vmatprep.subr.bf16.mxu1 %v11374_v48 }
 0x240   :  { %10102 = vmatpush1.bf16.msra.mxu1 %v11382_v53 }
 0x309   :  { %v9225_v58 = vpop.f32.mrb[2].mxu1 }
 0x30a   :  { %v1307_v59 = vpop.f32.mrb[3].mxu1 }
 0x30b   :  { %v1329_v60 = vsub.f32 %v1307_v59, %v9225_v58  ;;  %v1967_v58 = vld [vmem:[%s12192_s6 + $0x30] sm:$0xff] }
 0x30d   :  { %v8596_v61 = vmul.f32 -1.442695, %v1329_v60  ;;  %v9228_v62 = vpop.f32.mrb[4].mxu1  ;;  %v2024_v60 = vand.u32 4294901760, %v1967_v58 }
 0x30e   :  { %v1319_v63 = vpop.f32.mrb[5].mxu1 }
 0x30f   :  { %10842 = vpow2.f32 %v8596_v61  ;;  %v1330_v0 = vsub.f32 %v1319_v63, %v9228_v62  ;;  %v1970_v62 = vld [vmem:[%s12192_s6 + $0x48] sm:$0xff]  ;;  %v1972_v63 = vld [vmem:[%s12192_s6 + $0x58] sm:$0xff] }
 0x311   :  { %v8597_v1 = vmul.f32 -1.442695, %v1330_v0  ;;  %v2026_v0 = vand.u32 4294901760, %v1970_v62 }
 0x313   :  { %10844 = vpow2.f32 %v8597_v1  ;;  %v2030_v1 = vand.u32 4294901760, %v1972_v63 }
 0x315   :  { %v11464_v42 = vsub.f32 %v1972_v63, %v2030_v1  ;;  %v12201_v63 = vmov 0.0  }
 0x316   :  { %2090 = vmatprep.mubr.f32.mxu1 %v12201_v63  ;;  %v10131_v63 = vpack.c.bf16 %v11378_v51, %v11376_v49 }
 0x319   :  { %v10843_v2 = vpop.eup %10842 }
 0x31a   :  { %v1337_v3 = vadd.f32 1.0, %v10843_v2  ;;  %v1969_v2 = vld [vmem:[%s12192_s6 + $0x40] sm:$0xff] }
 0x31c   :  { %10846 = vrcp.f32 %v1337_v3  ;;  %v1971_v3 = vld [vmem:[%s12192_s6 + $0x50] sm:$0xff] }
 0x31d   :  { %v10845_v4 = vpop.eup %10844 }
 0x31e   :  { %v1338_v5 = vadd.f32 1.0, %v10845_v4  ;;  %v2028_v4 = vand.u32 4294901760, %v1969_v2 }
 0x320   :  { %10848 = vrcp.f32 %v1338_v5  ;;  %v2032_v5 = vand.u32 4294901760, %v1971_v3  ;;  %v11466_v44 = vsub.f32 %v1969_v2, %v2028_v4 }
 0x326   :  { %v10847_v6 = vpop.eup %10846 }
 0x327   :  { %v1347_v9 = vsel %vm1345_vm2, %v10847_v6, 0  ;;  %v1343_v10 = vsub.f32 1.0, %v10847_v6  ;;  %v1938_v6 = vpop.permute.xlu1 %1937 }
 0x328   :  { %v1428_v11 = vand.u32 4294901760, %v1347_v9 }
 0x329   :  { %v1350_v12 = vsel %vm1345_vm2, %v1343_v10, 0  ;;  %v11418_v10 = vpack.c.bf16 %v2032_v5, %v2028_v4 }
 0x32a   :  { %v10849_v13 = vpop.eup %10848  ;;  %v1429_v14 = vsub.f32 %v1347_v9, %v1428_v11  ;;  %v1438_v15 = vand.u32 4294901760, %v1350_v12  ;;  %v11416_v9 = vpack.c.bf16 %v2030_v1, %v2026_v0 }
 0x32b   :  { %v1353_v16 = vsel %vm1345_vm2, %v10849_v13, 0  ;;  %v1344_v17 = vsub.f32 1.0, %v10849_v13 }
 0x32c   :  { %v1430_v18 = vand.u32 4294901760, %v1429_v14  ;;  %v1439_v19 = vsub.f32 %v1350_v12, %v1438_v15  ;;  %v1448_v20 = vand.u32 4294901760, %v1353_v16  ;;  %v1976_v12 = vld [vmem:[%s12192_s6 + $0x78] sm:$0xff] }
 0x32d   :  { %v1356_v21 = vsel %vm1345_vm2, %v1344_v17, 0  ;;  %v2115_v17 = vand.u32 4294901760, %v11376_v49 }
 0x32e   :  { %v1431_v22 = vsub.f32 %v1429_v14, %v1430_v18  ;;  %v1440_v23 = vand.u32 4294901760, %v1439_v19  ;;  %v1449_v24 = vsub.f32 %v1353_v16, %v1448_v20  ;;  %v1458_v25 = vand.u32 4294901760, %v1356_v21  ;;  %v1975_v16 = vld [vmem:[%s12192_s6 + $0x70] sm:$0xff] }
 0x330   :  { %v1432_v26 = vand.u32 4294901760, %v1431_v22  ;;  %v1441_v27 = vsub.f32 %v1439_v19, %v1440_v23  ;;  %v1450_v28 = vand.u32 4294901760, %v1449_v24  ;;  %v1459_v29 = vsub.f32 %v1356_v21, %v1458_v25 }
 0x331   :  { %v2121_v21 = vand.u32 4294901760, %v11380_v52 }
 0x332   :  { %9231 = vmatprep.mubr.f32.mxu0 %v1432_v26  ;;  %v1442_v30 = vand.u32 4294901760, %v1441_v27  ;;  %v1451_v31 = vsub.f32 %v1449_v24, %v1450_v28  ;;  %v1460_v32 = vand.u32 4294901760, %v1459_v29  ;;  %v11448_v27 = vsub.f32 %v1967_v58, %v2024_v60 }
 0x334   :  { %9232 = vmatmul.mubr.f32.vlgmr.msra.gmra.mrb[0].mxu0 %v1442_v30  ;;  %v1452_v33 = vand.u32 4294901760, %v1451_v31  ;;  %v1461_v34 = vsub.f32 %v1459_v29, %v1460_v32  ;;  %v1942_v30 = vpop.permute.xlu1 %1941 }
 0x335   :  { %9238 = vmatpush3.msra.mxu0 %v1473_v57  ;;  %v1965_v57 = vld [vmem:[%s12192_s6 + $0x20] sm:$0xff] }
 0x336   :  { %9234 = vmatprep.mubr.f32.mxu0 %v1452_v33  ;;  %v1462_v35 = vand.u32 4294901760, %v1461_v34  ;;  %9245 = vmatprep.subr.mxu0 %v1470_v50  ;;  %v2020_v59 = vand.u32 4294901760, %v1965_v57 }
 0x338   :  { %9235 = vmatmul.mubr.f32.gmra.mrb[2].mxu0 %v1462_v35  ;;  %v11401_v61 = vpack.c.bf16 %v2024_v60, %v2020_v59  ;;  %v11446_v26 = vsub.f32 %v1965_v57, %v2020_v59 }
 0x339   :  { %9239 = vmatprep.mubr.f32.mxu0 %v1428_v11 }
 0x33c   :  { %9240 = vmatmul.mubr.f32.vlgmr.msra.gmra.mrb[0].mxu0 %v1438_v15 }
 0x33d   :  { %9242 = vmatprep.mubr.f32.mxu0 %v1448_v20  ;;  %9246 = vmatpush3.msra.mxu0 %v1470_v50  ;;  %v11386_v50 = vpack.c.bf16 %v2022_v47, %v2018_v46 }
 0x33e   :  { %9253 = vmatprep.subr.mxu0 %v11342_v54 }
 0x33f   :  { %10104 = vmatprep.subr.bf16.mxu1 %v11386_v50 }
 0x340   :  { %9243 = vmatmul.mubr.f32.gmra.mrb[2].mxu0 %v1458_v25  ;;  %10106 = vmatpush1.bf16.msra.mxu1 %v11401_v61 }
 0x341   :  { %9247 = vmatprep.mubr.f32.mxu0 %v1429_v14  ;;  %10108 = vmatprep.subr.bf16.mxu1 %v11416_v9  ;;  %v2038_v14 = vand.u32 4294901760, %v1976_v12 }
 0x343   :  { %v11472_v47 = vsub.f32 %v1976_v12, %v2038_v14 }
 0x344   :  { %9248 = vmatmul.mubr.f32.vlgmr.msra.gmra.mrb[0].mxu0 %v1439_v19  ;;  %10110 = vmatpush1.bf16.msra.mxu1 %v11418_v10 }
 0x345   :  { %9250 = vmatprep.mubr.f32.mxu0 %v1449_v24  ;;  %9254 = vmatpush3.msra.mxu0 %v11342_v54  ;;  %v2116_v24 = vsub.f32 %v11376_v49, %v2115_v17 }
 0x346   :  { %9261 = vmatprep.subr.mxu0 %v11347_v55 }
 0x348   :  { %9251 = vmatmul.mubr.f32.gmra.mrb[2].mxu0 %v1459_v29  ;;  %v2122_v29 = vsub.f32 %v11380_v52, %v2121_v21 }
 0x349   :  { %9255 = vmatprep.mubr.f32.mxu0 %v1430_v18  ;;  %v2127_v18 = vand.u32 4294901760, %v11378_v51 }
 0x34a   :  { %v2123_v37 = vand.u32 4294901760, %v2122_v29 }
 0x34c   :  { %9256 = vmatmul.mubr.f32.vlgmr.msra.gmra.mrb[0].mxu0 %v1440_v23 }
 0x34d   :  { %9258 = vmatprep.mubr.f32.mxu0 %v1450_v28  ;;  %9262 = vmatpush3.msra.mxu0 %v11347_v55  ;;  %v11388_v55 = vsub.f32 %v1966_v43, %v2018_v46 }
 0x34e   :  { %9269 = vmatprep.subr.mxu0 %v11342_v54 }
 0x34f   :  { %v2139_v38 = vand.u32 4294901760, %v11388_v55 }
 0x350   :  { %9259 = vmatmul.mubr.f32.gmra.mrb[2].mxu0 %v1460_v32  ;;  %v2117_v32 = vand.u32 4294901760, %v2116_v24 }
 0x351   :  { %9263 = vmatprep.mubr.f32.mxu0 %v1428_v11  ;;  %v2140_v2 = vsub.f32 %v11388_v55, %v2139_v38 }
 0x354   :  { %9264 = vmatmul.mubr.f32.vlgmr.msra.gmra.mrb[0].mxu0 %v1438_v15 }
 0x355   :  { %9266 = vmatprep.mubr.f32.mxu0 %v1448_v20  ;;  %9270 = vmatpush3.msra.mxu0 %v11342_v54  ;;  %v11384_v54 = vsub.f32 %v1963_v41, %v2016_v45  ;;  %v11462_v41 = vsub.f32 %v1970_v62, %v2026_v0  ;;  %v11468_v45 = vsub.f32 %v1971_v3, %v2032_v5  ;;  %v2145_v5 = vand.u32 4294901760, %v11446_v26 }
 0x356   :  { %v2152_v3 = vsub.f32 %v11391_v56, %v2151_v39 }
 0x357   :  { %v2133_v22 = vand.u32 4294901760, %v11384_v54  ;;  %v2163_v12 = vand.u32 4294901760, %v11462_v41 }
 0x358   :  { %9267 = vmatmul.mubr.f32.gmra.mrb[2].mxu0 %v1458_v25 }
 0x359   :  { %9271 = vmatprep.mubr.f32.mxu0 %v1428_v11  ;;  %v1974_v11 = vld [vmem:[%s12192_s6 + $0x68] sm:$0xff]  ;;  %v2134_v34 = vsub.f32 %v11384_v54, %v2133_v22  ;;  %v2164_v24 = vsub.f32 %v11462_v41, %v2163_v12 }
 0x35a   :  { %v2034_v13 = vand.u32 4294901760, %v1974_v11 }
 0x35b   :  { %v2135_v1 = vand.u32 4294901760, %v2134_v34  ;;  %v2165_v34 = vand.u32 4294901760, %v2164_v24 }
 0x35c   :  { %9272 = vmatmul.mubr.f32.vlgmr.msra.gmra.mrb[0].mxu0 %v1438_v15  ;;  %v1973_v15 = vld [vmem:[%s12192_s6 + $0x60] sm:$0xff]  ;;  %v11438_v23 = vpack.c.bf16 %v2038_v14, %v2034_v13  ;;  %v11470_v46 = vsub.f32 %v1974_v11, %v2034_v13  ;;  %s11080_s6 = smov 32   ;;  %v2157_v11 = vand.u32 4294901760, %v11448_v27  ;;  %v2141_v14 = vand.u32 4294901760, %v2140_v2 }
 0x35d   :  { %9274 = vmatprep.mubr.f32.mxu0 %v1448_v20  ;;  %v2036_v19 = vand.u32 4294901760, %v1973_v15  ;;  %v2040_v20 = vand.u32 4294901760, %v1975_v16  ;;  %v11489_v13 = vpack.c.bf16 %v2135_v1, %v2123_v37 }
 0x35e   :  { %10112 = vmatprep.subr.bf16.mxu1 %v11438_v23 }
 0x35f   :  { %v11450_v28 = vpack.c.bf16 %v2040_v20, %v2036_v19  ;;  %v11474_v59 = vsub.f32 %v1973_v15, %v2036_v19  ;;  %v11476_v60 = vsub.f32 %v1975_v16, %v2040_v20  ;;  %v2153_v15 = vand.u32 4294901760, %v2152_v3 }
 0x360   :  { %9275 = vmatmul.mubr.f32.gmra.mrb[2].mxu0 %v1458_v25  ;;  %v2128_v25 = vsub.f32 %v11378_v51, %v2127_v18  ;;  %v2175_v16 = vand.u32 4294901760, %v11464_v42  ;;  %v2146_v20 = vsub.f32 %v11446_v26, %v2145_v5 }
 0x361   :  { %10114 = vmatpush1.bf16.msra.mxu1 %v11450_v28 }
 0x362   :  { %v2129_v33 = vand.u32 4294901760, %v2128_v25  ;;  %v11495_v25 = vpack.c.bf16 %v2153_v15, %v2141_v14  ;;  %v2176_v29 = vsub.f32 %v11464_v42, %v2175_v16 }
 0x364   :  { %v10115_v43 = vpack.c.bf16 %v2129_v33, %v2117_v32  ;;  %v2147_v32 = vand.u32 4294901760, %v2146_v20 }
 0x366   :  { %10116 = vmatprep.subr.bf16.mxu1 %v10115_v43  ;;  %v2199_v43 = vand.u32 4294901760, %v11472_v47 }
 0x42f   :  { %v9273_v31 = vpop.f32.mrb[0].mxu0 }
 0x430   :  { %v1944_v35 = vmul.f32 %v9273_v31, %v1942_v30  ;;  %v1915_v36 = vpop.f32.mrb[1].mxu0  ;;  %v2181_v31 = vand.u32 4294901760, %v11468_v45 }
 0x431   :  { %v1940_v40 = vmul.f32 %v1938_v6, %v1915_v36  ;;  %v2177_v36 = vand.u32 4294901760, %v2176_v29 }
 0x433   :  { %v1945_v57 = vadd.f32 %v1944_v35, %v1940_v40  ;;  %v9276_v58 = vpop.f32.mrb[2].mxu0  ;;  %v2187_v35 = vand.u32 4294901760, %v11470_v46  ;;  %v2182_v40 = vsub.f32 %v11468_v45, %v2181_v31  ;;  %v10123_v1 = vpack.c.bf16 %v2177_v36, %v2165_v34 }
 0x434   :  { %v1947_v62 = vmul.f32 %v9276_v58, %v1942_v30  ;;  %v1927_v0 = vpop.f32.mrb[3].mxu0  ;;  %v2169_v30 = vand.u32 4294901760, %v11466_v44  ;;  %v10133_v34 = vpack.c.bf16 %v11384_v54, %v11380_v52  ;;  %v10135_v36 = vpack.c.bf16 %v11391_v56, %v11388_v55  ;;  %v1959_v52 = vld [vmem:[%s12187_s1] sm:$0xff]  ;;  %v1960_v54 = vld [vmem:[%s12187_s1 + $0x8] sm:$0xff] }
 0x435   :  { %v1946_v4 = vmul.f32 %v1938_v6, %v1927_v0  ;;  %1951 = vrot.lane.b32.xlu0 %v1945_v57, %s11080_s6  ;;  %v2158_v6 = vsub.f32 %v11448_v27, %v2157_v11  ;;  %v2188_v58 = vsub.f32 %v11470_v46, %v2187_v35  ;;  %v2205_v0 = vand.u32 4294901760, %v11476_v60 }
 0x436   :  { %v2170_v37 = vsub.f32 %v11466_v44, %v2169_v30  ;;  %v2183_v3 = vand.u32 4294901760, %v2182_v40  ;;  %v10139_v40 = vpack.c.bf16 %v11464_v42, %v11462_v41  ;;  %v11545_v41 = vpack.c.bf16 %v2157_v11, %v2145_v5 }
 0x437   :  { %v1948_v19 = vadd.f32 %v1947_v62, %v1946_v4  ;;  %v2159_v33 = vand.u32 4294901760, %v2158_v6  ;;  %v2193_v62 = vand.u32 4294901760, %v11474_v59  ;;  %v2200_v4 = vsub.f32 %v11472_v47, %v2199_v43 }
 0x438   :  { %v2171_v2 = vand.u32 4294901760, %v2170_v37  ;;  %v2189_v14 = vand.u32 4294901760, %v2188_v58  ;;  %v10137_v37 = vpack.c.bf16 %v11448_v27, %v11446_v26  ;;  %v10141_v58 = vpack.c.bf16 %v11468_v45, %v11466_v44 }
 0x439   :  { %1953 = vrot.lane.b32.xlu1 %v1948_v19, %s11080_s6  ;;  %v10121_v57 = vpack.c.bf16 %v2159_v33, %v2147_v32  ;;  %v2194_v15 = vsub.f32 %v11474_v59, %v2193_v62  ;;  %v2206_v19 = vsub.f32 %v11476_v60, %v2205_v0  ;;  %v2201_v6 = vand.u32 4294901760, %v2200_v4 }
 0x43a   :  { %v10125_v20 = vpack.c.bf16 %v2183_v3, %v2171_v2  ;;  %v10143_v2 = vpack.c.bf16 %v11472_v47, %v11470_v46  ;;  %v10145_v3 = vpack.c.bf16 %v11476_v60, %v11474_v59  ;;  %v11531_v4 = vpack.c.bf16 %v2127_v18, %v2115_v17 }
 0x43b   :  { %v2195_v24 = vand.u32 4294901760, %v2194_v15  ;;  %v2207_v29 = vand.u32 4294901760, %v2206_v19  ;;  %v10127_v32 = vpack.c.bf16 %v2201_v6, %v2189_v14  ;;  %v11537_v26 = vpack.c.bf16 %v2133_v22, %v2121_v21 }
 0x43c   :  { %v11543_v27 = vpack.c.bf16 %v2151_v39, %v2139_v38  ;;  %v11547_v42 = vpack.c.bf16 %v2175_v16, %v2163_v12  ;;  %v11549_v49 = vpack.c.bf16 %v2181_v31, %v2169_v30  ;;  %v11551_v51 = vpack.c.bf16 %v2199_v43, %v2187_v35  ;;  %v141_v35 = vld [vmem:[#allocation12 + $0x10] sm:$0xff]  ;;  %v142_v43 = vld [vmem:[#allocation12 + $0x18] sm:$0xff] }
 0x43d   :  { %v10129_v33 = vpack.c.bf16 %v2207_v29, %v2195_v24  ;;  %v11553_v17 = vpack.c.bf16 %v2205_v0, %v2193_v62  ;;  %v11081_v55 = vmov 0   ;;  %v12203_v12 = vmov 0.0  }
 0x43e   :  { %10840 = vset.pattern.permute.xlu0 %v11081_v55  ;;  %10841 = vset.pattern.permute.xlu1 %v11081_v55  ;;  %v3268_v62 = vand.u32 4294901760, %v141_v35  ;;  %v3271_v0 = vand.u32 4294901760, %v142_v43 }
 0x43f   :  { %1980 = vperm.xlu0 %10840, %v1959_v52   ;;  %1985 = vperm.xlu1 %10841, %v1960_v54  }
 0x440   :  { %v11629_v15 = vpack.c.bf16 %v3271_v0, %v3268_v62  ;;  %v3356_v6 = vsub.f32 %v141_v35, %v3268_v62  ;;  %v3363_v24 = vsub.f32 %v142_v43, %v3271_v0 }
 0x4a7   :  { %v1952_v56 = vpop.permute.xlu0 %1951 }
 0x4a8   :  { %v1957_v18 = vsel %vm156_vm0, %v11256_v7, %v1952_v56 }
 0x4a9   :  { %v2005_v21 = vsel %vm2003_vm3, %v1957_v18, 0  ;;  %v2723_v18 = vld [vmem:[#allocation10 + $0x8] sm:$0xff] }
 0x4aa   :  { %v11563_v22 = vand.u32 4294901760, %v2005_v21 }
 0x4ab   :  { %v1954_v38 = vpop.permute.xlu1 %1953 }
 0x4ac   :  { %v2092_v39 = vsub.f32 %v2005_v21, %v11563_v22  ;;  %v1958_v44 = vsel %vm156_vm0, %v11261_v8, %v1954_v38  ;;  %v2722_v8 = vld [vmem:[#allocation10] sm:$0xff]  ;;  %v2706_v21 = vld [vmem:[#allocation9] sm:$0x3] }
 0x4ad   :  { %v2008_v45 = vsel %vm2003_vm3, %v1958_v44, 0  ;;  %v2728_v44 = vsel %vm156_vm0, %v2723_v18, 0 }
 0x4ae   :  { %v2093_v46 = vand.u32 4294901760, %v2092_v39  ;;  %v11568_v47 = vand.u32 4294901760, %v2008_v45 }
 0x4b0   :  { %v2094_v59 = vsub.f32 %v2092_v39, %v2093_v46  ;;  %v2103_v60 = vsub.f32 %v2008_v45, %v11568_v47 }
 0x4b2   :  { %v2095_v5 = vand.u32 4294901760, %v2094_v59  ;;  %v2104_v11 = vand.u32 4294901760, %v2103_v60 }
 0x4b4   :  { %2096 = vmatmul.mubr.f32.vlgmr.msra.gmra.mrb[6].mxu1 %v2095_v5  ;;  %v2105_v7 = vsub.f32 %v2103_v60, %v2104_v11 }
 0x4b5   :  { %10118 = vmatpush1.bf16.msra.mxu1 %v11489_v13  ;;  %2101 = vmatprep.mubr.f32.mxu1 %v12203_v12 }
 0x4b6   :  { %10120 = vmatprep.subr.bf16.mxu1 %v11495_v25  ;;  %v2106_v16 = vand.u32 4294901760, %v2105_v7 }
 0x4b8   :  { %2107 = vmatmul.mubr.f32.gmra.mrb[8].mxu1 %v2106_v16 }
 0x4b9   :  { %10122 = vmatpush1.bf16.msra.mxu1 %v10121_v57  ;;  %2257 = vmatprep.mubr.f32.mxu1 %v12203_v12  ;;  %v11082_v57 = vmov 0.0|0.0  }
 0x4ba   :  { %10124 = vmatprep.subr.bf16.mxu1 %v10123_v1 }
 0x4bd   :  { %10126 = vmatpush1.bf16.msra.mxu1 %v10125_v20 }
 0x4be   :  { %10128 = vmatprep.subr.bf16.mxu1 %v10127_v32  ;;  %v1981_v56 = vpop.permute.xlu0 %1980 }
 0x4c1   :  { %10130 = vmatpush1.bf16.msra.mxu1 %v10129_v33  ;;  %v3357_v33 = vand.u32 4294901760, %v3356_v6 }
 0x4c2   :  { %10132 = vmatprep.subr.bf16.mxu1 %v10131_v63 }
 0x4c4   :  { %2259 = vmatmul.mubr.f32.vlgmr.msra.gmra.mrb[6].mxu1 %v11563_v22 }
 0x4c5   :  { %10134 = vmatpush1.bf16.msra.mxu1 %v10133_v34  ;;  %2264 = vmatprep.mubr.f32.mxu1 %v12203_v12  ;;  %v3364_v34 = vand.u32 4294901760, %v3363_v24 }
 0x4c6   :  { %10136 = vmatprep.subr.bf16.mxu1 %v10135_v36 }
 0x4c8   :  { %2266 = vmatmul.mubr.f32.gmra.mrb[8].mxu1 %v11568_v47 }
 0x4c9   :  { %10138 = vmatpush1.bf16.msra.mxu1 %v10137_v37  ;;  %2368 = vmatprep.mubr.f32.mxu1 %v12203_v12  ;;  %v3358_v37 = vsub.f32 %v3356_v6, %v3357_v33 }
 0x4ca   :  { %10140 = vmatprep.subr.bf16.mxu1 %v10139_v40  ;;  %v3365_v40 = vsub.f32 %v3363_v24, %v3364_v34 }
 0x4cd   :  { %10142 = vmatpush1.bf16.msra.mxu1 %v10141_v58  ;;  %v3359_v58 = vand.u32 4294901760, %v3358_v37 }
 0x4ce   :  { %10144 = vmatprep.subr.bf16.mxu1 %v10143_v2  ;;  %v3366_v2 = vand.u32 4294901760, %v3365_v40 }
 0x4d1   :  { %10146 = vmatpush1.bf16.msra.mxu1 %v10145_v3  ;;  %v11637_v3 = vpack.c.bf16 %v3366_v2, %v3359_v58 }
 0x4d2   :  { %10148 = vmatprep.subr.bf16.mxu1 %v11374_v48 }
 0x4d4   :  { %2371 = vmatmul.mubr.f32.vlgmr.msra.gmra.mrb[6].mxu1 %v2092_v39  ;;  %v1986_v39 = vpop.permute.xlu1 %1985 }
 0x4d5   :  { %10150 = vmatpush1.bf16.msra.mxu1 %v11382_v53  ;;  %2376 = vmatprep.mubr.f32.mxu1 %v12203_v12 }
 0x4d6   :  { %10152 = vmatprep.subr.bf16.mxu1 %v11386_v50 }
 0x4d8   :  { %2379 = vmatmul.mubr.f32.gmra.mrb[8].mxu1 %v2103_v60 }
 0x4d9   :  { %10154 = vmatpush1.bf16.msra.mxu1 %v11401_v61  ;;  %2465 = vmatprep.mubr.f32.mxu1 %v12203_v12 }
 0x4da   :  { %10156 = vmatprep.subr.bf16.mxu1 %v11416_v9 }
 0x4dd   :  { %10158 = vmatpush1.bf16.msra.mxu1 %v11418_v10 }
 0x4de   :  { %10160 = vmatprep.subr.bf16.mxu1 %v11438_v23 }
 0x4e1   :  { %10162 = vmatpush1.bf16.msra.mxu1 %v11450_v28 }
 0x4e2   :  { %10164 = vmatprep.subr.bf16.mxu1 %v11531_v4 }
 0x4e4   :  { %2469 = vmatmul.mubr.f32.vlgmr.msra.gmra.mrb[6].mxu1 %v2093_v46 }
 0x4e5   :  { %10166 = vmatpush1.bf16.msra.mxu1 %v11537_v26  ;;  %2474 = vmatprep.mubr.f32.mxu1 %v12203_v12  ;;  %v11641_v26 = vpack.c.bf16 %v3363_v24, %v3356_v6 }
 0x4e6   :  { %10168 = vmatprep.subr.bf16.mxu1 %v11543_v27 }
 0x4e8   :  { %2478 = vmatmul.mubr.f32.gmra.mrb[8].mxu1 %v2104_v11  ;;  %v11652_v11 = vand.u32 4294901760, %v2728_v44 }
 0x4e9   :  { %10170 = vmatpush1.bf16.msra.mxu1 %v11545_v41  ;;  %2596 = vmatprep.mubr.f32.mxu1 %v12203_v12  ;;  %v11645_v41 = vpack.c.bf16 %v3364_v34, %v3357_v33 }
 0x4ea   :  { %10172 = vmatprep.subr.bf16.mxu1 %v11547_v42  ;;  %v1989_v42 = vlaneseq }
 0x4ed   :  { %10174 = vmatpush1.bf16.msra.mxu1 %v11549_v49  ;;  %v11647_v49 = vshrl.u32 %v1989_v42, 7 }
 0x4ee   :  { %10176 = vmatprep.subr.bf16.mxu1 %v11551_v51 }
 0x4ef   :  { %v1991_v51 = vsub.s32 0, %v11647_v49  ;;  %v1995_v52 = vsub.s32 1, %v11647_v49 }
 0x4f1   :  { %10178 = vmatpush1.bf16.msra.mxu1 %v11553_v17  ;;  %v1977_v17 = vld [vmem:[#allocation7] sm:$0x3]  ;;  %v2711_v45 = vrot.slane %v2706_v21, %v1991_v51 }
 0x4f2   :  { %10180 = vmatprep.subr.bf16.mxu1 %v11374_v48  ;;  %v2725_v48 = vsel %vm156_vm0, %v2722_v8, 0  ;;  %v1992_v54 = vrot.slane %v1977_v17, %v1991_v51  ;;  %v1996_v55 = vrot.slane %v1977_v17, %v1995_v52 }
 0x4f4   :  { %2598 = vmatmul.mubr.f32.vlgmr.msra.gmra.mrb[6].mxu1 %v11563_v22  ;;  %v2000_v38 = vmul.f32 %v1996_v55, %v1981_v56  ;;  %v2001_v5 = vmul.f32 %v1992_v54, %v1986_v39  ;;  %v2002_v16 = vmul.f32 %v1996_v55, %v1986_v39 }
 0x4f5   :  { %10182 = vmatpush1.bf16.msra.mxu1 %v11382_v53  ;;  %2603 = vmatprep.mubr.f32.mxu1 %v12203_v12  ;;  %v11615_v53 = vand.u32 4294901760, %v2725_v48 }
 0x4f6   :  { %10184 = vmatprep.subr.bf16.mxu1 %v11386_v50 }
 0x4f7   :  { %v11618_v50 = vsub.f32 %v2725_v48, %v11615_v53 }
 0x4f8   :  { %2605 = vmatmul.mubr.f32.gmra.mrb[8].mxu1 %v11568_v47 }
 0x4f9   :  { %10186 = vmatpush1.bf16.msra.mxu1 %v11401_v61  ;;  %2691 = vmatprep.mubr.f32.mxu1 %v12203_v12  ;;  %v2801_v61 = vand.u32 4294901760, %v11618_v50 }
 0x4fa   :  { %10188 = vmatprep.subr.bf16.mxu1 %v11416_v9 }
 0x4fb   :  { %v2802_v9 = vsub.f32 %v11618_v50, %v2801_v61 }
 0x4fd   :  { %10190 = vmatpush1.bf16.msra.mxu1 %v11418_v10  ;;  %v2803_v10 = vand.u32 4294901760, %v2802_v9 }
 0x4fe   :  { %10192 = vmatprep.subr.bf16.mxu1 %v11438_v23  ;;  %v139_v23 = vld [vmem:[#allocation12] sm:$0xff] }
 0x4ff   :  { %9285 = vmatprep.mubr.f32.mxu0 %v2803_v10  ;;  %v3262_v63 = vand.u32 4294901760, %v139_v23 }
 0x501   :  { %10194 = vmatpush1.bf16.msra.mxu1 %v11450_v28  ;;  %v140_v28 = vld [vmem:[#allocation12 + $0x8] sm:$0xff]  ;;  %v3342_v30 = vsub.f32 %v139_v23, %v3262_v63 }
 0x502   :  { %v3265_v13 = vand.u32 4294901760, %v140_v28  ;;  %10279 = vmatprep.subr.bf16.mxu1 %v11082_v57 }
 0x503   :  { %v3343_v1 = vand.u32 4294901760, %v3342_v30 }
 0x504   :  { %2693 = vmatmul.mubr.f32.vlgmr.msra.gmra.mrb[6].mxu1 %v11563_v22  ;;  %v11624_v25 = vpack.c.bf16 %v3265_v13, %v3262_v63  ;;  %v3349_v31 = vsub.f32 %v140_v28, %v3265_v13  ;;  %v1999_v22 = vmul.f32 %v1992_v54, %v1981_v56  ;;  %v2810_v63 = vsub.f32 %v2728_v44, %v11652_v11 }
 0x505   :  { %2698 = vmatprep.mubr.f32.mxu1 %v12203_v12  ;;  %v3344_v19 = vsub.f32 %v3342_v30, %v3343_v1 }
 0x506   :  { %v3350_v14 = vand.u32 4294901760, %v3349_v31  ;;  %10281 = vmatpush3.bf16.msra.mxu1 %v11624_v25  ;;  %v11639_v4 = vpack.c.bf16 %v3349_v31, %v3342_v30 }
 0x507   :  { %10282 = vmatprep.subr.bf16.mxu1 %v11082_v57  ;;  %v3345_v29 = vand.u32 4294901760, %v3344_v19 }
 0x508   :  { %2700 = vmatmul.mubr.f32.gmra.mrb[8].mxu1 %v11568_v47  ;;  %v3351_v20 = vsub.f32 %v3349_v31, %v3350_v14  ;;  %v11643_v27 = vpack.c.bf16 %v3350_v14, %v3343_v1  ;;  %v2715_v47 = vrot.slane %v2706_v21, %v1995_v52  ;;  %v2811_v1 = vand.u32 4294901760, %v2810_v63 }
 0x509   :  { %9417 = vmatprep.mubr.msk.f32.mxu1 %vm11083_vm4, %v12203_v12 }
 0x50a   :  { %v3352_v32 = vand.u32 4294901760, %v3351_v20  ;;  %10284 = vmatpush3.bf16.msra.mxu1 %v11629_v15  ;;  %v2812_v33 = vsub.f32 %v2810_v63, %v2811_v1 }
 0x50b   :  { %10285 = vmatprep.subr.bf16.mxu1 %v11082_v57 }
 0x50c   :  { %v11635_v36 = vpack.c.bf16 %v3352_v32, %v3345_v29  ;;  %v2813_v55 = vand.u32 4294901760, %v2812_v33 }
 0x5d7   :  { %v2694_v46 = vpop.f32.mrb[6].mxu1 }
 0x5d8   :  { %v10629_v59 = vadd.f32 %v2694_v46, %v1999_v22  ;;  %v2696_v60 = vpop.f32.mrb[7].mxu1 }
 0x5d9   :  { %v10630_v7 = vadd.f32 %v2696_v60, %v2000_v38 }
 0x5da   :  { %v2718_v8 = vadd.f32 %v10629_v59, %v2711_v45 }
 0x5db   :  { %v2719_v48 = vadd.f32 %v10630_v7, %v2715_v47  ;;  %v2701_v9 = vpop.f32.mrb[8].mxu1 }
 0x5dc   :  { %v2731_v10 = vand.u32 4294901760, %v2718_v8  ;;  %v10631_v23 = vadd.f32 %v2701_v9, %v2001_v5  ;;  %v2703_v28 = vpop.f32.mrb[9].mxu1 }
 0x5dd   :  { %v2737_v13 = vand.u32 4294901760, %v2719_v48  ;;  %v10632_v30 = vadd.f32 %v2703_v28, %v2002_v16 }
 0x5de   :  { %v2821_v31 = vsub.f32 %v2718_v8, %v2731_v10  ;;  %v2720_v35 = vadd.f32 %v10631_v23, %v2711_v45 }
 0x5df   :  { %v2835_v43 = vsub.f32 %v2719_v48, %v2737_v13  ;;  %v2721_v62 = vadd.f32 %v10632_v30, %v2715_v47 }
 0x5e0   :  { %v2734_v0 = vand.u32 4294901760, %v2720_v35  ;;  %v2822_v14 = vand.u32 4294901760, %v2821_v31 }
 0x5e1   :  { %v2740_v19 = vand.u32 4294901760, %v2721_v62  ;;  %v2836_v20 = vand.u32 4294901760, %v2835_v43 }
 0x5e2   :  { %v10195_v6 = vpack.c.bf16 %v2734_v0, %v2731_v10  ;;  %v2828_v24 = vsub.f32 %v2720_v35, %v2734_v0  ;;  %v2823_v34 = vsub.f32 %v2821_v31, %v2822_v14 }
 0x5e3   :  { %v10199_v29 = vpack.c.bf16 %v2740_v19, %v2737_v13  ;;  %v2842_v32 = vsub.f32 %v2721_v62, %v2740_v19  ;;  %v2837_v58 = vsub.f32 %v2835_v43, %v2836_v20 }
 0x5e4   :  { %10196 = vmatprep.subr.bf16.mxu0 %v10195_v6  ;;  %v2829_v37 = vand.u32 4294901760, %v2828_v24  ;;  %v10211_v40 = vpack.c.bf16 %v2828_v24, %v2821_v31  ;;  %v2824_v56 = vand.u32 4294901760, %v2823_v34 }
 0x5e5   :  { %10198 = vmatpush3.bf16.msra.mxu0 %v10195_v6  ;;  %v2843_v2 = vand.u32 4294901760, %v2842_v32  ;;  %v10215_v42 = vpack.c.bf16 %v2842_v32, %v2835_v43  ;;  %v2838_v21 = vand.u32 4294901760, %v2837_v58 }
 0x5e6   :  { %10200 = vmatprep.subr.bf16.mxu0 %v10199_v29  ;;  %v2830_v51 = vsub.f32 %v2828_v24, %v2829_v37  ;;  %v10227_v17 = vpack.c.bf16 %v2829_v37, %v2822_v14 }
 0x5e7   :  { %v2844_v52 = vsub.f32 %v2842_v32, %v2843_v2  ;;  %v10231_v54 = vpack.c.bf16 %v2843_v2, %v2836_v20 }
 0x5e8   :  { %v2831_v18 = vand.u32 4294901760, %v2830_v51 }
 0x5e9   :  { %10202 = vmatpush3.bf16.msra.mxu0 %v10199_v29  ;;  %v2845_v22 = vand.u32 4294901760, %v2844_v52 }
 0x5ea   :  { %v10203_v38 = vpack.c.bf16 %v2831_v18, %v2824_v56 }
 0x5eb   :  { %v10207_v39 = vpack.c.bf16 %v2845_v22, %v2838_v21 }
 0x5ec   :  { %9286 = vmatmul.mubr.f32.vlgmr.msra.gmra.mrb[4].mxu0 %v2813_v55  ;;  %10204 = vmatprep.subr.bf16.mxu0 %v10203_v38 }
 0x5ed   :  { %10206 = vmatpush3.bf16.msra.mxu0 %v10203_v38  ;;  %9296 = vmatprep.mubr.f32.mxu0 %v11615_v53 }
 0x5ee   :  { %10208 = vmatprep.subr.bf16.mxu0 %v10207_v39 }
 0x5f1   :  { %10210 = vmatpush3.bf16.msra.mxu0 %v10207_v39 }
 0x5f2   :  { %10212 = vmatprep.subr.bf16.mxu0 %v10211_v40 }
 0x5f4   :  { %9297 = vmatmul.mubr.f32.vlgmr.msra.gmra.mrb[4].mxu0 %v11652_v11 }
 0x5f5   :  { %10214 = vmatpush3.bf16.msra.mxu0 %v10211_v40  ;;  %9307 = vmatprep.mubr.f32.mxu0 %v11618_v50 }
 0x5f6   :  { %10216 = vmatprep.subr.bf16.mxu0 %v10215_v42 }
 0x5f9   :  { %10218 = vmatpush3.bf16.msra.mxu0 %v10215_v42 }
 0x5fa   :  { %10220 = vmatprep.subr.bf16.mxu0 %v10195_v6 }
 0x5fc   :  { %9308 = vmatmul.mubr.f32.vlgmr.msra.gmra.mrb[4].mxu0 %v2810_v63 }
 0x5fd   :  { %10222 = vmatpush3.bf16.msra.mxu0 %v10195_v6  ;;  %9318 = vmatprep.mubr.f32.mxu0 %v2801_v61 }
 0x5fe   :  { %10224 = vmatprep.subr.bf16.mxu0 %v10199_v29 }
 0x601   :  { %10226 = vmatpush3.bf16.msra.mxu0 %v10199_v29 }
 0x602   :  { %10228 = vmatprep.subr.bf16.mxu0 %v10227_v17 }
 0x604   :  { %9319 = vmatmul.mubr.f32.vlgmr.msra.gmra.mrb[4].mxu0 %v2811_v1 }
 0x605   :  { %10230 = vmatpush3.bf16.msra.mxu0 %v10227_v17  ;;  %9329 = vmatprep.mubr.f32.mxu0 %v11615_v53 }
 0x606   :  { %10232 = vmatprep.subr.bf16.mxu0 %v10231_v54 }
 0x609   :  { %10234 = vmatpush3.bf16.msra.mxu0 %v10231_v54 }
 0x60a   :  { %10236 = vmatprep.subr.bf16.mxu0 %v10195_v6 }
 0x60c   :  { %9330 = vmatmul.mubr.f32.vlgmr.msra.gmra.mrb[4].mxu0 %v11652_v11 }
 0x60d   :  { %10238 = vmatpush3.bf16.msra.mxu0 %v10195_v6  ;;  %9340 = vmatprep.mubr.f32.mxu0 %v11615_v53 }
 0x60e   :  { %10240 = vmatprep.subr.bf16.mxu0 %v10199_v29 }
 0x611   :  { %10242 = vmatpush3.bf16.msra.mxu0 %v10199_v29 }
 0x612   :  { %10243 = vmatprep.subr.bf16.mxu0 %v11082_v57 }
 0x614   :  { %9341 = vmatmul.mubr.f32.vlgmr.msra.gmra.mrb[4].mxu0 %v11652_v11 }
 0x615   :  { %10245 = vmatpush3.bf16.msra.mxu0 %v11624_v25  ;;  %9351 = vmatprep.mubr.msk.f32.mxu0 %vm11083_vm4, %v12203_v12 }
 0x616   :  { %10246 = vmatprep.subr.bf16.mxu0 %v11082_v57 }
 0x619   :  { %10248 = vmatpush3.bf16.msra.mxu0 %v11629_v15 }
 0x61a   :  { %10249 = vmatprep.subr.bf16.mxu0 %v11082_v57 }
 0x61c   :  { %9352 = vmatmul.mubr.f32.vlgmr.msra.gmra.mrb[6].mxu0 %v12203_v12 }
 0x61d   :  { %10251 = vmatpush3.bf16.msra.mxu0 %v11635_v36  ;;  %9362 = vmatprep.mubr.msk.f32.mxu0 %vm11083_vm4, %v12203_v12 }
 0x61e   :  { %10252 = vmatprep.subr.bf16.mxu0 %v11082_v57 }
 0x621   :  { %10254 = vmatpush3.bf16.msra.mxu0 %v11637_v3 }
 0x622   :  { %10255 = vmatprep.subr.bf16.mxu0 %v11082_v57 }
 0x624   :  { %9363 = vmatmul.mubr.f32.vlgmr.msra.gmra.mrb[6].mxu0 %v12203_v12 }
 0x625   :  { %10257 = vmatpush3.bf16.msra.mxu0 %v11639_v4  ;;  %9373 = vmatprep.mubr.msk.f32.mxu0 %vm11083_vm4, %v12203_v12 }
 0x626   :  { %10258 = vmatprep.subr.bf16.mxu0 %v11082_v57 }
 0x629   :  { %10260 = vmatpush3.bf16.msra.mxu0 %v11641_v26 }
 0x62a   :  { %10261 = vmatprep.subr.bf16.mxu0 %v11082_v57 }
 0x62c   :  { %9374 = vmatmul.mubr.f32.vlgmr.msra.gmra.mrb[6].mxu0 %v12203_v12 }
 0x62d   :  { %10263 = vmatpush3.bf16.msra.mxu0 %v11624_v25  ;;  %9384 = vmatprep.mubr.msk.f32.mxu0 %vm11083_vm4, %v12203_v12 }
 0x62e   :  { %10264 = vmatprep.subr.bf16.mxu0 %v11082_v57 }
 0x631   :  { %10266 = vmatpush3.bf16.msra.mxu0 %v11629_v15 }
 0x632   :  { %10267 = vmatprep.subr.bf16.mxu0 %v11082_v57 }
 0x634   :  { %9385 = vmatmul.mubr.f32.vlgmr.msra.gmra.mrb[6].mxu0 %v12203_v12 }
 0x635   :  { %10269 = vmatpush3.bf16.msra.mxu0 %v11643_v27  ;;  %9395 = vmatprep.mubr.msk.f32.mxu0 %vm11083_vm4, %v12203_v12 }
 0x636   :  { %10270 = vmatprep.subr.bf16.mxu0 %v11082_v57 }
 0x639   :  { %10272 = vmatpush3.bf16.msra.mxu0 %v11645_v41 }
 0x63a   :  { %10273 = vmatprep.subr.bf16.mxu0 %v11082_v57 }
 0x63c   :  { %9396 = vmatmul.mubr.f32.vlgmr.msra.gmra.mrb[6].mxu0 %v12203_v12 }
 0x63d   :  { %10275 = vmatpush3.bf16.msra.mxu0 %v11624_v25  ;;  %9406 = vmatprep.mubr.msk.f32.mxu0 %vm11083_vm4, %v12203_v12 }
 0x63e   :  { %10276 = vmatprep.subr.bf16.mxu0 %v11082_v57 }
 0x641   :  { %10278 = vmatpush3.bf16.msra.mxu0 %v11629_v15 }
 0x642   :  { %10315 = vmatprep.subr.bf16.mxu0 %v11082_v57 }
 0x644   :  { %9407 = vmatmul.mubr.f32.vlgmr.msra.gmra.mrb[6].mxu0 %v12203_v12 }
 0x645   :  { %10317 = vmatpush3.bf16.msra.mxu0 %v11624_v25  ;;  %9483 = vmatprep.mubr.msk.f32.mxu0 %vm11083_vm4, %v12203_v12 }
 0x646   :  { %10318 = vmatprep.subr.bf16.mxu0 %v11082_v57 }
 0x649   :  { %10320 = vmatpush3.bf16.msra.mxu0 %v11629_v15 }
 0x64a   :  { %10321 = vmatprep.subr.bf16.mxu0 %v11082_v57 }
 0x6e7   :  { %v11713_v53 = vpop.f32.mrb[4].mxu0 }
 0x6e8   :  { %v11715_v50 = vpop.f32.mrb[5].mxu0 }
 0x6e9   :  { %v3249_v61 = vadd.f32 nan, %v11715_v50  ;;  %v3775_v1 = vrot.slane %v11715_v50, 2  ;;  %v4292_v39 = vrot.slane %v11715_v50, 4 }
 0x717   :  { %v3742_v44 = vpop.f32.mrb[6].mxu0 }
 0x718   :  { %v10633_v45 = vadd.f32 %v3742_v44, %v3249_v61  ;;  %v9408_v46 = vpop.f32.mrb[7].mxu0 }
 0x71a   :  { %v8598_v47 = vmul.f32 -1.442695, %v10633_v45 }
 0x71c   :  { %10850 = vpow2.f32 %v8598_v47 }
 0x726   :  { %v10851_v59 = vpop.eup %10850 }
 0x727   :  { %v3749_v60 = vadd.f32 1.0, %v10851_v59 }
 0x729   :  { %10852 = vrcp.f32 %v3749_v60 }
 0x733   :  { %v10853_v5 = vpop.eup %10852 }
 0x734   :  { %v3752_v11 = vmul.f32 2.0, %v10853_v5  ;;  %v3754_v48 = vmul.f32 0.0, %v10853_v5 }
 0x736   :  { %v8599_v7 = vadd.f32 -1.0, %v3752_v11 }
 0x738   :  { %3756 = vrot.lane.b32.xlu1 %v8599_v7, %s11077_s30 }
 0x7aa   :  { %v3757_v16 = vpop.permute.xlu1 %3756 }
 0x7ab   :  { %v3759_v8 = vmul.f32 %v10853_v5, %v3757_v16 }
 0x7ad   :  { %3761 = vrot.lane.b32.xlu0 %v3759_v8, %s11080_s6 }
 0x81f   :  { %v3762_v9 = vpop.permute.xlu0 %3761 }
 0x820   :  { %v11720_v10 = vadd.f32 %v3762_v9, %v3754_v48 }
 0x822   :  { %10854 = vtanh.f32 %v11720_v10 }
 0x82c   :  { %v10855_v23 = vpop.eup %10854 }
 0x82d   :  { %3767 = vrot.lane.b32.xlu1 %v10855_v23, %s11077_s30 }
 0x89f   :  { %v3768_v28 = vpop.permute.xlu1 %3767 }
 0x8a0   :  { %v11724_v63 = vmul.f32 %v10853_v5, %v3768_v28 }
 0x8a2   :  { %3772 = vrot.lane.b32.xlu0 %v11724_v63, %s11080_s6 }
 0x914   :  { %v3773_v13 = vpop.permute.xlu0 %3772 }
 0x915   :  { %v3777_v30 = vsel %vm156_vm0, %v3773_v13, 0 }
 0x916   :  { %v3848_v31 = vand.u32 4294901760, %v3777_v30 }
 0x918   :  { %v3849_v35 = vsub.f32 %v3777_v30, %v3848_v31 }
 0x91a   :  { %v3850_v43 = vand.u32 4294901760, %v3849_v35 }
 0x91c   :  { %v3851_v62 = vsub.f32 %v3849_v35, %v3850_v43 }
 0x91e   :  { %v3852_v0 = vand.u32 4294901760, %v3851_v62 }
 0x920   :  { %9418 = vmatmul.mubr.f32.vlgmr.msra.gmra.mrb[10].mxu1 %v3852_v0 }
 0x921   :  { %10287 = vmatpush3.bf16.msra.mxu1 %v11635_v36  ;;  %9428 = vmatprep.mubr.msk.f32.mxu1 %vm11083_vm4, %v12203_v12 }
 0x922   :  { %10288 = vmatprep.subr.bf16.mxu1 %v11082_v57 }
 0x925   :  { %10290 = vmatpush3.bf16.msra.mxu1 %v11637_v3 }
 0x926   :  { %10291 = vmatprep.subr.bf16.mxu1 %v11082_v57 }
 0x928   :  { %9429 = vmatmul.mubr.f32.vlgmr.msra.gmra.mrb[10].mxu1 %v3848_v31 }
 0x929   :  { %10293 = vmatpush3.bf16.msra.mxu1 %v11639_v4  ;;  %9439 = vmatprep.mubr.msk.f32.mxu1 %vm11083_vm4, %v12203_v12 }
 0x92a   :  { %10294 = vmatprep.subr.bf16.mxu1 %v11082_v57 }
 0x92d   :  { %10296 = vmatpush3.bf16.msra.mxu1 %v11641_v26 }
 0x92e   :  { %10297 = vmatprep.subr.bf16.mxu1 %v11082_v57 }
 0x930   :  { %9440 = vmatmul.mubr.f32.vlgmr.msra.gmra.mrb[10].mxu1 %v3849_v35 }
 0x931   :  { %10299 = vmatpush3.bf16.msra.mxu1 %v11624_v25  ;;  %9450 = vmatprep.mubr.msk.f32.mxu1 %vm11083_vm4, %v12203_v12 }
 0x932   :  { %10300 = vmatprep.subr.bf16.mxu1 %v11082_v57 }
 0x935   :  { %10302 = vmatpush3.bf16.msra.mxu1 %v11629_v15 }
 0x936   :  { %10303 = vmatprep.subr.bf16.mxu1 %v11082_v57 }
 0x938   :  { %9451 = vmatmul.mubr.f32.vlgmr.msra.gmra.mrb[10].mxu1 %v3850_v43 }
 0x939   :  { %10305 = vmatpush3.bf16.msra.mxu1 %v11643_v27  ;;  %9461 = vmatprep.mubr.msk.f32.mxu1 %vm11083_vm4, %v12203_v12 }
 0x93a   :  { %10306 = vmatprep.subr.bf16.mxu1 %v11082_v57 }
 0x93d   :  { %10308 = vmatpush3.bf16.msra.mxu1 %v11645_v41 }
 0x93e   :  { %10309 = vmatprep.subr.bf16.mxu1 %v11082_v57 }
 0x940   :  { %9462 = vmatmul.mubr.f32.vlgmr.msra.gmra.mrb[10].mxu1 %v3848_v31 }
 0x941   :  { %10311 = vmatpush3.bf16.msra.mxu1 %v11624_v25  ;;  %9472 = vmatprep.mubr.msk.f32.mxu1 %vm11083_vm4, %v12203_v12 }
 0x942   :  { %10312 = vmatprep.subr.bf16.mxu1 %v11082_v57 }
 0x945   :  { %10314 = vmatpush3.bf16.msra.mxu1 %v11629_v15 }
 0x946   :  { %10351 = vmatprep.subr.bf16.mxu1 %v11082_v57 }
 0x948   :  { %9473 = vmatmul.mubr.f32.vlgmr.msra.gmra.mrb[10].mxu1 %v3848_v31 }
 0x949   :  { %10353 = vmatpush3.bf16.msra.mxu1 %v11624_v25  ;;  %9549 = vmatprep.mubr.msk.f32.mxu1 %vm11083_vm4, %v12203_v12 }
 0x94a   :  { %10354 = vmatprep.subr.bf16.mxu1 %v11082_v57 }
 0x94d   :  { %10356 = vmatpush3.bf16.msra.mxu1 %v11629_v15 }
 0x94e   :  { %10357 = vmatprep.subr.bf16.mxu1 %v11082_v57 }
 0xa1b   :  { %v4260_v14 = vpop.f32.mrb[10].mxu1 }
 0xa1c   :  { %v10634_v19 = vadd.f32 %v4260_v14, %v3775_v1  ;;  %v9474_v20 = vpop.f32.mrb[11].mxu1 }
 0xa1e   :  { %v8600_v6 = vmul.f32 -1.442695, %v10634_v19 }
 0xa20   :  { %10856 = vpow2.f32 %v8600_v6  ;;  %v4809_v6 = vrot.slane %v11715_v50, 6 }
 0xa2a   :  { %v10857_v24 = vpop.eup %10856 }
 0xa2b   :  { %v4267_v29 = vadd.f32 1.0, %v10857_v24 }
 0xa2d   :  { %10858 = vrcp.f32 %v4267_v29 }
 0xa37   :  { %v10859_v32 = vpop.eup %10858 }
 0xa38   :  { %v4270_v33 = vmul.f32 2.0, %v10859_v32  ;;  %v4272_v58 = vmul.f32 %v10859_v32, %v11720_v10 }
 0xa3a   :  { %v8601_v34 = vadd.f32 -1.0, %v4270_v33 }
 0xa3c   :  { %4274 = vrot.lane.b32.xlu1 %v8601_v34, %s11077_s30 }
 0xaae   :  { %v4275_v37 = vpop.permute.xlu1 %4274 }
 0xaaf   :  { %v4277_v40 = vmul.f32 %v10859_v32, %v4275_v37 }
 0xab1   :  { %4279 = vrot.lane.b32.xlu0 %v4277_v40, %s11080_s6 }
 0xb23   :  { %v4280_v2 = vpop.permute.xlu0 %4279 }
 0xb24   :  { %v11769_v42 = vadd.f32 %v4280_v2, %v4272_v58 }
 0xb26   :  { %10860 = vtanh.f32 %v11769_v42 }
 0xb30   :  { %v10861_v51 = vpop.eup %10860 }
 0xb31   :  { %4285 = vrot.lane.b32.xlu1 %v10861_v51, %s11077_s30 }
 0xba3   :  { %v4286_v17 = vpop.permute.xlu1 %4285 }
 0xba4   :  { %v11773_v52 = vmul.f32 %v10859_v32, %v4286_v17 }
 0xba6   :  { %4290 = vrot.lane.b32.xlu0 %v11773_v52, %s11080_s6  ;;  %v7390_v23 = vrot.slane %v11773_v52, 6 }
 0xba8   :  { %v7404_v31 = vsel %vm7403_vm5, %v11724_v63, %v7390_v23 }
 0xc18   :  { %v4291_v54 = vpop.permute.xlu0 %4290 }
 0xc19   :  { %v4294_v55 = vsel %vm156_vm0, %v4291_v54, 0 }
 0xc1a   :  { %v4365_v56 = vand.u32 4294901760, %v4294_v55 }
 0xc1c   :  { %v4366_v18 = vsub.f32 %v4294_v55, %v4365_v56 }
 0xc1e   :  { %v4367_v21 = vand.u32 4294901760, %v4366_v18 }
 0xc20   :  { %v4368_v22 = vsub.f32 %v4366_v18, %v4367_v21 }
 0xc22   :  { %v4369_v38 = vand.u32 4294901760, %v4368_v22  ;;  %v7419_v22 = vrot.slane %v11773_v52, 4 }
 0xc24   :  { %9484 = vmatmul.mubr.f32.vlgmr.msra.gmra.mrb[8].mxu0 %v4369_v38 }
 0xc25   :  { %10323 = vmatpush3.bf16.msra.mxu0 %v11635_v36  ;;  %9494 = vmatprep.mubr.msk.f32.mxu0 %vm11083_vm4, %v12203_v12 }
 0xc26   :  { %10324 = vmatprep.subr.bf16.mxu0 %v11082_v57 }
 0xc29   :  { %10326 = vmatpush3.bf16.msra.mxu0 %v11637_v3 }
 0xc2a   :  { %10327 = vmatprep.subr.bf16.mxu0 %v11082_v57 }
 0xc2c   :  { %9495 = vmatmul.mubr.f32.vlgmr.msra.gmra.mrb[8].mxu0 %v4365_v56 }
 0xc2d   :  { %10329 = vmatpush3.bf16.msra.mxu0 %v11639_v4  ;;  %9505 = vmatprep.mubr.msk.f32.mxu0 %vm11083_vm4, %v12203_v12 }
 0xc2e   :  { %10330 = vmatprep.subr.bf16.mxu0 %v11082_v57 }
 0xc31   :  { %10332 = vmatpush3.bf16.msra.mxu0 %v11641_v26 }
 0xc32   :  { %10333 = vmatprep.subr.bf16.mxu0 %v11082_v57 }
 0xc34   :  { %9506 = vmatmul.mubr.f32.vlgmr.msra.gmra.mrb[8].mxu0 %v4366_v18 }
 0xc35   :  { %10335 = vmatpush3.bf16.msra.mxu0 %v11624_v25  ;;  %9516 = vmatprep.mubr.msk.f32.mxu0 %vm11083_vm4, %v12203_v12 }
 0xc36   :  { %10336 = vmatprep.subr.bf16.mxu0 %v11082_v57 }
 0xc39   :  { %10338 = vmatpush3.bf16.msra.mxu0 %v11629_v15 }
 0xc3a   :  { %10339 = vmatprep.subr.bf16.mxu0 %v11082_v57 }
 0xc3c   :  { %9517 = vmatmul.mubr.f32.vlgmr.msra.gmra.mrb[8].mxu0 %v4367_v21 }
 0xc3d   :  { %10341 = vmatpush3.bf16.msra.mxu0 %v11643_v27  ;;  %9527 = vmatprep.mubr.msk.f32.mxu0 %vm11083_vm4, %v12203_v12 }
 0xc3e   :  { %10342 = vmatprep.subr.bf16.mxu0 %v11082_v57 }
 0xc41   :  { %10344 = vmatpush3.bf16.msra.mxu0 %v11645_v41 }
 0xc42   :  { %10345 = vmatprep.subr.bf16.mxu0 %v11082_v57 }
 0xc44   :  { %9528 = vmatmul.mubr.f32.vlgmr.msra.gmra.mrb[8].mxu0 %v4365_v56 }
 0xc45   :  { %10347 = vmatpush3.bf16.msra.mxu0 %v11624_v25  ;;  %9538 = vmatprep.mubr.msk.f32.mxu0 %vm11083_vm4, %v12203_v12 }
 0xc46   :  { %10348 = vmatprep.subr.bf16.mxu0 %v11082_v57 }
 0xc49   :  { %10350 = vmatpush3.bf16.msra.mxu0 %v11629_v15 }
 0xc4a   :  { %10387 = vmatprep.subr.bf16.mxu0 %v11082_v57 }
 0xc4c   :  { %9539 = vmatmul.mubr.f32.vlgmr.msra.gmra.mrb[8].mxu0 %v4365_v56 }
 0xc4d   :  { %10389 = vmatpush3.bf16.msra.mxu0 %v11624_v25  ;;  %9615 = vmatprep.mubr.msk.f32.mxu0 %vm11083_vm4, %v12203_v12 }
 0xc4e   :  { %10390 = vmatprep.subr.bf16.mxu0 %v11082_v57 }
 0xc51   :  { %10392 = vmatpush3.bf16.msra.mxu0 %v11629_v15 }
 0xc52   :  { %10393 = vmatprep.subr.bf16.mxu0 %v11082_v57 }
 0xd1f   :  { %v4777_v61 = vpop.f32.mrb[8].mxu0 }
 0xd20   :  { %v10635_v44 = vadd.f32 %v4777_v61, %v4292_v39  ;;  %v9540_v45 = vpop.f32.mrb[9].mxu0 }
 0xd22   :  { %v8602_v46 = vmul.f32 -1.442695, %v10635_v44 }
 0xd24   :  { %10862 = vpow2.f32 %v8602_v46 }
 0xd2e   :  { %v10863_v47 = vpop.eup %10862 }
 0xd2f   :  { %v4784_v59 = vadd.f32 1.0, %v10863_v47 }
 0xd31   :  { %10864 = vrcp.f32 %v4784_v59 }
 0xd3b   :  { %v10865_v60 = vpop.eup %10864 }
 0xd3c   :  { %v4787_v5 = vmul.f32 2.0, %v10865_v60  ;;  %v4789_v8 = vmul.f32 %v10865_v60, %v11769_v42 }
 0xd3e   :  { %v8603_v11 = vadd.f32 -1.0, %v4787_v5 }
 0xd40   :  { %4791 = vrot.lane.b32.xlu1 %v8603_v11, %s11077_s30  ;;  %v3255_v11 = vadd.f32 nan, %v11713_v53 }
 0xdb2   :  { %v4792_v7 = vpop.permute.xlu1 %4791 }
 0xdb3   :  { %v4794_v16 = vmul.f32 %v10865_v60, %v4792_v7 }
 0xdb5   :  { %4796 = vrot.lane.b32.xlu0 %v4794_v16, %s11080_s6 }
 0xe27   :  { %v4797_v48 = vpop.permute.xlu0 %4796 }
 0xe28   :  { %v11818_v9 = vadd.f32 %v4797_v48, %v4789_v8 }
 0xe2a   :  { %10866 = vtanh.f32 %v11818_v9 }
 0xe34   :  { %v10867_v10 = vpop.eup %10866 }
 0xe35   :  { %4802 = vrot.lane.b32.xlu1 %v10867_v10, %s11077_s30 }
 0xea7   :  { %v4803_v28 = vpop.permute.xlu1 %4802 }
 0xea8   :  { %v11823_v13 = vmul.f32 %v10865_v60, %v4803_v28 }
 0xeaa   :  { %v7392_v30 = vrot.slane %v11823_v13, 4  ;;  %4807 = vrot.lane.b32.xlu0 %v11823_v13, %s11080_s6  ;;  %v7417_v18 = vrot.slane %v11823_v13, 6 }
 0xeac   :  { %v11831_v35 = vsel %vm1358_vm1, %v7404_v31, %v7392_v30 }
 0xf1c   :  { %v4808_v43 = vpop.permute.xlu0 %4807 }
 0xf1d   :  { %v4811_v62 = vsel %vm156_vm0, %v4808_v43, 0 }
 0xf1e   :  { %v4882_v0 = vand.u32 4294901760, %v4811_v62 }
 0xf20   :  { %v4883_v1 = vsub.f32 %v4811_v62, %v4882_v0 }
 0xf22   :  { %v4884_v14 = vand.u32 4294901760, %v4883_v1 }
 0xf24   :  { %v4885_v19 = vsub.f32 %v4883_v1, %v4884_v14 }
 0xf26   :  { %v4886_v20 = vand.u32 4294901760, %v4885_v19 }
 0xf28   :  { %9550 = vmatmul.mubr.f32.vlgmr.msra.gmra.mrb[12].mxu1 %v4886_v20 }
 0xf29   :  { %10359 = vmatpush3.bf16.msra.mxu1 %v11635_v36  ;;  %9560 = vmatprep.mubr.msk.f32.mxu1 %vm11083_vm4, %v12203_v12 }
 0xf2a   :  { %10360 = vmatprep.subr.bf16.mxu1 %v11082_v57 }
 0xf2d   :  { %10362 = vmatpush3.bf16.msra.mxu1 %v11637_v3 }
 0xf2e   :  { %10363 = vmatprep.subr.bf16.mxu1 %v11082_v57 }
 0xf30   :  { %9561 = vmatmul.mubr.f32.vlgmr.msra.gmra.mrb[12].mxu1 %v4882_v0 }
 0xf31   :  { %10365 = vmatpush3.bf16.msra.mxu1 %v11639_v4  ;;  %9571 = vmatprep.mubr.msk.f32.mxu1 %vm11083_vm4, %v12203_v12 }
 0xf32   :  { %10366 = vmatprep.subr.bf16.mxu1 %v11082_v57 }
 0xf35   :  { %10368 = vmatpush3.bf16.msra.mxu1 %v11641_v26 }
 0xf36   :  { %10369 = vmatprep.subr.bf16.mxu1 %v11082_v57 }
 0xf38   :  { %9572 = vmatmul.mubr.f32.vlgmr.msra.gmra.mrb[12].mxu1 %v4883_v1 }
 0xf39   :  { %10371 = vmatpush3.bf16.msra.mxu1 %v11624_v25  ;;  %9582 = vmatprep.mubr.msk.f32.mxu1 %vm11083_vm4, %v12203_v12 }
 0xf3a   :  { %10372 = vmatprep.subr.bf16.mxu1 %v11082_v57 }
 0xf3d   :  { %10374 = vmatpush3.bf16.msra.mxu1 %v11629_v15 }
 0xf3e   :  { %10375 = vmatprep.subr.bf16.mxu1 %v11082_v57 }
 0xf40   :  { %9583 = vmatmul.mubr.f32.vlgmr.msra.gmra.mrb[12].mxu1 %v4884_v14 }
 0xf41   :  { %10377 = vmatpush3.bf16.msra.mxu1 %v11643_v27  ;;  %9593 = vmatprep.mubr.msk.f32.mxu1 %vm11083_vm4, %v12203_v12 }
 0xf42   :  { %10378 = vmatprep.subr.bf16.mxu1 %v11082_v57 }
 0xf45   :  { %10380 = vmatpush3.bf16.msra.mxu1 %v11645_v41 }
 0xf46   :  { %10381 = vmatprep.subr.bf16.mxu1 %v11082_v57 }
 0xf48   :  { %9594 = vmatmul.mubr.f32.vlgmr.msra.gmra.mrb[12].mxu1 %v4882_v0 }
 0xf49   :  { %10383 = vmatpush3.bf16.msra.mxu1 %v11624_v25  ;;  %9604 = vmatprep.mubr.msk.f32.mxu1 %vm11083_vm4, %v12203_v12 }
 0xf4a   :  { %10384 = vmatprep.subr.bf16.mxu1 %v11082_v57 }
 0xf4d   :  { %10386 = vmatpush3.bf16.msra.mxu1 %v11629_v15 }
 0xf4e   :  { %10423 = vmatprep.subr.bf16.mxu1 %v11082_v57 }
 0xf50   :  { %9605 = vmatmul.mubr.f32.vlgmr.msra.gmra.mrb[12].mxu1 %v4882_v0 }
 0xf51   :  { %10425 = vmatpush3.bf16.msra.mxu1 %v11624_v25  ;;  %9681 = vmatprep.mubr.msk.f32.mxu1 %vm11083_vm4, %v12203_v12 }
 0xf52   :  { %10426 = vmatprep.subr.bf16.mxu1 %v11082_v57 }
 0xf55   :  { %10428 = vmatpush3.bf16.msra.mxu1 %v11629_v15 }
 0xf56   :  { %10429 = vmatprep.subr.bf16.mxu1 %v11082_v57 }
0x1023   :  { %v5294_v24 = vpop.f32.mrb[12].mxu1 }
0x1024   :  { %v10636_v29 = vadd.f32 %v5294_v24, %v4809_v6  ;;  %v9606_v32 = vpop.f32.mrb[13].mxu1 }
0x1026   :  { %v8604_v33 = vmul.f32 -1.442695, %v10636_v29 }
0x1028   :  { %10868 = vpow2.f32 %v8604_v33 }
0x1032   :  { %v10869_v34 = vpop.eup %10868 }
0x1033   :  { %v5301_v37 = vadd.f32 1.0, %v10869_v34  ;;  %v5842_v34 = vrot.slane %v11713_v53, 2 }
0x1035   :  { %10870 = vrcp.f32 %v5301_v37 }
0x103f   :  { %v10871_v40 = vpop.eup %10870 }
0x1040   :  { %v5304_v58 = vmul.f32 2.0, %v10871_v40  ;;  %v5306_v17 = vmul.f32 %v10871_v40, %v11818_v9 }
0x1042   :  { %v8605_v2 = vadd.f32 -1.0, %v5304_v58 }
0x1044   :  { %5308 = vrot.lane.b32.xlu1 %v8605_v2, %s11077_s30 }
0x10b6   :  { %v5309_v42 = vpop.permute.xlu1 %5308 }
0x10b7   :  { %v5311_v51 = vmul.f32 %v10871_v40, %v5309_v42 }
0x10b9   :  { %5313 = vrot.lane.b32.xlu0 %v5311_v51, %s11080_s6 }
0x112b   :  { %v5314_v50 = vpop.permute.xlu0 %5313 }
0x112c   :  { %v11874_v54 = vadd.f32 %v5314_v50, %v5306_v17 }
0x112e   :  { %10872 = vtanh.f32 %v11874_v54 }
0x1138   :  { %v10873_v55 = vpop.eup %10872 }
0x1139   :  { %5319 = vrot.lane.b32.xlu1 %v10873_v55, %s11077_s30 }
0x11ab   :  { %v5320_v56 = vpop.permute.xlu1 %5319 }
0x11ac   :  { %v5322_v21 = vmul.f32 %v10871_v40, %v5320_v56 }
0x11ae   :  { %v7394_v38 = vrot.slane %v5322_v21, 2  ;;  %v7426_v39 = vsel %vm7403_vm5, %v5322_v21, %v7417_v18  ;;  %5324 = vrot.lane.b32.xlu0 %v5322_v21, %s11080_s6 }
0x11af   :  { %v11883_v61 = vsel %vm1358_vm1, %v7426_v39, %v7419_v22 }
0x11b0   :  { %v11887_v44 = vsel %vm7406_vm6, %v11831_v35, %v7394_v38 }
0x1220   :  { %v5325_v45 = vpop.permute.xlu0 %5324 }
0x1221   :  { %v5326_v46 = vsel %vm156_vm0, %v5325_v45, 0 }
0x1222   :  { %v5397_v47 = vand.u32 4294901760, %v5326_v46 }
0x1224   :  { %v5398_v59 = vsub.f32 %v5326_v46, %v5397_v47 }
0x1226   :  { %v5399_v60 = vand.u32 4294901760, %v5398_v59 }
0x1228   :  { %v5400_v52 = vsub.f32 %v5398_v59, %v5399_v60 }
0x122a   :  { %v5401_v5 = vand.u32 4294901760, %v5400_v52 }
0x122c   :  { %9616 = vmatmul.mubr.f32.vlgmr.msra.gmra.mrb[10].mxu0 %v5401_v5 }
0x122d   :  { %10395 = vmatpush3.bf16.msra.mxu0 %v11635_v36  ;;  %9626 = vmatprep.mubr.msk.f32.mxu0 %vm11083_vm4, %v12203_v12 }
0x122e   :  { %10396 = vmatprep.subr.bf16.mxu0 %v11082_v57 }
0x1231   :  { %10398 = vmatpush3.bf16.msra.mxu0 %v11637_v3 }
0x1232   :  { %10399 = vmatprep.subr.bf16.mxu0 %v11082_v57 }
0x1234   :  { %9627 = vmatmul.mubr.f32.vlgmr.msra.gmra.mrb[10].mxu0 %v5397_v47 }
0x1235   :  { %10401 = vmatpush3.bf16.msra.mxu0 %v11639_v4  ;;  %9637 = vmatprep.mubr.msk.f32.mxu0 %vm11083_vm4, %v12203_v12 }
0x1236   :  { %10402 = vmatprep.subr.bf16.mxu0 %v11082_v57 }
0x1239   :  { %10404 = vmatpush3.bf16.msra.mxu0 %v11641_v26 }
0x123a   :  { %10405 = vmatprep.subr.bf16.mxu0 %v11082_v57 }
0x123c   :  { %9638 = vmatmul.mubr.f32.vlgmr.msra.gmra.mrb[10].mxu0 %v5398_v59 }
0x123d   :  { %10407 = vmatpush3.bf16.msra.mxu0 %v11624_v25  ;;  %9648 = vmatprep.mubr.msk.f32.mxu0 %vm11083_vm4, %v12203_v12 }
0x123e   :  { %10408 = vmatprep.subr.bf16.mxu0 %v11082_v57 }
0x1241   :  { %10410 = vmatpush3.bf16.msra.mxu0 %v11629_v15 }
0x1242   :  { %10411 = vmatprep.subr.bf16.mxu0 %v11082_v57 }
0x1244   :  { %9649 = vmatmul.mubr.f32.vlgmr.msra.gmra.mrb[10].mxu0 %v5399_v60 }
0x1245   :  { %10413 = vmatpush3.bf16.msra.mxu0 %v11643_v27  ;;  %9659 = vmatprep.mubr.msk.f32.mxu0 %vm11083_vm4, %v12203_v12 }
0x1246   :  { %10414 = vmatprep.subr.bf16.mxu0 %v11082_v57 }
0x1249   :  { %10416 = vmatpush3.bf16.msra.mxu0 %v11645_v41 }
0x124a   :  { %10417 = vmatprep.subr.bf16.mxu0 %v11082_v57 }
0x124c   :  { %9660 = vmatmul.mubr.f32.vlgmr.msra.gmra.mrb[10].mxu0 %v5397_v47 }
0x124d   :  { %10419 = vmatpush3.bf16.msra.mxu0 %v11624_v25  ;;  %9670 = vmatprep.mubr.msk.f32.mxu0 %vm11083_vm4, %v12203_v12 }
0x124e   :  { %10420 = vmatprep.subr.bf16.mxu0 %v11082_v57 }
0x1251   :  { %10422 = vmatpush3.bf16.msra.mxu0 %v11629_v15 }
0x1252   :  { %10459 = vmatprep.subr.bf16.mxu0 %v11082_v57 }
0x1254   :  { %9671 = vmatmul.mubr.f32.vlgmr.msra.gmra.mrb[10].mxu0 %v5397_v47 }
0x1255   :  { %10461 = vmatpush3.bf16.msra.mxu0 %v11624_v25  ;;  %9747 = vmatprep.mubr.msk.f32.mxu0 %vm11083_vm4, %v12203_v12 }
0x1256   :  { %10462 = vmatprep.subr.bf16.mxu0 %v11082_v57 }
0x1259   :  { %10464 = vmatpush3.bf16.msra.mxu0 %v11629_v15 }
0x125a   :  { %10465 = vmatprep.subr.bf16.mxu0 %v11082_v57 }
0x1327   :  { %v5809_v7 = vpop.f32.mrb[10].mxu0 }
0x1328   :  { %v10637_v16 = vadd.f32 %v5809_v7, %v3255_v11  ;;  %v9672_v8 = vpop.f32.mrb[11].mxu0  ;;  %v6359_v7 = vrot.slane %v11713_v53, 4 }
0x132a   :  { %v8606_v48 = vmul.f32 -1.442695, %v10637_v16 }
0x132c   :  { %10874 = vpow2.f32 %v8606_v48 }
0x1336   :  { %v10875_v9 = vpop.eup %10874 }
0x1337   :  { %v5816_v10 = vadd.f32 1.0, %v10875_v9 }
0x1339   :  { %10876 = vrcp.f32 %v5816_v10 }
0x1343   :  { %v10877_v23 = vpop.eup %10876 }
0x1344   :  { %v5819_v28 = vmul.f32 2.0, %v10877_v23  ;;  %v5821_v35 = vmul.f32 %v10877_v23, %v11874_v54 }
0x1346   :  { %v8607_v13 = vadd.f32 -1.0, %v5819_v28 }
0x1348   :  { %5823 = vrot.lane.b32.xlu1 %v8607_v13, %s11077_s30 }
0x13ba   :  { %v5824_v30 = vpop.permute.xlu1 %5823 }
0x13bb   :  { %v5826_v31 = vmul.f32 %v10877_v23, %v5824_v30 }
0x13bd   :  { %5828 = vrot.lane.b32.xlu0 %v5826_v31, %s11080_s6 }
0x142f   :  { %v5829_v43 = vpop.permute.xlu0 %5828 }
0x1430   :  { %v11930_v62 = vadd.f32 %v5829_v43, %v5821_v35 }
0x1432   :  { %10878 = vtanh.f32 %v11930_v62 }
0x143c   :  { %v10879_v0 = vpop.eup %10878 }
0x143d   :  { %5834 = vrot.lane.b32.xlu1 %v10879_v0, %s11077_s30 }
0x14af   :  { %v5835_v1 = vpop.permute.xlu1 %5834 }
0x14b0   :  { %v11934_v14 = vmul.f32 %v10877_v23, %v5835_v1 }
0x14b2   :  { %5839 = vrot.lane.b32.xlu0 %v11934_v14, %s11080_s6 }
0x1524   :  { %v5840_v19 = vpop.permute.xlu0 %5839 }
0x1525   :  { %v5844_v20 = vsel %vm156_vm0, %v5840_v19, 0 }
0x1526   :  { %v5915_v6 = vand.u32 4294901760, %v5844_v20 }
0x1528   :  { %v5916_v24 = vsub.f32 %v5844_v20, %v5915_v6 }
0x152a   :  { %v5917_v29 = vand.u32 4294901760, %v5916_v24 }
0x152c   :  { %v5918_v32 = vsub.f32 %v5916_v24, %v5917_v29 }
0x152e   :  { %v5919_v33 = vand.u32 4294901760, %v5918_v32 }
0x1530   :  { %9682 = vmatmul.mubr.f32.vlgmr.msra.gmra.mrb[14].mxu1 %v5919_v33 }
0x1531   :  { %10431 = vmatpush3.bf16.msra.mxu1 %v11635_v36  ;;  %9692 = vmatprep.mubr.msk.f32.mxu1 %vm11083_vm4, %v12203_v12 }
0x1532   :  { %10432 = vmatprep.subr.bf16.mxu1 %v11082_v57 }
0x1535   :  { %10434 = vmatpush3.bf16.msra.mxu1 %v11637_v3 }
0x1536   :  { %10435 = vmatprep.subr.bf16.mxu1 %v11082_v57 }
0x1538   :  { %9693 = vmatmul.mubr.f32.vlgmr.msra.gmra.mrb[14].mxu1 %v5915_v6 }
0x1539   :  { %10437 = vmatpush3.bf16.msra.mxu1 %v11639_v4  ;;  %9703 = vmatprep.mubr.msk.f32.mxu1 %vm11083_vm4, %v12203_v12 }
0x153a   :  { %10438 = vmatprep.subr.bf16.mxu1 %v11082_v57 }
0x153d   :  { %10440 = vmatpush3.bf16.msra.mxu1 %v11641_v26 }
0x153e   :  { %10441 = vmatprep.subr.bf16.mxu1 %v11082_v57 }
0x1540   :  { %9704 = vmatmul.mubr.f32.vlgmr.msra.gmra.mrb[14].mxu1 %v5916_v24 }
0x1541   :  { %10443 = vmatpush3.bf16.msra.mxu1 %v11624_v25  ;;  %9714 = vmatprep.mubr.msk.f32.mxu1 %vm11083_vm4, %v12203_v12 }
0x1542   :  { %10444 = vmatprep.subr.bf16.mxu1 %v11082_v57 }
0x1545   :  { %10446 = vmatpush3.bf16.msra.mxu1 %v11629_v15 }
0x1546   :  { %10447 = vmatprep.subr.bf16.mxu1 %v11082_v57 }
0x1548   :  { %9715 = vmatmul.mubr.f32.vlgmr.msra.gmra.mrb[14].mxu1 %v5917_v29 }
0x1549   :  { %10449 = vmatpush3.bf16.msra.mxu1 %v11643_v27  ;;  %9725 = vmatprep.mubr.msk.f32.mxu1 %vm11083_vm4, %v12203_v12 }
0x154a   :  { %10450 = vmatprep.subr.bf16.mxu1 %v11082_v57 }
0x154d   :  { %10452 = vmatpush3.bf16.msra.mxu1 %v11645_v41 }
0x154e   :  { %10453 = vmatprep.subr.bf16.mxu1 %v11082_v57 }
0x1550   :  { %9726 = vmatmul.mubr.f32.vlgmr.msra.gmra.mrb[14].mxu1 %v5915_v6 }
0x1551   :  { %10455 = vmatpush3.bf16.msra.mxu1 %v11624_v25  ;;  %9736 = vmatprep.mubr.msk.f32.mxu1 %vm11083_vm4, %v12203_v12 }
0x1552   :  { %10456 = vmatprep.subr.bf16.mxu1 %v11082_v57 }
0x1555   :  { %10458 = vmatpush3.bf16.msra.mxu1 %v11629_v15 }
0x1556   :  { %10495 = vmatprep.subr.bf16.mxu1 %v11082_v57 }
0x1558   :  { %9737 = vmatmul.mubr.f32.vlgmr.msra.gmra.mrb[14].mxu1 %v5915_v6 }
0x1559   :  { %10497 = vmatpush3.bf16.msra.mxu1 %v11624_v25  ;;  %9813 = vmatprep.mubr.msk.f32.mxu1 %vm11083_vm4, %v12203_v12 }
0x155a   :  { %10498 = vmatprep.subr.bf16.mxu1 %v11082_v57 }
0x155d   :  { %10500 = vmatpush3.bf16.msra.mxu1 %v11629_v15 }
0x155e   :  { %10501 = vmatprep.subr.bf16.mxu1 %v11082_v57 }
0x162b   :  { %v6327_v37 = vpop.f32.mrb[14].mxu1 }
0x162c   :  { %v10638_v40 = vadd.f32 %v6327_v37, %v5842_v34  ;;  %v9738_v58 = vpop.f32.mrb[15].mxu1 }
0x162e   :  { %v8608_v2 = vmul.f32 -1.442695, %v10638_v40 }
0x1630   :  { %10880 = vpow2.f32 %v8608_v2 }
0x163a   :  { %v10881_v42 = vpop.eup %10880 }
0x163b   :  { %v6334_v51 = vadd.f32 1.0, %v10881_v42 }
0x163d   :  { %10882 = vrcp.f32 %v6334_v51 }
0x1647   :  { %v10883_v17 = vpop.eup %10882 }
0x1648   :  { %v6337_v50 = vmul.f32 2.0, %v10883_v17  ;;  %v6339_v18 = vmul.f32 %v10883_v17, %v11930_v62 }
0x164a   :  { %v8609_v54 = vadd.f32 -1.0, %v6337_v50 }
0x164c   :  { %6341 = vrot.lane.b32.xlu1 %v8609_v54, %s11077_s30 }
0x16be   :  { %v6342_v55 = vpop.permute.xlu1 %6341 }
0x16bf   :  { %v6344_v56 = vmul.f32 %v10883_v17, %v6342_v55 }
0x16c1   :  { %6346 = vrot.lane.b32.xlu0 %v6344_v56, %s11080_s6  ;;  %v7421_v56 = vrot.slane %v11724_v63, 2  ;;  %v7435_v63 = vld [vmem:[%s12198_s12 + $0x10] sm:$0xff] }
0x1733   :  { %v6347_v21 = vpop.permute.xlu0 %6346 }
0x1734   :  { %v6349_v22 = vadd.f32 %v6347_v21, %v6339_v18  ;;  %v7428_v18 = vsel %vm7406_vm6, %v11883_v61, %v7421_v56  ;;  %v7433_v21 = vld [vmem:[%s12198_s12] sm:$0xff]  ;;  %v7436_v61 = vld [vmem:[%s12198_s12 + $0x18] sm:$0xff] }
0x1736   :  { %10884 = vtanh.f32 %v6349_v22 }
0x1740   :  { %v10885_v38 = vpop.eup %10884 }
0x1741   :  { %6352 = vrot.lane.b32.xlu1 %v10885_v38, %s11077_s30  ;;  %v7448_v38 = vand.u32 4294901760, %v7433_v21 }
0x17b3   :  { %v6353_v39 = vpop.permute.xlu1 %6352 }
0x17b4   :  { %v11980_v45 = vmul.f32 %v10883_v17, %v6353_v39 }
0x17b6   :  { %6357 = vrot.lane.b32.xlu0 %v11980_v45, %s11080_s6  ;;  %v7396_v19 = vrot.slane %v11980_v45, 6 }
0x17b8   :  { %v7408_v29 = vsel %vm7403_vm5, %v11934_v14, %v7396_v19 }
0x1828   :  { %v6358_v46 = vpop.permute.xlu0 %6357 }
0x1829   :  { %v6361_v47 = vsel %vm156_vm0, %v6358_v46, 0 }
0x182a   :  { %v6432_v59 = vand.u32 4294901760, %v6361_v47 }
0x182c   :  { %v6433_v60 = vsub.f32 %v6361_v47, %v6432_v59  ;;  %v7538_v47 = vsub.f32 %v7433_v21, %v7448_v38  ;;  %v7431_v21 = vld [vmem:[%s12197_s11 + $0x10] sm:$0xff] }
0x182e   :  { %v6434_v52 = vand.u32 4294901760, %v6433_v60 }
0x1830   :  { %v6435_v5 = vsub.f32 %v6433_v60, %v6434_v52 }
0x1832   :  { %v6436_v11 = vand.u32 4294901760, %v6435_v5  ;;  %v7539_v5 = vand.u32 4294901760, %v7538_v47 }
0x1834   :  { %9748 = vmatmul.mubr.f32.vlgmr.msra.gmra.mrb[12].mxu0 %v6436_v11 }
0x1835   :  { %10467 = vmatpush3.bf16.msra.mxu0 %v11635_v36  ;;  %9758 = vmatprep.mubr.msk.f32.mxu0 %vm11083_vm4, %v12203_v12 }
0x1836   :  { %10468 = vmatprep.subr.bf16.mxu0 %v11082_v57 }
0x1839   :  { %10470 = vmatpush3.bf16.msra.mxu0 %v11637_v3 }
0x183a   :  { %10471 = vmatprep.subr.bf16.mxu0 %v11082_v57 }
0x183c   :  { %9759 = vmatmul.mubr.f32.vlgmr.msra.gmra.mrb[12].mxu0 %v6432_v59 }
0x183d   :  { %10473 = vmatpush3.bf16.msra.mxu0 %v11639_v4  ;;  %9769 = vmatprep.mubr.msk.f32.mxu0 %vm11083_vm4, %v12203_v12 }
0x183e   :  { %10474 = vmatprep.subr.bf16.mxu0 %v11082_v57 }
0x1841   :  { %10476 = vmatpush3.bf16.msra.mxu0 %v11641_v26 }
0x1842   :  { %10477 = vmatprep.subr.bf16.mxu0 %v11082_v57 }
0x1844   :  { %9770 = vmatmul.mubr.f32.vlgmr.msra.gmra.mrb[12].mxu0 %v6433_v60  ;;  %v7454_v60 = vand.u32 4294901760, %v7435_v63 }
0x1845   :  { %10479 = vmatpush3.bf16.msra.mxu0 %v11624_v25  ;;  %9780 = vmatprep.mubr.msk.f32.mxu0 %vm11083_vm4, %v12203_v12 }
0x1846   :  { %10480 = vmatprep.subr.bf16.mxu0 %v11082_v57 }
0x1849   :  { %10482 = vmatpush3.bf16.msra.mxu0 %v11629_v15 }
0x184a   :  { %10483 = vmatprep.subr.bf16.mxu0 %v11082_v57 }
0x184c   :  { %9781 = vmatmul.mubr.f32.vlgmr.msra.gmra.mrb[12].mxu0 %v6434_v52  ;;  %v7457_v52 = vand.u32 4294901760, %v7436_v61 }
0x184d   :  { %10485 = vmatpush3.bf16.msra.mxu0 %v11643_v27  ;;  %9791 = vmatprep.mubr.msk.f32.mxu0 %vm11083_vm4, %v12203_v12 }
0x184e   :  { %10486 = vmatprep.subr.bf16.mxu0 %v11082_v57 }
0x1851   :  { %10488 = vmatpush3.bf16.msra.mxu0 %v11645_v41 }
0x1852   :  { %10489 = vmatprep.subr.bf16.mxu0 %v11082_v57 }
0x1854   :  { %9792 = vmatmul.mubr.f32.vlgmr.msra.gmra.mrb[12].mxu0 %v6432_v59 }
0x1855   :  { %10491 = vmatpush3.bf16.msra.mxu0 %v11624_v25  ;;  %9802 = vmatprep.mubr.msk.f32.mxu0 %vm11083_vm4, %v12203_v12 }
0x1856   :  { %10492 = vmatprep.subr.bf16.mxu0 %v11082_v57 }
0x1859   :  { %10494 = vmatpush3.bf16.msra.mxu0 %v11629_v15 }
0x185c   :  { %9803 = vmatmul.mubr.f32.vlgmr.msra.gmra.mrb[12].mxu0 %v6432_v59 }
0x192f   :  { %v6844_v16 = vpop.f32.mrb[12].mxu0 }
0x1930   :  { %v10639_v8 = vadd.f32 %v6844_v16, %v6359_v7  ;;  %v9804_v48 = vpop.f32.mrb[13].mxu0  ;;  %v12087_v7 = vpack.c.bf16 %v7457_v52, %v7454_v60  ;;  %v7540_v16 = vsub.f32 %v7538_v47, %v7539_v5 }
0x1931   :  { %v7552_v48 = vsub.f32 %v7435_v63, %v7454_v60 }
0x1932   :  { %v8610_v9 = vmul.f32 -1.442695, %v10639_v8 }
0x1934   :  { %10886 = vpow2.f32 %v8610_v9 }
0x193e   :  { %v10887_v10 = vpop.eup %10886 }
0x193f   :  { %v6851_v23 = vadd.f32 1.0, %v10887_v10 }
0x1941   :  { %10888 = vrcp.f32 %v6851_v23  ;;  %v7559_v23 = vsub.f32 %v7436_v61, %v7457_v52 }
0x194b   :  { %v10889_v28 = vpop.eup %10888 }
0x194c   :  { %v6854_v13 = vmul.f32 2.0, %v10889_v28  ;;  %v6856_v43 = vmul.f32 %v10889_v28, %v6349_v22  ;;  %v7434_v22 = vld [vmem:[%s12198_s12 + $0x8] sm:$0xff] }
0x194d   :  { %v7451_v39 = vand.u32 4294901760, %v7434_v22 }
0x194e   :  { %v8611_v30 = vadd.f32 -1.0, %v6854_v13  ;;  %v7541_v13 = vand.u32 4294901760, %v7540_v16 }
0x194f   :  { %v12077_v46 = vpack.c.bf16 %v7451_v39, %v7448_v38  ;;  %v7545_v59 = vsub.f32 %v7434_v22, %v7451_v39  ;;  %v7432_v22 = vld [vmem:[%s12197_s11 + $0x18] sm:$0xff] }
0x1950   :  { %6858 = vrot.lane.b32.xlu1 %v8611_v30, %s11077_s30 }
0x1951   :  { %10532 = vmatprep.subr.bf16.mxu0 %v12077_v46  ;;  %v7546_v11 = vand.u32 4294901760, %v7545_v59 }
0x1952   :  { %10534 = vmatpush3.bf16.msra.mxu0 %v12077_v46 }
0x1953   :  { %v7547_v8 = vsub.f32 %v7545_v59, %v7546_v11  ;;  %10536 = vmatprep.subr.bf16.mxu0 %v12087_v7 }
0x1955   :  { %v7548_v30 = vand.u32 4294901760, %v7547_v8 }
0x1956   :  { %10538 = vmatpush3.bf16.msra.mxu0 %v12087_v7 }
0x1957   :  { %v10539_v19 = vpack.c.bf16 %v7548_v30, %v7541_v13 }
0x1959   :  { %10540 = vmatprep.subr.bf16.mxu0 %v10539_v19 }
0x19c2   :  { %v6859_v31 = vpop.permute.xlu1 %6858 }
0x19c3   :  { %v6861_v35 = vmul.f32 %v10889_v28, %v6859_v31  ;;  %v7553_v31 = vand.u32 4294901760, %v7552_v48 }
0x19c5   :  { %6863 = vrot.lane.b32.xlu0 %v6861_v35, %s11080_s6  ;;  %v7415_v35 = vrot.slane %v11934_v14, 2 }
0x1a37   :  { %v6864_v62 = vpop.permute.xlu0 %6863 }
0x1a38   :  { %v12017_v0 = vadd.f32 %v6864_v62, %v6856_v43  ;;  %v7413_v43 = vrot.slane %v11980_v45, 4  ;;  %v7560_v62 = vand.u32 4294901760, %v7559_v23 }
0x1a3a   :  { %10890 = vtanh.f32 %v12017_v0 }
0x1a44   :  { %v10891_v1 = vpop.eup %10890 }
0x1a45   :  { %6869 = vrot.lane.b32.xlu1 %v10891_v1, %s11077_s30 }
0x1ab7   :  { %v6870_v20 = vpop.permute.xlu1 %6869 }
0x1ab8   :  { %v12022_v6 = vmul.f32 %v10889_v28, %v6870_v20  ;;  %v7554_v20 = vsub.f32 %v7552_v48, %v7553_v31 }
0x1aba   :  { %v7398_v24 = vrot.slane %v12022_v6, 4  ;;  %6874 = vrot.lane.b32.xlu0 %v12022_v6, %s11080_s6  ;;  %v7411_v9 = vrot.slane %v12022_v6, 6  ;;  %v7555_v14 = vand.u32 4294901760, %v7554_v20 }
0x1abc   :  { %v12030_v32 = vsel %vm1358_vm1, %v7408_v29, %v7398_v24  ;;  %v7561_v24 = vsub.f32 %v7559_v23, %v7560_v62 }
0x1abe   :  { %v7562_v45 = vand.u32 4294901760, %v7561_v24 }
0x1b2c   :  { %v6875_v33 = vpop.permute.xlu0 %6874 }
0x1b2d   :  { %v6878_v34 = vsel %vm156_vm0, %v6875_v33, 0 }
0x1b2e   :  { %v6949_v37 = vand.u32 4294901760, %v6878_v34 }
0x1b30   :  { %v6950_v40 = vsub.f32 %v6878_v34, %v6949_v37  ;;  %v10543_v34 = vpack.c.bf16 %v7562_v45, %v7555_v14 }
0x1b32   :  { %v6951_v58 = vand.u32 4294901760, %v6950_v40 }
0x1b34   :  { %v6952_v2 = vsub.f32 %v6950_v40, %v6951_v58 }
0x1b36   :  { %v6953_v42 = vand.u32 4294901760, %v6952_v2  ;;  %v10567_v2 = vpack.c.bf16 %v7560_v62, %v7553_v31 }
0x1b38   :  { %9814 = vmatmul.mubr.f32.vlgmr.msra.gmra.mrb[16].mxu1 %v6953_v42 }
0x1b39   :  { %10503 = vmatpush3.bf16.msra.mxu1 %v11635_v36  ;;  %9824 = vmatprep.mubr.msk.f32.mxu1 %vm11083_vm4, %v12203_v12  ;;  %v6876_v36 = vrot.slane %v11713_v53, 6 }
0x1b3a   :  { %10504 = vmatprep.subr.bf16.mxu1 %v11082_v57 }
0x1b3d   :  { %10506 = vmatpush3.bf16.msra.mxu1 %v11637_v3 }
0x1b3e   :  { %10507 = vmatprep.subr.bf16.mxu1 %v11082_v57 }
0x1b40   :  { %9825 = vmatmul.mubr.f32.vlgmr.msra.gmra.mrb[16].mxu1 %v6949_v37 }
0x1b41   :  { %10509 = vmatpush3.bf16.msra.mxu1 %v11639_v4  ;;  %9835 = vmatprep.mubr.msk.f32.mxu1 %vm11083_vm4, %v12203_v12 }
0x1b42   :  { %10510 = vmatprep.subr.bf16.mxu1 %v11082_v57 }
0x1b45   :  { %10512 = vmatpush3.bf16.msra.mxu1 %v11641_v26 }
0x1b46   :  { %10513 = vmatprep.subr.bf16.mxu1 %v11082_v57 }
0x1b48   :  { %9836 = vmatmul.mubr.f32.vlgmr.msra.gmra.mrb[16].mxu1 %v6950_v40  ;;  %v10551_v40 = vpack.c.bf16 %v7559_v23, %v7552_v48 }
0x1b49   :  { %10515 = vmatpush3.bf16.msra.mxu1 %v11624_v25  ;;  %9846 = vmatprep.mubr.msk.f32.mxu1 %vm11083_vm4, %v12203_v12 }
0x1b4a   :  { %10516 = vmatprep.subr.bf16.mxu1 %v11082_v57 }
0x1b4d   :  { %10518 = vmatpush3.bf16.msra.mxu1 %v11629_v15 }
0x1b4e   :  { %10519 = vmatprep.subr.bf16.mxu1 %v11082_v57 }
0x1b50   :  { %9847 = vmatmul.mubr.f32.vlgmr.msra.gmra.mrb[16].mxu1 %v6951_v58  ;;  %v10563_v58 = vpack.c.bf16 %v7546_v11, %v7539_v5 }
0x1b51   :  { %10521 = vmatpush3.bf16.msra.mxu1 %v11643_v27  ;;  %9857 = vmatprep.mubr.msk.f32.mxu1 %vm11083_vm4, %v12203_v12 }
0x1b52   :  { %10522 = vmatprep.subr.bf16.mxu1 %v11082_v57 }
0x1b55   :  { %10524 = vmatpush3.bf16.msra.mxu1 %v11645_v41 }
0x1b56   :  { %10525 = vmatprep.subr.bf16.mxu1 %v11082_v57 }
0x1b58   :  { %9858 = vmatmul.mubr.f32.vlgmr.msra.gmra.mrb[16].mxu1 %v6949_v37 }
0x1b59   :  { %10527 = vmatpush3.bf16.msra.mxu1 %v11624_v25  ;;  %9868 = vmatprep.mubr.msk.f32.mxu1 %vm11083_vm4, %v12203_v12 }
0x1b5a   :  { %10528 = vmatprep.subr.bf16.mxu1 %v11082_v57 }
0x1b5d   :  { %10530 = vmatpush3.bf16.msra.mxu1 %v11629_v15 }
0x1b60   :  { %9869 = vmatmul.mubr.f32.vlgmr.msra.gmra.mrb[16].mxu1 %v6949_v37  ;;  %v10547_v37 = vpack.c.bf16 %v7545_v59, %v7538_v47  ;;  %v7992_v47 = vand.u32 4294901760, %v7431_v21  ;;  %v7995_v59 = vand.u32 4294901760, %v7432_v22 }
0x1b62   :  { %v8090_v16 = vsub.f32 %v7431_v21, %v7992_v47  ;;  %v8097_v8 = vsub.f32 %v7432_v22, %v7995_v59 }
0x1b64   :  { %v8091_v13 = vand.u32 4294901760, %v8090_v16  ;;  %v8098_v30 = vand.u32 4294901760, %v8097_v8  ;;  %v10599_v45 = vpack.c.bf16 %v8097_v8, %v8090_v16 }
0x1c33   :  { %v7361_v3 = vpop.f32.mrb[16].mxu1 }
0x1c34   :  { %v10640_v4 = vadd.f32 %v7361_v3, %v6876_v36  ;;  %v9870_v26 = vpop.f32.mrb[17].mxu1 }
0x1c36   :  { %v8612_v27 = vmul.f32 -1.442695, %v10640_v4 }
0x1c38   :  { %10892 = vpow2.f32 %v8612_v27 }
0x1c42   :  { %v10893_v41 = vpop.eup %10892 }
0x1c43   :  { %v7368_v51 = vadd.f32 1.0, %v10893_v41 }
0x1c45   :  { %10894 = vrcp.f32 %v7368_v51 }
0x1c4f   :  { %v10895_v17 = vpop.eup %10894 }
0x1c50   :  { %v7371_v25 = vmul.f32 2.0, %v10895_v17  ;;  %v7373_v15 = vmul.f32 %v10895_v17, %v12017_v0 }
0x1c52   :  { %v8613_v50 = vadd.f32 -1.0, %v7371_v25 }
0x1c54   :  { %7375 = vrot.lane.b32.xlu1 %v8613_v50, %s11077_s30 }
0x1cc6   :  { %v7376_v12 = vpop.permute.xlu1 %7375 }
0x1cc7   :  { %v7378_v57 = vmul.f32 %v10895_v17, %v7376_v12 }
0x1cc9   :  { %7380 = vrot.lane.b32.xlu0 %v7378_v57, %s11080_s6 }
0x1d3b   :  { %v7381_v53 = vpop.permute.xlu0 %7380 }
0x1d3c   :  { %v7383_v54 = vadd.f32 %v7381_v53, %v7373_v15  ;;  %v7429_v15 = vld [vmem:[%s12197_s11] sm:$0xff]  ;;  %v7430_v53 = vld [vmem:[%s12197_s11 + $0x8] sm:$0xff] }
0x1d3d   :  { %v7989_v56 = vand.u32 4294901760, %v7430_v53 }
0x1d3e   :  { %10896 = vtanh.f32 %v7383_v54 }
0x1d3f   :  { %v8083_v63 = vsub.f32 %v7430_v53, %v7989_v56 }
0x1d41   :  { %v8084_v11 = vand.u32 4294901760, %v8083_v63 }
0x1d48   :  { %v10897_v55 = vpop.eup %10896 }
0x1d49   :  { %7386 = vrot.lane.b32.xlu1 %v10897_v55, %s11077_s30  ;;  %v7986_v55 = vand.u32 4294901760, %v7429_v15 }
0x1d4b   :  { %v12128_v39 = vsub.f32 %v7429_v15, %v7986_v55 }
0x1d4d   :  { %7441 = vrot.lane.b32.xlu1 %v7428_v18, %s11080_s6  ;;  %v8077_v52 = vand.u32 4294901760, %v12128_v39  ;;  %v10595_v14 = vpack.c.bf16 %v8083_v63, %v12128_v39 }
0x1dbb   :  { %v7387_v10 = vpop.permute.xlu1 %7386 }
0x1dbc   :  { %v7389_v28 = vmul.f32 %v10895_v17, %v7387_v10  ;;  %v8078_v10 = vsub.f32 %v12128_v39, %v8077_v52 }
0x1dbe   :  { %v7401_v0 = vrot.slane %v7389_v28, 2  ;;  %v7423_v1 = vsel %vm7403_vm5, %v7389_v28, %v7411_v9  ;;  %v10579_v9 = vpack.c.bf16 %v7989_v56, %v7986_v55  ;;  %v8085_v28 = vsub.f32 %v8083_v63, %v8084_v11 }
0x1dbf   :  { %v7424_v6 = vsel %vm1358_vm1, %v7423_v1, %v7413_v43  ;;  %v7442_v42 = vpop.permute.xlu1 %7441  ;;  %v8079_v43 = vand.u32 4294901760, %v8078_v10  ;;  %v8099_v1 = vsub.f32 %v8097_v8, %v8098_v30 }
0x1dc0   :  { %v7425_v29 = vsel %vm7406_vm6, %v7424_v6, %v7415_v35  ;;  %v7410_v33 = vsel %vm7406_vm6, %v12030_v32, %v7401_v0  ;;  %v7445_v36 = vsel %vm156_vm0, %v7442_v42, 0  ;;  %v10583_v35 = vpack.c.bf16 %v7995_v59, %v7992_v47 }
0x1dc1   :  { %7439 = vrot.lane.b32.xlu0 %v7425_v29, %s11080_s6  ;;  %7979 = vrot.lane.b32.xlu1 %v7410_v33, %s11080_s6  ;;  %v12104_v3 = vand.u32 4294901760, %v7445_v36  ;;  %v8086_v0 = vand.u32 4294901760, %v8085_v28  ;;  %v8100_v29 = vand.u32 4294901760, %v8099_v1 }
0x1dc3   :  { %v7527_v32 = vsub.f32 %v7445_v36, %v12104_v3  ;;  %v10587_v6 = vpack.c.bf16 %v8086_v0, %v8079_v43 }
0x1dc5   :  { %7977 = vrot.lane.b32.xlu0 %v11887_v44, %s11080_s6  ;;  %v7528_v41 = vand.u32 4294901760, %v7527_v32 }
0x1dc7   :  { %v7529_v25 = vsub.f32 %v7527_v32, %v7528_v41 }
0x1dc9   :  { %v7530_v12 = vand.u32 4294901760, %v7529_v25 }
0x1e33   :  { %v7440_v4 = vpop.permute.xlu0 %7439  ;;  %v7980_v38 = vpop.permute.xlu1 %7979 }
0x1e34   :  { %v7443_v26 = vsel %vm156_vm0, %v7440_v4, 0  ;;  %v7983_v61 = vsel %vm156_vm0, %v7980_v38, 0 }
0x1e35   :  { %v7516_v27 = vand.u32 4294901760, %v7443_v26  ;;  %v12133_v5 = vand.u32 4294901760, %v7983_v61 }
0x1e37   :  { %v7517_v51 = vsub.f32 %v7443_v26, %v7516_v27  ;;  %v7978_v57 = vpop.permute.xlu0 %7977  ;;  %v8065_v23 = vsub.f32 %v7983_v61, %v12133_v5 }
0x1e38   :  { %v7981_v54 = vsel %vm156_vm0, %v7978_v57, 0 }
0x1e39   :  { %v7518_v17 = vand.u32 4294901760, %v7517_v51  ;;  %v12120_v18 = vand.u32 4294901760, %v7981_v54  ;;  %v8066_v62 = vand.u32 4294901760, %v8065_v23 }
0x1e3b   :  { %v7519_v44 = vsub.f32 %v7517_v51, %v7518_v17  ;;  %v8055_v60 = vsub.f32 %v7981_v54, %v12120_v18  ;;  %v8067_v20 = vsub.f32 %v8065_v23, %v8066_v62 }
0x1e3d   :  { %v7520_v50 = vand.u32 4294901760, %v7519_v44  ;;  %v8056_v48 = vand.u32 4294901760, %v8055_v60  ;;  %v8068_v33 = vand.u32 4294901760, %v8067_v20 }
0x1e3f   :  { %9879 = vmatprep.mubr.f32.mxu0 %v7520_v50  ;;  %v8057_v31 = vsub.f32 %v8055_v60, %v8056_v48 }
0x1e40   :  { %9880 = vmatmul.mubr.f32.vlgmr.msra.gmra.mrb[14].mxu0 %v7530_v12 }
0x1e41   :  { %10542 = vmatpush3.bf16.msra.mxu0 %v10539_v19  ;;  %9890 = vmatprep.mubr.f32.mxu0 %v7516_v27  ;;  %v8058_v19 = vand.u32 4294901760, %v8057_v31 }
0x1e42   :  { %10544 = vmatprep.subr.bf16.mxu0 %v10543_v34 }
0x1e45   :  { %10546 = vmatpush3.bf16.msra.mxu0 %v10543_v34  ;;  %v10611_v34 = vpack.c.bf16 %v8084_v11, %v8077_v52 }
0x1e46   :  { %10548 = vmatprep.subr.bf16.mxu0 %v10547_v37 }
0x1e48   :  { %9891 = vmatmul.mubr.f32.vlgmr.msra.gmra.mrb[14].mxu0 %v12104_v3 }
0x1e49   :  { %10550 = vmatpush3.bf16.msra.mxu0 %v10547_v37  ;;  %9901 = vmatprep.mubr.f32.mxu0 %v7517_v51  ;;  %v10615_v37 = vpack.c.bf16 %v8098_v30, %v8091_v13 }
0x1e4a   :  { %10552 = vmatprep.subr.bf16.mxu0 %v10551_v40 }
0x1e4d   :  { %10554 = vmatpush3.bf16.msra.mxu0 %v10551_v40  ;;  %v8614_v40 = vld [vmem:[%s12199_s13] ss:$0 sm:$0xff] }
0x1e4e   :  { %10556 = vmatprep.subr.bf16.mxu0 %v12077_v46 }
0x1e50   :  { %9902 = vmatmul.mubr.f32.vlgmr.msra.gmra.mrb[14].mxu0 %v7527_v32 }
0x1e51   :  { %10558 = vmatpush3.bf16.msra.mxu0 %v12077_v46  ;;  %9912 = vmatprep.mubr.f32.mxu0 %v7518_v17 }
0x1e52   :  { %10560 = vmatprep.subr.bf16.mxu0 %v12087_v7 }
0x1e55   :  { %10562 = vmatpush3.bf16.msra.mxu0 %v12087_v7 }
0x1e56   :  { %10564 = vmatprep.subr.bf16.mxu0 %v10563_v58 }
0x1e58   :  { %9913 = vmatmul.mubr.f32.vlgmr.msra.gmra.mrb[14].mxu0 %v7528_v41  ;;  %v11084_v41 = vmov 1983009808  }
0x1e59   :  { %10566 = vmatpush3.bf16.msra.mxu0 %v10563_v58  ;;  %9923 = vmatprep.mubr.f32.mxu0 %v7516_v27  ;;  %v8538_v51 = vunpack.c.l.s4 %v11084_v41 }
0x1e5a   :  { %10568 = vmatprep.subr.bf16.mxu0 %v10567_v2 }
0x1e5b   :  { %v8539_v25 = vunpack.c.0.s8 %v8538_v51 }
0x1e5d   :  { %10570 = vmatpush3.bf16.msra.mxu0 %v10567_v2  ;;  %v8542_v44 = vsub.s32 %v8539_v25, %v11647_v49 }
0x1e5e   :  { %10572 = vmatprep.subr.bf16.mxu0 %v12077_v46 }
0x1e60   :  { %9924 = vmatmul.mubr.f32.vlgmr.msra.gmra.mrb[14].mxu0 %v12104_v3 }
0x1e61   :  { %10574 = vmatpush3.bf16.msra.mxu0 %v12077_v46  ;;  %9934 = vmatprep.mubr.f32.mxu0 %v7516_v27  ;;  %v8092_v46 = vsub.f32 %v8090_v16, %v8091_v13 }
0x1e62   :  { %10576 = vmatprep.subr.bf16.mxu0 %v12087_v7 }
0x1e63   :  { %v8093_v24 = vand.u32 4294901760, %v8092_v46 }
0x1e65   :  { %10578 = vmatpush3.bf16.msra.mxu0 %v12087_v7  ;;  %v10591_v7 = vpack.c.bf16 %v8100_v29, %v8093_v24 }
0x1e66   :  { %10580 = vmatprep.subr.bf16.mxu0 %v10579_v9 }
0x1e68   :  { %9935 = vmatmul.mubr.f32.vlgmr.msra.gmra.mrb[14].mxu0 %v12104_v3 }
0x1e69   :  { %10582 = vmatpush3.bf16.msra.mxu0 %v10579_v9  ;;  %9945 = vmatprep.mubr.f32.mxu0 %v8058_v19 }
0x1e6a   :  { %10584 = vmatprep.subr.bf16.mxu0 %v10583_v35 }
0x1e6d   :  { %10586 = vmatpush3.bf16.msra.mxu0 %v10583_v35 }
0x1e6e   :  { %10588 = vmatprep.subr.bf16.mxu0 %v10587_v6 }
0x1e70   :  { %9946 = vmatmul.mubr.f32.vlgmr.msra.gmra.mrb[14].mxu0 %v8068_v33 }
0x1e71   :  { %10590 = vmatpush3.bf16.msra.mxu0 %v10587_v6  ;;  %9956 = vmatprep.mubr.f32.mxu0 %v12120_v18 }
0x1e72   :  { %10592 = vmatprep.subr.bf16.mxu0 %v10591_v7 }
0x1e75   :  { %10594 = vmatpush3.bf16.msra.mxu0 %v10591_v7 }
0x1e76   :  { %10596 = vmatprep.subr.bf16.mxu0 %v10595_v14 }
0x1e78   :  { %9957 = vmatmul.mubr.f32.vlgmr.msra.gmra.mrb[14].mxu0 %v12133_v5 }
0x1e79   :  { %10598 = vmatpush3.bf16.msra.mxu0 %v10595_v14  ;;  %9967 = vmatprep.mubr.f32.mxu0 %v8055_v60 }
0x1e7a   :  { %10600 = vmatprep.subr.bf16.mxu0 %v10599_v45 }
0x1e7d   :  { %10602 = vmatpush3.bf16.msra.mxu0 %v10599_v45 }
0x1e7e   :  { %10604 = vmatprep.subr.bf16.mxu0 %v10579_v9 }
0x1e80   :  { %9968 = vmatmul.mubr.f32.vlgmr.msra.gmra.mrb[14].mxu0 %v8065_v23 }
0x1e81   :  { %10606 = vmatpush3.bf16.msra.mxu0 %v10579_v9  ;;  %9978 = vmatprep.mubr.f32.mxu0 %v8056_v48 }
0x1e82   :  { %10608 = vmatprep.subr.bf16.mxu0 %v10583_v35 }
0x1e85   :  { %10610 = vmatpush3.bf16.msra.mxu0 %v10583_v35 }
0x1e86   :  { %10612 = vmatprep.subr.bf16.mxu0 %v10611_v34 }
0x1e88   :  { %9979 = vmatmul.mubr.f32.vlgmr.msra.gmra.mrb[14].mxu0 %v8066_v62 }
0x1e89   :  { %10614 = vmatpush3.bf16.msra.mxu0 %v10611_v34  ;;  %9989 = vmatprep.mubr.f32.mxu0 %v12120_v18 }
0x1e8a   :  { %10616 = vmatprep.subr.bf16.mxu0 %v10615_v37 }
0x1e8d   :  { %10618 = vmatpush3.bf16.msra.mxu0 %v10615_v37 }
0x1e8e   :  { %10620 = vmatprep.subr.bf16.mxu0 %v10579_v9 }
0x1e90   :  { %9990 = vmatmul.mubr.f32.vlgmr.msra.gmra.mrb[14].mxu0 %v12133_v5 }
0x1e91   :  { %10622 = vmatpush3.bf16.msra.mxu0 %v10579_v9  ;;  %10000 = vmatprep.mubr.f32.mxu0 %v12120_v18 }
0x1e92   :  { %10624 = vmatprep.subr.bf16.mxu0 %v10583_v35 }
0x1e95   :  { %10626 = vmatpush3.bf16.msra.mxu0 %v10583_v35 }
0x1e98   :  { %10001 = vmatmul.mubr.f32.vlgmr.msra.gmra.mrb[14].mxu0 %v12133_v5 }
0x1f6b   :  { %v10002_v58 = vpop.f32.mrb[14].mxu0 }
0x1f6c   :  { %v8521_v2 = vadd.f32 %v10002_v58, %v8614_v40  ;;  %v8503_v42 = vpop.f32.mrb[15].mxu0 }
0x1f6d   :  { %v8520_v36 = vadd.f32 %v8614_v40, %v8503_v42 }
0x1f6e   :  { %v8616_v3 = vmul.f32 -1.442695, %v8521_v2 }
0x1f6f   :  { %v8615_v32 = vmul.f32 -1.442695, %v8520_v36 }
0x1f70   :  { %10898 = vpow2.f32 %v8616_v3 }
0x1f71   :  { %10900 = vpow2.f32 %v8615_v32 }
0x1f7a   :  { %v10899_v4 = vpop.eup %10898 }
0x1f7b   :  { %v10901_v26 = vpop.eup %10900  ;;  %v8529_v27 = vadd.f32 1.0, %v10899_v4 }
0x1f7c   :  { %v8528_v17 = vadd.f32 1.0, %v10901_v26 }
0x1f7d   :  { %10902 = vrcp.f32 %v8529_v27 }
0x1f7e   :  { %10904 = vrcp.f32 %v8528_v17 }
0x1f87   :  { %v10903_v50 = vpop.eup %10902 }
0x1f88   :  { %v10905_v12 = vpop.eup %10904  ;;  %v8553_v57 = vcombine.high %v10903_v50, %v10903_v50  ;;  %v8560_v15 = vrot.slane %v10903_v50, %v8542_v44 }
0x1f89   :  { %v8536_v53 = vcombine.high %v10905_v12, %v10905_v12  ;;  %v8543_v54 = vrot.slane %v10905_v12, %v8542_v44 }
0x1f8a   :  { %v8567_v55 = vrot.slane %v8553_v57, %v8542_v44  ;;  %v8568_v56 = vcombine.high %v8560_v15, %v8560_v15  ;;  %8583 = vst.msk [vmem:[%s12200_s14 + $0x8] sm:$0x3] %vm8578_vm7, %v8560_v15 }
0x1f8b   :  { %v8550_v18 = vrot.slane %v8536_v53, %v8542_v44  ;;  %v8551_v21 = vcombine.high %v8543_v54, %v8543_v54  ;;  %8579 = vst.msk [vmem:[%s12200_s14] sm:$0x3] %vm8578_vm7, %v8543_v54 }
0x1f8c   :  { %v8569_v49 = vcombine.high %v8567_v55, %v8567_v55  ;;  %8584 = vst.msk [vmem:[%s12200_s14 + $0xa] sm:$0x3] %vm8578_vm7, %v8568_v56  ;;  %8585 = vst.msk [vmem:[%s12200_s14 + $0xc] sm:$0x3] %vm8578_vm7, %v8567_v55 }
0x1f8d   :  { %v8552_v22 = vcombine.high %v8550_v18, %v8550_v18  ;;  %8580 = vst.msk [vmem:[%s12200_s14 + $0x2] sm:$0x3] %vm8578_vm7, %v8551_v21  ;;  %8581 = vst.msk [vmem:[%s12200_s14 + $0x4] sm:$0x3] %vm8578_vm7, %v8550_v18 }
0x1f8e   :  { %8586 = vst.msk [vmem:[%s12200_s14 + $0xe] sm:$0x3] %vm8578_vm7, %v8569_v49 }
0x1f8f   :  { %8582 = vst.msk [vmem:[%s12200_s14 + $0x6] sm:$0x3] %vm8578_vm7, %v8552_v22 }
0x1f90   :  { %8591 = vsyncpa [#allocation3], 1 }
0x1f91   :  { %8592 = vsyncpa [#allocation5], 1 }
0x1f92   :  { %8593 = vsyncpa [#allocation8], 1 }
0x1f93   :  { %8594 = vsyncpa [#allocation11], 1 }

</bundles_post_ra>
